<compile_context>
chip_gen: v5e
topology: v5e:2x2
jax: 0.10.0
libtpu: 0.0.40
codegen_flags: <defaults>
</compile_context>

<pallas_src>
from functools import partial

import jax
import jax.numpy as jnp
from jax.experimental import pallas as pl
from jax.experimental.pallas import tpu as pltpu

EPS = 1e-7                      # matches Normalize: x / (norm + 1e-7)
COMPUTE_DTYPE = jnp.bfloat16    # MXU inputs; accumulation stays float32


def _round_up(x, m):
    return (x + m - 1) // m * m


# ----------------------------------------------------------------------------
# Pallas kernels
# ----------------------------------------------------------------------------
def _mlp_kernel(x_ref, w1_ref, b1_ref, w2_ref, b2_ref, o_ref, *, fuse_l2):
    """One row tile: (TM,Cin)@(Cin,H)+b1 -> ReLU -> @(H,H)+b2 [-> per-row L2 norm]."""
    h = jnp.dot(x_ref[...], w1_ref[...], preferred_element_type=jnp.float32)
    h = jnp.maximum(h + b1_ref[...], 0.0)                       # bias + ReLU in f32
    y = jnp.dot(h.astype(w2_ref.dtype), w2_ref[...],
                preferred_element_type=jnp.float32)
    y = y + b2_ref[...]
    if fuse_l2:
        norm = jnp.sqrt(jnp.sum(y * y, axis=-1, keepdims=True))
        y = y / (norm + EPS)
    o_ref[...] = y


def _l2norm_rows_kernel(x_ref, o_ref):
    """Per-row L2 normalization of a (TM, C) tile."""
    x = x_ref[...].astype(jnp.float32)
    norm = jnp.sqrt(jnp.sum(x * x, axis=-1, keepdims=True))
    o_ref[...] = x / (norm + EPS)


def _l2norm_axis1_kernel(x_ref, o_ref):
    """Normalize over axis 1 (the HW axis) of a (1, HW, C) block — num_patches==0 path."""
    x = x_ref[...].astype(jnp.float32)
    norm = jnp.sqrt(jnp.sum(x * x, axis=1, keepdims=True))
    o_ref[...] = x / (norm + EPS)


# ----------------------------------------------------------------------------
# Wrappers (pallas_call + padding glue)
# ----------------------------------------------------------------------------
def mlp_forward(x, w1, b1, w2, b2, fuse_l2=True, tile_rows=256):
    """x: (M, Cin) f32. Returns (M, nc) f32, optionally row-L2-normalized."""
    m, cin = x.shape
    hdim = w1.shape[1]
    tm = min(tile_rows, _round_up(m, 8))
    mp = _round_up(m, tm)
    if mp != m:
        x = jnp.pad(x, ((0, mp - m), (0, 0)))
    xb = x.astype(COMPUTE_DTYPE)
    w1b = w1.astype(COMPUTE_DTYPE)
    w2b = w2.astype(COMPUTE_DTYPE)

    kern = partial(_mlp_kernel, fuse_l2=fuse_l2)
    out = pl.pallas_call(
        kern,
        out_shape=jax.ShapeDtypeStruct((mp, hdim), jnp.float32),
        grid=(mp // tm,),
        in_specs=[
            pl.BlockSpec((tm, cin), lambda i: (i, 0)),      # activations: one row tile
            pl.BlockSpec((cin, hdim), lambda i: (0, 0)),    # W1 (resident across grid)
            pl.BlockSpec((1, hdim), lambda i: (0, 0)),      # b1
            pl.BlockSpec((hdim, hdim), lambda i: (0, 0)),   # W2 (resident across grid)
            pl.BlockSpec((1, hdim), lambda i: (0, 0)),      # b2
        ],
        out_specs=pl.BlockSpec((tm, hdim), lambda i: (i, 0)),
        compiler_params=pltpu.CompilerParams(dimension_semantics=("parallel",)),
    )(xb, w1b, b1.reshape(1, hdim), w2b, b2.reshape(1, hdim))
    return out[:m]


def l2norm_rows(x, tile_rows=512):
    """Row-wise L2 normalization of (M, C) in a row-tiled Pallas kernel."""
    m, c = x.shape
    tm = min(tile_rows, _round_up(m, 8))
    mp = _round_up(m, tm)
    if mp != m:
        x = jnp.pad(x, ((0, mp - m), (0, 0)))
    out = pl.pallas_call(
        _l2norm_rows_kernel,
        out_shape=jax.ShapeDtypeStruct((mp, c), jnp.float32),
        grid=(mp // tm,),
        in_specs=[pl.BlockSpec((tm, c), lambda i: (i, 0))],
        out_specs=pl.BlockSpec((tm, c), lambda i: (i, 0)),
        compiler_params=pltpu.CompilerParams(dimension_semantics=("parallel",)),
    )(x.astype(jnp.float32))
    return out[:m]


def l2norm_axis1(x):
    """x: (B, HW, C); normalize over HW (axis 1) — matches Normalize on 3-D input."""
    b, hw, c = x.shape
    return pl.pallas_call(
        _l2norm_axis1_kernel,
        out_shape=jax.ShapeDtypeStruct((b, hw, c), jnp.float32),
        grid=(b,),
        in_specs=[pl.BlockSpec((1, hw, c), lambda i: (i, 0, 0))],
        out_specs=pl.BlockSpec((1, hw, c), lambda i: (i, 0, 0)),
        compiler_params=pltpu.CompilerParams(dimension_semantics=("parallel",)),
    )(x.astype(jnp.float32))


# ----------------------------------------------------------------------------
# PatchSampleF: parameters + forward
# ----------------------------------------------------------------------------
def init_mlp_params(key, input_ncs, nc=256, init_gain=0.02):
    """One (Linear(Cin,nc), ReLU, Linear(nc,nc)) MLP per feature map.
    init_net('normal', 0.02): weights ~ N(0, init_gain), biases = 0."""
    mlps = []
    for cin in input_ncs:
        k1, k2, key = jax.random.split(key, 3)
        w1 = init_gain * jax.random.normal(k1, (cin, nc), jnp.float32)
        b1 = jnp.zeros((nc,), jnp.float32)
        w2 = init_gain * jax.random.normal(k2, (nc, nc), jnp.float32)
        b2 = jnp.zeros((nc,), jnp.float32)
        mlps.append((w1, b1, w2, b2))
    return mlps


def patch_sample_forward(feats, mlps=None, num_patches=64, patch_ids=None, key=None):
    """
    feats : list of (B, C, H, W) arrays (NCHW, torch convention).
    mlps  : list of (w1, b1, w2, b2) per feature map, or None (use_mlp=False).
    Returns (return_feats, return_ids), mirroring PatchSampleF.forward.
    """
    use_mlp = mlps is not None
    if key is None:
        key = jax.random.PRNGKey(0)
    return_feats, return_ids = [], []
    for fid, feat in enumerate(feats):
        b, c, h, w = feat.shape
        hw = h * w
        feat_r = jnp.transpose(feat, (0, 2, 3, 1)).reshape(b, hw, c)    # (B, HW, C)
        if num_patches > 0:
            if patch_ids is not None:
                pid = jnp.asarray(patch_ids[fid], jnp.int32)
            else:
                key, sub = jax.random.split(key)
                pid = jax.random.permutation(sub, hw)[: min(num_patches, hw)]
                pid = pid.astype(jnp.int32)
            # Gather sampled spatial positions (plain-JAX glue; result is tiny).
            x_sample = jnp.take(feat_r, pid, axis=1).reshape(b * pid.shape[0], c)
            if use_mlp:
                w1, b1, w2, b2 = mlps[fid]
                x_sample = mlp_forward(x_sample, w1, b1, w2, b2, fuse_l2=True)
            else:
                x_sample = l2norm_rows(x_sample)
            return_ids.append(pid)
            return_feats.append(x_sample)
        else:
            x_sample = feat_r
            if use_mlp:
                w1, b1, w2, b2 = mlps[fid]
                rows = mlp_forward(x_sample.reshape(b * hw, c), w1, b1, w2, b2,
                                   fuse_l2=False)
                x_sample = rows.reshape(b, hw, -1)
            # Faithful to the reference: Normalize sums over dim 1 (= HW) on 3-D input.
            x_sample = l2norm_axis1(x_sample)
            cc = x_sample.shape[-1]
            x_sample = jnp.transpose(x_sample, (0, 2, 1)).reshape(b, cc, h, w)
            return_ids.append(jnp.zeros((0,), jnp.int32))
            return_feats.append(x_sample)
    return return_feats, return_ids


# ----------------------------------------------------------------------------
# Pure-JAX reference (f32) for validation
# ----------------------------------------------------------------------------
def reference_forward(feats, mlps=None, num_patches=64, patch_ids=None):
    use_mlp = mlps is not None
    out_feats, out_ids = [], []
    for fid, feat in enumerate(feats):
        b, c, h, w = feat.shape
        hw = h * w
        fr = jnp.transpose(feat, (0, 2, 3, 1)).reshape(b, hw, c)
        if num_patches > 0:
            pid = jnp.asarray(patch_ids[fid], jnp.int32)
            xs = jnp.take(fr, pid, axis=1).reshape(b * pid.shape[0], c)
        else:
            pid = jnp.zeros((0,), jnp.int32)
            xs = fr
        if use_mlp:
            w1, b1, w2, b2 = mlps[fid]
            xs = jnp.maximum(xs @ w1 + b1, 0.0) @ w2 + b2
        norm = jnp.sqrt(jnp.sum(xs * xs, axis=1, keepdims=True))
        xs = xs / (norm + EPS)
        if num_patches == 0:
            cc = xs.shape[-1]
            xs = jnp.transpose(xs, (0, 2, 1)).reshape(b, cc, h, w)
        out_feats.append(xs)
        out_ids.append(pid)
    return out_feats, out_ids


# ----------------------------------------------------------------------------
if __name__ == "__main__":
    key = jax.random.PRNGKey(0)
    kf1, kf2, kp, kid = jax.random.split(key, 4)

    B = 2
    feats = [
        jax.random.normal(kf1, (B, 4, 16, 16), jnp.float32),
        jax.random.normal(kf2, (B, 16, 8, 8), jnp.float32),
    ]
    NC = 256            # module default hidden width (lane-dense: multiple of 128)
    NUM_PATCHES = 64

    mlps = init_mlp_params(kp, [f.shape[1] for f in feats], nc=NC)

    # --- Path 1: use_mlp=True, num_patches>0 (standard CUT training path) ---
    fwd = jax.jit(lambda fts, ms, k: patch_sample_forward(
        fts, ms, num_patches=NUM_PATCHES, patch_ids=None, key=k))
    out_feats, out_ids = fwd(feats, mlps, kid)
    out_feats = jax.block_until_ready(out_feats)

    ref_feats, _ = reference_forward(feats, mlps, num_patches=NUM_PATCHES,
                                     patch_ids=out_ids)
    assert out_feats[0].shape == (B * NUM_PATCHES, NC), out_feats[0].shape
    assert out_feats[1].shape == (B * min(NUM_PATCHES, 64), NC), out_feats[1].shape
    for o, r in zip(out_feats, ref_feats):
        err = float(jnp.max(jnp.abs(o - r)))
        assert err < 3e-2, f"mlp path max abs err vs reference: {err}"

    # --- Path 2: use_mlp=False, num_patches>0 (pure L2-norm of sampled patches) ---
    out2, _ = patch_sample_forward(feats, None, num_patches=NUM_PATCHES,
                                   patch_ids=out_ids)
    ref2, _ = reference_forward(feats, None, num_patches=NUM_PATCHES,
                                patch_ids=out_ids)
    out2 = jax.block_until_ready(out2)
    for o, r in zip(out2, ref2):
        err = float(jnp.max(jnp.abs(o - r)))
        assert err < 1e-5, f"l2norm path max abs err vs reference: {err}"

    # --- Path 3: num_patches == 0 (dense map, Normalize over HW axis) ---
    out3, _ = patch_sample_forward(feats, None, num_patches=0)
    ref3, _ = reference_forward(feats, None, num_patches=0)
    out3 = jax.block_until_ready(out3)
    assert out3[0].shape == (B, 4, 16, 16), out3[0].shape
    for o, r in zip(out3, ref3):
        err = float(jnp.max(jnp.abs(o - r)))
        assert err < 1e-5, f"dense path max abs err vs reference: {err}"

    print("KERNEL_OK")
</pallas_src>

<mosaic_0001>
module attributes {stable_mosaic.version = 11 : i64} {
  func.func @_mlp_kernel(%arg0: i32, %arg1: memref<128x16xbf16, #tpu.memory_space<vmem>>, %arg2: memref<16x256xbf16, #tpu.memory_space<vmem>>, %arg3: memref<1x256xf32, #tpu.memory_space<vmem>>, %arg4: memref<256x256xbf16, #tpu.memory_space<vmem>>, %arg5: memref<1x256xf32, #tpu.memory_space<vmem>>, %arg6: memref<128x256xf32, #tpu.memory_space<vmem>>) attributes {dimension_semantics = [#tpu.dimension_semantics<parallel>], iteration_bounds = array<i64: 1>, scalar_prefetch = 0 : i64, scratch_operands = 0 : i64, tpu.core_type = #tpu.core_type<tc>, window_params = [{transform_indices = @transform_0, window_bounds = array<i64: 128, 16>}, {pipeline_mode = #tpu.pipeline_mode<synchronous>, transform_indices = @transform_1, window_bounds = array<i64: 16, 256>}, {pipeline_mode = #tpu.pipeline_mode<synchronous>, transform_indices = @transform_2, window_bounds = array<i64: 1, 256>}, {pipeline_mode = #tpu.pipeline_mode<synchronous>, transform_indices = @transform_3, window_bounds = array<i64: 256, 256>}, {pipeline_mode = #tpu.pipeline_mode<synchronous>, transform_indices = @transform_4, window_bounds = array<i64: 1, 256>}, {transform_indices = @transform_5, window_bounds = array<i64: 128, 256>}]} {
    %c0 = arith.constant 0 : index
    %c0_0 = arith.constant 0 : index
    %0 = vector.load %arg1[%c0, %c0_0] : memref<128x16xbf16, #tpu.memory_space<vmem>>, vector<128x16xbf16>
    %c0_1 = arith.constant 0 : index
    %c0_2 = arith.constant 0 : index
    %1 = vector.load %arg2[%c0_1, %c0_2] : memref<16x256xbf16, #tpu.memory_space<vmem>>, vector<16x256xbf16>
    %cst = arith.constant dense<0.000000e+00> : vector<128x256xf32>
    %2 = tpu.matmul %0, %1, %cst {dimension_numbers = #tpu.dot_dimension_numbers<[1], [0], [0], [1], [0, 0, 1, 1], [], []>} : vector<128x16xbf16>, vector<16x256xbf16>, vector<128x256xf32> -> vector<128x256xf32>
    %c0_3 = arith.constant 0 : index
    %c0_4 = arith.constant 0 : index
    %3 = vector.load %arg3[%c0_3, %c0_4] : memref<1x256xf32, #tpu.memory_space<vmem>>, vector<1x256xf32>
    %4 = vector.broadcast %3 : vector<1x256xf32> to vector<128x256xf32>
    %5 = arith.addf %2, %4 : vector<128x256xf32>
    %cst_5 = arith.constant 0.000000e+00 : f32
    %6 = vector.broadcast %cst_5 : f32 to vector<128x256xf32>
    %7 = arith.maximumf %5, %6 : vector<128x256xf32>
    %8 = arith.truncf %7 : vector<128x256xf32> to vector<128x256xbf16>
    %c0_6 = arith.constant 0 : index
    %c0_7 = arith.constant 0 : index
    %9 = vector.load %arg4[%c0_6, %c0_7] : memref<256x256xbf16, #tpu.memory_space<vmem>>, vector<256x256xbf16>
    %cst_8 = arith.constant dense<0.000000e+00> : vector<128x256xf32>
    %10 = tpu.matmul %8, %9, %cst_8 {dimension_numbers = #tpu.dot_dimension_numbers<[1], [0], [0], [1], [0, 0, 1, 1], [], []>} : vector<128x256xbf16>, vector<256x256xbf16>, vector<128x256xf32> -> vector<128x256xf32>
    %c0_9 = arith.constant 0 : index
    %c0_10 = arith.constant 0 : index
    %11 = vector.load %arg5[%c0_9, %c0_10] : memref<1x256xf32, #tpu.memory_space<vmem>>, vector<1x256xf32>
    %12 = vector.broadcast %11 : vector<1x256xf32> to vector<128x256xf32>
    %13 = arith.addf %10, %12 : vector<128x256xf32>
    %14 = arith.mulf %13, %13 : vector<128x256xf32>
    %cst_11 = arith.constant dense<0.000000e+00> : vector<128xf32>
    %15 = vector.multi_reduction <add>, %14, %cst_11 [1] : vector<128x256xf32> to vector<128xf32>
    %16 = vector.shape_cast %15 : vector<128xf32> to vector<128x1xf32>
    %17 = math.sqrt %16 : vector<128x1xf32>
    %cst_12 = arith.constant 1.000000e-07 : f32
    %18 = vector.broadcast %cst_12 : f32 to vector<128x1xf32>
    %19 = arith.addf %17, %18 : vector<128x1xf32>
    %20 = vector.broadcast %19 : vector<128x1xf32> to vector<128x256xf32>
    %21 = arith.divf %13, %20 : vector<128x256xf32>
    %c0_13 = arith.constant 0 : index
    %c0_14 = arith.constant 0 : index
    %22 = vector.load %arg6[%c0_13, %c0_14] : memref<128x256xf32, #tpu.memory_space<vmem>>, vector<128x256xf32>
    tpu.vector_store %arg6[%c0_13, %c0_14], %21 {strides = array<i32>} : memref<128x256xf32, #tpu.memory_space<vmem>>, vector<128x256xf32>,
    return
  }
  func.func @transform_0(%arg0: i32) -> (i32, i32) {
    %c0_i32 = arith.constant 0 : i32
    %c0_i32_0 = arith.constant 0 : i32
    return %arg0, %c0_i32 : i32, i32
  }
  func.func @transform_1(%arg0: i32) -> (i32, i32) {
    %c0_i32 = arith.constant 0 : i32
    %c0_i32_0 = arith.constant 0 : i32
    %c0_i32_1 = arith.constant 0 : i32
    return %c0_i32, %c0_i32_0 : i32, i32
  }
  func.func @transform_2(%arg0: i32) -> (i32, i32) {
    %c0_i32 = arith.constant 0 : i32
    %c0_i32_0 = arith.constant 0 : i32
    %c0_i32_1 = arith.constant 0 : i32
    return %c0_i32, %c0_i32_0 : i32, i32
  }
  func.func @transform_3(%arg0: i32) -> (i32, i32) {
    %c0_i32 = arith.constant 0 : i32
    %c0_i32_0 = arith.constant 0 : i32
    %c0_i32_1 = arith.constant 0 : i32
    return %c0_i32, %c0_i32_0 : i32, i32
  }
  func.func @transform_4(%arg0: i32) -> (i32, i32) {
    %c0_i32 = arith.constant 0 : i32
    %c0_i32_0 = arith.constant 0 : i32
    %c0_i32_1 = arith.constant 0 : i32
    return %c0_i32, %c0_i32_0 : i32, i32
  }
  func.func @transform_5(%arg0: i32) -> (i32, i32) {
    %c0_i32 = arith.constant 0 : i32
    %c0_i32_0 = arith.constant 0 : i32
    return %arg0, %c0_i32 : i32, i32
  }
}

module attributes {stable_mosaic.version = 11 : i64} {
  func.func @_mlp_kernel(%arg0: i32, %arg1: memref<128x4xbf16, #tpu.memory_space<vmem>>, %arg2: memref<4x256xbf16, #tpu.memory_space<vmem>>, %arg3: memref<1x256xf32, #tpu.memory_space<vmem>>, %arg4: memref<256x256xbf16, #tpu.memory_space<vmem>>, %arg5: memref<1x256xf32, #tpu.memory_space<vmem>>, %arg6: memref<128x256xf32, #tpu.memory_space<vmem>>) attributes {dimension_semantics = [#tpu.dimension_semantics<parallel>], iteration_bounds = array<i64: 1>, scalar_prefetch = 0 : i64, scratch_operands = 0 : i64, tpu.core_type = #tpu.core_type<tc>, window_params = [{transform_indices = @transform_0, window_bounds = array<i64: 128, 4>}, {pipeline_mode = #tpu.pipeline_mode<synchronous>, transform_indices = @transform_1, window_bounds = array<i64: 4, 256>}, {pipeline_mode = #tpu.pipeline_mode<synchronous>, transform_indices = @transform_2, window_bounds = array<i64: 1, 256>}, {pipeline_mode = #tpu.pipeline_mode<synchronous>, transform_indices = @transform_3, window_bounds = array<i64: 256, 256>}, {pipeline_mode = #tpu.pipeline_mode<synchronous>, transform_indices = @transform_4, window_bounds = array<i64: 1, 256>}, {transform_indices = @transform_5, window_bounds = array<i64: 128, 256>}]} {
    %c0 = arith.constant 0 : index
    %c0_0 = arith.constant 0 : index
    %0 = vector.load %arg1[%c0, %c0_0] : memref<128x4xbf16, #tpu.memory_space<vmem>>, vector<128x4xbf16>
    %c0_1 = arith.constant 0 : index
    %c0_2 = arith.constant 0 : index
    %1 = vector.load %arg2[%c0_1, %c0_2] : memref<4x256xbf16, #tpu.memory_space<vmem>>, vector<4x256xbf16>
    %cst = arith.constant dense<0.000000e+00> : vector<128x256xf32>
    %2 = tpu.matmul %0, %1, %cst {dimension_numbers = #tpu.dot_dimension_numbers<[1], [0], [0], [1], [0, 0, 1, 1], [], []>} : vector<128x4xbf16>, vector<4x256xbf16>, vector<128x256xf32> -> vector<128x256xf32>
    %c0_3 = arith.constant 0 : index
    %c0_4 = arith.constant 0 : index
    %3 = vector.load %arg3[%c0_3, %c0_4] : memref<1x256xf32, #tpu.memory_space<vmem>>, vector<1x256xf32>
    %4 = vector.broadcast %3 : vector<1x256xf32> to vector<128x256xf32>
    %5 = arith.addf %2, %4 : vector<128x256xf32>
    %cst_5 = arith.constant 0.000000e+00 : f32
    %6 = vector.broadcast %cst_5 : f32 to vector<128x256xf32>
    %7 = arith.maximumf %5, %6 : vector<128x256xf32>
    %8 = arith.truncf %7 : vector<128x256xf32> to vector<128x256xbf16>
    %c0_6 = arith.constant 0 : index
    %c0_7 = arith.constant 0 : index
    %9 = vector.load %arg4[%c0_6, %c0_7] : memref<256x256xbf16, #tpu.memory_space<vmem>>, vector<256x256xbf16>
    %cst_8 = arith.constant dense<0.000000e+00> : vector<128x256xf32>
    %10 = tpu.matmul %8, %9, %cst_8 {dimension_numbers = #tpu.dot_dimension_numbers<[1], [0], [0], [1], [0, 0, 1, 1], [], []>} : vector<128x256xbf16>, vector<256x256xbf16>, vector<128x256xf32> -> vector<128x256xf32>
    %c0_9 = arith.constant 0 : index
    %c0_10 = arith.constant 0 : index
    %11 = vector.load %arg5[%c0_9, %c0_10] : memref<1x256xf32, #tpu.memory_space<vmem>>, vector<1x256xf32>
    %12 = vector.broadcast %11 : vector<1x256xf32> to vector<128x256xf32>
    %13 = arith.addf %10, %12 : vector<128x256xf32>
    %14 = arith.mulf %13, %13 : vector<128x256xf32>
    %cst_11 = arith.constant dense<0.000000e+00> : vector<128xf32>
    %15 = vector.multi_reduction <add>, %14, %cst_11 [1] : vector<128x256xf32> to vector<128xf32>
    %16 = vector.shape_cast %15 : vector<128xf32> to vector<128x1xf32>
    %17 = math.sqrt %16 : vector<128x1xf32>
    %cst_12 = arith.constant 1.000000e-07 : f32
    %18 = vector.broadcast %cst_12 : f32 to vector<128x1xf32>
    %19 = arith.addf %17, %18 : vector<128x1xf32>
    %20 = vector.broadcast %19 : vector<128x1xf32> to vector<128x256xf32>
    %21 = arith.divf %13, %20 : vector<128x256xf32>
    %c0_13 = arith.constant 0 : index
    %c0_14 = arith.constant 0 : index
    %22 = vector.load %arg6[%c0_13, %c0_14] : memref<128x256xf32, #tpu.memory_space<vmem>>, vector<128x256xf32>
    tpu.vector_store %arg6[%c0_13, %c0_14], %21 {strides = array<i32>} : memref<128x256xf32, #tpu.memory_space<vmem>>, vector<128x256xf32>,
    return
  }
  func.func @transform_0(%arg0: i32) -> (i32, i32) {
    %c0_i32 = arith.constant 0 : i32
    %c0_i32_0 = arith.constant 0 : i32
    return %arg0, %c0_i32 : i32, i32
  }
  func.func @transform_1(%arg0: i32) -> (i32, i32) {
    %c0_i32 = arith.constant 0 : i32
    %c0_i32_0 = arith.constant 0 : i32
    %c0_i32_1 = arith.constant 0 : i32
    return %c0_i32, %c0_i32_0 : i32, i32
  }
  func.func @transform_2(%arg0: i32) -> (i32, i32) {
    %c0_i32 = arith.constant 0 : i32
    %c0_i32_0 = arith.constant 0 : i32
    %c0_i32_1 = arith.constant 0 : i32
    return %c0_i32, %c0_i32_0 : i32, i32
  }
  func.func @transform_3(%arg0: i32) -> (i32, i32) {
    %c0_i32 = arith.constant 0 : i32
    %c0_i32_0 = arith.constant 0 : i32
    %c0_i32_1 = arith.constant 0 : i32
    return %c0_i32, %c0_i32_0 : i32, i32
  }
  func.func @transform_4(%arg0: i32) -> (i32, i32) {
    %c0_i32 = arith.constant 0 : i32
    %c0_i32_0 = arith.constant 0 : i32
    %c0_i32_1 = arith.constant 0 : i32
    return %c0_i32, %c0_i32_0 : i32, i32
  }
  func.func @transform_5(%arg0: i32) -> (i32, i32) {
    %c0_i32 = arith.constant 0 : i32
    %c0_i32_0 = arith.constant 0 : i32
    return %arg0, %c0_i32 : i32, i32
  }
}

</mosaic_0001>

<bundles_post_ra>
// kernel: _lambda_.3
= control target key start
LH: loop header
LB: loop body
LE: loop exit
PB: predicated region body
PF: predicated region fallthrough
CT: control target
= control target key end

     0   :  { %s2305_s0 = inlined_call_operand.vmem [shape: bf16[128,16], index: 0, kind: input, shape index: {}]   ;;  %s2306_s1 = inlined_call_operand.vmem [shape: bf16[16,256], index: 1, kind: input, shape index: {}]   ;;  %s2307_s2 = inlined_call_operand.vmem [shape: f32[1,256], index: 2, kind: input, shape index: {}]   ;;  %s2308_s3 = inlined_call_operand.vmem [shape: bf16[256,256], index: 3, kind: input, shape index: {}]   ;;  %s2309_s4 = inlined_call_operand.vmem [shape: f32[1,256], index: 4, kind: input, shape index: {}]   ;;  %s2310_s5 = inlined_call_operand.hbm [shape: f32[128,256], index: 5, kind: output, shape index: {}]  }
   0x1   :  { %v1289_v0 = vld [vmem:[%s2306_s1] sm:$0xf]  ;;  %v1448_v1 = vld [vmem:[%s2306_s1 + $0x4] sm:$0xf0]  ;;  %v1447_v2 = vld [vmem:[%s2306_s1 + $0x4] sm:$0xf] }
   0x2   :  { %v1290_v3 = vor.u32 %v1448_v1, %v1289_v0  ;;  %v1291_v4 = vld [vmem:[%s2306_s1 + $0x8] sm:$0xf0]  ;;  %v1439_v6 = vld [vmem:[%s2305_s0] sm:$0xff] }
   0x3   :  { %v1294_v5 = vor.u32 %v1447_v2, %v1291_v4 }
   0x4   :  { %10 = vsyncpa [#allocation3], 0  ;;  %128 = vmatpush.bf16.msra.mxu0 %v1290_v3  ;;  %vm96_vm0 = vcmask 130048   ;;  %1481 = vmatpush.bf16.msra.mxu2 %v1290_v3  ;;  %v1440_v7 = vld [vmem:[%s2305_s0 + $0x8] sm:$0xff]  ;;  %v1642_v8 = vld [vmem:[%s2305_s0 + $0x20] sm:$0xff]  ;;  %s1243_s16 = sshll.u32 %s2310_s5, 4  ;;  %s1244_s16 = int_to_ptr.hbm [resolvable:$true] %s1243_s16 }
   0x5   :  { %177 = vmatpush.bf16.msra.mxu1 %v1294_v5  ;;  %1482 = vmatpush.bf16.msra.mxu3 %v1294_v5  ;;  %v1441_v9 = vld [vmem:[%s2305_s0 + $0x10] sm:$0xff]  ;;  %v1444_v10 = vld [vmem:[%s2305_s0 + $0x28] sm:$0xff]  ;;  %v1464_v12 = vld [vmem:[%s2308_s3 + $0x74] sm:$0xf0]  ;;  %s1585_s17 = smov 256   ;;  %s1586_s18 = smov 16  }
   0x6   :  { %v1369_v11 = vld [vmem:[%s2308_s3 + $0x70] sm:$0xf]  ;;  %v1480_v14 = vld [vmem:[%s2308_s3 + $0xf4] sm:$0xf0]  ;;  %v1361_v17 = vld [vmem:[%s2308_s3 + $0x60] sm:$0xf] }
   0x7   :  { %1295 = vmatmul.msk.bf16.vlgmr.msra.gmra.mxu0 %vm96_vm0, %v1439_v6  ;;  %v1433_v13 = vld [vmem:[%s2308_s3 + $0xf0] sm:$0xf]  ;;  %1300 = vmatmul.msk.bf16.vlgmr.msra.gmra.mxu2 %vm96_vm0, %v1444_v10  ;;  %v1370_v15 = vor.u32 %v1464_v12, %v1369_v11  ;;  %v1462_v18 = vld [vmem:[%s2308_s3 + $0x64] sm:$0xf0]  ;;  %v1463_v19 = vld [vmem:[%s2308_s3 + $0x74] sm:$0xf] }
   0x8   :  { %1303 = vmatmul.msk.bf16.vlgmr.msra.gmra.mxu1 %vm96_vm0, %v1439_v6  ;;  %1307 = vmatmul.msk.bf16.vlgmr.msra.gmra.mxu3 %vm96_vm0, %v1642_v8  ;;  %v1434_v16 = vor.u32 %v1480_v14, %v1433_v13  ;;  %v1371_v20 = vld [vmem:[%s2308_s3 + $0x78] sm:$0xf0]  ;;  %v1479_v21 = vld [vmem:[%s2308_s3 + $0xf4] sm:$0xf]  ;;  %v1362_v22 = vor.u32 %v1462_v18, %v1361_v17  ;;  %v1425_v25 = vld [vmem:[%s2308_s3 + $0xe0] sm:$0xf] }
   0x9   :  { %465 = vmatpush.bf16.msrb.mxu2 %v1370_v15  ;;  %v1683_v23 = vor.u32 %v1463_v19, %v1371_v20  ;;  %v1435_v24 = vld [vmem:[%s2308_s3 + $0xf8] sm:$0xf0]  ;;  %v1478_v26 = vld [vmem:[%s2308_s3 + $0xe4] sm:$0xf0]  ;;  %v1353_v29 = vld [vmem:[%s2308_s3 + $0x50] sm:$0xf] }
   0xa   :  { %514 = vmatpush.bf16.msrb.mxu3 %v1434_v16  ;;  %v1438_v27 = vor.u32 %v1479_v21, %v1435_v24  ;;  %v1426_v28 = vor.u32 %v1478_v26, %v1425_v25  ;;  %v1460_v30 = vld [vmem:[%s2308_s3 + $0x54] sm:$0xf0]  ;;  %v1461_v31 = vld [vmem:[%s2308_s3 + $0x64] sm:$0xf]  ;;  %v1363_v32 = vld [vmem:[%s2308_s3 + $0x68] sm:$0xf0] }
   0xb   :  { %563 = vmatpush.bf16.msrb.mxu0 %v1683_v23  ;;  %v1477_v33 = vld [vmem:[%s2308_s3 + $0xe4] sm:$0xf]  ;;  %v1427_v34 = vld [vmem:[%s2308_s3 + $0xe8] sm:$0xf0]  ;;  %v1713_v35 = vor.u32 %v1461_v31, %v1363_v32  ;;  %v1417_v37 = vld [vmem:[%s2308_s3 + $0xd0] sm:$0xf]  ;;  %v1354_v38 = vor.u32 %v1460_v30, %v1353_v29 }
   0xc   :  { %612 = vmatpush.bf16.msrb.mxu1 %v1438_v27  ;;  %v1430_v36 = vor.u32 %v1477_v33, %v1427_v34  ;;  %v1345_v39 = vld [vmem:[%s2308_s3 + $0x40] sm:$0xf]  ;;  %v1458_v40 = vld [vmem:[%s2308_s3 + $0x44] sm:$0xf0]  ;;  %v1476_v41 = vld [vmem:[%s2308_s3 + $0xd4] sm:$0xf0] }
   0xd   :  { %466 = vmatpush.bf16.msrb.mxu2 %v1362_v22  ;;  %v1418_v42 = vor.u32 %v1476_v41, %v1417_v37  ;;  %v1475_v43 = vld [vmem:[%s2308_s3 + $0xd4] sm:$0xf]  ;;  %v1419_v44 = vld [vmem:[%s2308_s3 + $0xd8] sm:$0xf0]  ;;  %v1409_v47 = vld [vmem:[%s2308_s3 + $0xc0] sm:$0xf]  ;;  %v1346_v54 = vor.u32 %v1458_v40, %v1345_v39 }
   0xe   :  { %515 = vmatpush.bf16.msrb.mxu3 %v1426_v28  ;;  %v1459_v45 = vld [vmem:[%s2308_s3 + $0x54] sm:$0xf]  ;;  %v1355_v46 = vld [vmem:[%s2308_s3 + $0x58] sm:$0xf0]  ;;  %v1474_v48 = vld [vmem:[%s2308_s3 + $0xc4] sm:$0xf0]  ;;  %v1422_v49 = vor.u32 %v1475_v43, %v1419_v44 }
   0xf   :  { %564 = vmatpush.bf16.msrb.mxu0 %v1713_v35  ;;  %v1746_v50 = vor.u32 %v1459_v45, %v1355_v46  ;;  %v1457_v51 = vld [vmem:[%s2308_s3 + $0x44] sm:$0xf]  ;;  %v1347_v52 = vld [vmem:[%s2308_s3 + $0x48] sm:$0xf0]  ;;  %v1442_v53 = vld [vmem:[%s2305_s0 + $0x18] sm:$0xff]  ;;  %v1410_v59 = vor.u32 %v1474_v48, %v1409_v47 }
  0x10   :  { %613 = vmatpush.bf16.msrb.mxu1 %v1430_v36  ;;  %v1473_v55 = vld [vmem:[%s2308_s3 + $0xc4] sm:$0xf]  ;;  %v1411_v56 = vld [vmem:[%s2308_s3 + $0xc8] sm:$0xf0]  ;;  %v1337_v57 = vld [vmem:[%s2308_s3 + $0x30] sm:$0xf]  ;;  %v1773_v61 = vor.u32 %v1457_v51, %v1347_v52 }
  0x11   :  { %467 = vmatpush.bf16.msrb.mxu2 %v1354_v38  ;;  %v1456_v58 = vld [vmem:[%s2308_s3 + $0x34] sm:$0xf0]  ;;  %v1445_v60 = vld [vmem:[%s2305_s0 + $0x30] sm:$0xff]  ;;  %v1414_v62 = vor.u32 %v1473_v55, %v1411_v56  ;;  %v1329_v0 = vld [vmem:[%s2308_s3 + $0x20] sm:$0xf] }
  0x12   :  { %516 = vmatpush.bf16.msrb.mxu3 %v1418_v42  ;;  %v1338_v63 = vor.u32 %v1456_v58, %v1337_v57  ;;  %v1454_v1 = vld [vmem:[%s2308_s3 + $0x24] sm:$0xf0]  ;;  %v1446_v3 = vld [vmem:[%s2305_s0 + $0x38] sm:$0xff]  ;;  %v1455_v4 = vld [vmem:[%s2308_s3 + $0x34] sm:$0xf] }
  0x13   :  { %565 = vmatpush.bf16.msrb.mxu0 %v1746_v50  ;;  %v1330_v2 = vor.u32 %v1454_v1, %v1329_v0  ;;  %v1339_v5 = vld [vmem:[%s2308_s3 + $0x38] sm:$0xf0]  ;;  %v1453_v13 = vld [vmem:[%s2308_s3 + $0x24] sm:$0xf]  ;;  %v1331_v14 = vld [vmem:[%s2308_s3 + $0x28] sm:$0xf0] }
  0x14   :  { %614 = vmatpush.bf16.msrb.mxu1 %v1422_v49  ;;  %v1342_v6 = vor.u32 %v1455_v4, %v1339_v5  ;;  %v1403_v11 = vld [vmem:[%s2308_s3 + $0xb8] sm:$0xf0]  ;;  %v1334_v15 = vor.u32 %v1453_v13, %v1331_v14  ;;  %v1393_v16 = vld [vmem:[%s2308_s3 + $0xa0] sm:$0xf]  ;;  %v1470_v17 = vld [vmem:[%s2308_s3 + $0xa4] sm:$0xf0] }
  0x15   :  { %468 = vmatpush.bf16.msrb.mxu2 %v1346_v54  ;;  %v1321_v18 = vld [vmem:[%s2308_s3 + $0x10] sm:$0xf]  ;;  %v1452_v19 = vld [vmem:[%s2308_s3 + $0x14] sm:$0xf0]  ;;  %v1394_v20 = vor.u32 %v1470_v17, %v1393_v16  ;;  %v1469_v21 = vld [vmem:[%s2308_s3 + $0xa4] sm:$0xf] }
  0x16   :  { %517 = vmatpush.bf16.msrb.mxu3 %v1410_v59  ;;  %v1322_v22 = vor.u32 %v1452_v19, %v1321_v18  ;;  %v1395_v24 = vld [vmem:[%s2308_s3 + $0xa8] sm:$0xf0]  ;;  %v1451_v25 = vld [vmem:[%s2308_s3 + $0x14] sm:$0xf]  ;;  %v1323_v26 = vld [vmem:[%s2308_s3 + $0x18] sm:$0xf0] }
  0x17   :  { %1296 = vmatmul.msk.bf16.gmra.mxu0 %vm96_vm0, %v1440_v7  ;;  %1301 = vmatmul.msk.bf16.gmra.mxu2 %vm96_vm0, %v1445_v60  ;;  %v1398_v27 = vor.u32 %v1469_v21, %v1395_v24  ;;  %v1326_v28 = vor.u32 %v1451_v25, %v1323_v26  ;;  %v1385_v29 = vld [vmem:[%s2308_s3 + $0x90] sm:$0xf]  ;;  %v1468_v30 = vld [vmem:[%s2308_s3 + $0x94] sm:$0xf0]  ;;  %v1467_v31 = vld [vmem:[%s2308_s3 + $0x94] sm:$0xf] }
  0x18   :  { %1304 = vmatmul.msk.bf16.gmra.mxu1 %vm96_vm0, %v1440_v7  ;;  %1308 = vmatmul.msk.bf16.gmra.mxu3 %vm96_vm0, %v1444_v10  ;;  %v1401_v7 = vld [vmem:[%s2308_s3 + $0xb0] sm:$0xf]  ;;  %v1386_v32 = vor.u32 %v1468_v30, %v1385_v29  ;;  %v1387_v33 = vld [vmem:[%s2308_s3 + $0x98] sm:$0xf0]  ;;  %v1313_v34 = vld [vmem:[%s2308_s3] sm:$0xf] }
  0x19   :  { %566 = vmatpush.bf16.msrb.mxu0 %v1773_v61  ;;  %615 = vmatpush.bf16.msrb.mxu1 %v1414_v62  ;;  %v1450_v36 = vld [vmem:[%s2308_s3 + $0x4] sm:$0xf0]  ;;  %v1390_v37 = vor.u32 %v1467_v31, %v1387_v33  ;;  %v1449_v38 = vld [vmem:[%s2308_s3 + $0x4] sm:$0xf]  ;;  %v1315_v40 = vld [vmem:[%s2308_s3 + $0x8] sm:$0xf0] }
  0x1a   :  { %469 = vmatpush.bf16.msrb.mxu2 %v1338_v63  ;;  %v1314_v39 = vor.u32 %v1450_v36, %v1313_v34  ;;  %v1318_v41 = vor.u32 %v1449_v38, %v1315_v40  ;;  %v1377_v42 = vld [vmem:[%s2308_s3 + $0x80] sm:$0xf]  ;;  %v1466_v43 = vld [vmem:[%s2308_s3 + $0x84] sm:$0xf0]  ;;  %v1465_v44 = vld [vmem:[%s2308_s3 + $0x84] sm:$0xf] }
  0x1b   :  { %v1378_v45 = vor.u32 %v1466_v43, %v1377_v42  ;;  %v1379_v46 = vld [vmem:[%s2308_s3 + $0x88] sm:$0xf0]  ;;  %v40_v48 = vld [vmem:[%s2307_s2] sm:$0x3] }
  0x1c   :  { %v1382_v47 = vor.u32 %v1465_v44, %v1379_v46  ;;  %v1884_v52 = vperm.slane %v40_v48, 1 }
  0x1d   :  { %567 = vmatpush.bf16.msrb.mxu0 %v1342_v6 }
  0x1e   :  { %470 = vmatpush.bf16.msrb.mxu2 %v1330_v2 }
  0x21   :  { %568 = vmatpush.bf16.msrb.mxu0 %v1334_v15 }
  0x22   :  { %471 = vmatpush.bf16.msrb.mxu2 %v1322_v22 }
  0x25   :  { %569 = vmatpush.bf16.msrb.mxu0 %v1326_v28 }
  0x26   :  { %472 = vmatpush.bf16.msrb.mxu2 %v1314_v39 }
  0x27   :  { %1297 = vmatmul.msk.bf16.gmra.mxu0 %vm96_vm0, %v1441_v9  ;;  %1302 = vmatmul.msk.bf16.gmra.mxu2 %vm96_vm0, %v1446_v3 }
  0x28   :  { %1305 = vmatmul.msk.bf16.gmra.mxu1 %vm96_vm0, %v1441_v9  ;;  %1309 = vmatmul.msk.bf16.gmra.mxu3 %vm96_vm0, %v1445_v60  ;;  %v1471_v9 = vld [vmem:[%s2308_s3 + $0xb4] sm:$0xf] }
  0x29   :  { %v1406_v12 = vor.u32 %v1471_v9, %v1403_v11  ;;  %570 = vmatpush.bf16.msrb.mxu0 %v1318_v41 }
  0x2a   :  { %1483 = vmatpush.bf16.msra.mxu2 %v1683_v23 }
  0x2b   :  { %616 = vmatpush.bf16.msrb.mxu1 %v1406_v12 }
  0x2e   :  { %1484 = vmatpush.bf16.msra.mxu2 %v1713_v35 }
  0x2f   :  { %617 = vmatpush.bf16.msrb.mxu1 %v1398_v27 }
  0x32   :  { %1485 = vmatpush.bf16.msra.mxu2 %v1746_v50 }
  0x33   :  { %618 = vmatpush.bf16.msrb.mxu1 %v1390_v37 }
  0x36   :  { %1486 = vmatpush.bf16.msra.mxu2 %v1773_v61 }
  0x37   :  { %1298 = vmatmul.msk.bf16.gmra.mxu0 %vm96_vm0, %v1442_v53  ;;  %619 = vmatpush.bf16.msrb.mxu1 %v1382_v47 }
  0x38   :  { %1306 = vmatmul.msk.bf16.gmra.mxu1 %vm96_vm0, %v1442_v53  ;;  %1310 = vmatmul.msk.bf16.gmra.mxu3 %vm96_vm0, %v1446_v3  ;;  %v1886_v53 = vperm.slane %v40_v48, 0 }
  0x3a   :  { %1487 = vmatpush.bf16.msra.mxu2 %v1342_v6 }
  0x3e   :  { %1488 = vmatpush.bf16.msra.mxu2 %v1334_v15 }
  0x42   :  { %1489 = vmatpush.bf16.msra.mxu2 %v1326_v28 }
  0x46   :  { %1490 = vmatpush.bf16.msra.mxu2 %v1318_v41 }
  0x47   :  { %1299 = vmatmul.msk.bf16.gmra.mxu0 %vm96_vm0, %v1642_v8  ;;  %v1472_v8 = vld [vmem:[%s2308_s3 + $0xb4] sm:$0xf0] }
  0x48   :  { %v1402_v10 = vor.u32 %v1472_v8, %v1401_v7 }
  0x4a   :  { %518 = vmatpush.bf16.msrb.mxu3 %v1402_v10 }
  0x4e   :  { %519 = vmatpush.bf16.msrb.mxu3 %v1394_v20 }
  0x52   :  { %520 = vmatpush.bf16.msrb.mxu3 %v1386_v32 }
  0x56   :  { %521 = vmatpush.bf16.msrb.mxu3 %v1378_v45 }
  0x84   :  { %v130_v49 = vpop.f32.mrf.mxu0 }
  0x85   :  { %v179_v51 = vpop.f32.mrf.mxu1  ;;  %v131_v35 = vadd.f32 %v130_v49, %v1886_v53 }
  0x86   :  { %v180_v23 = vadd.f32 %v179_v51, %v1884_v52 }
  0x87   :  { %v219_v58 = vmax.f32 %v131_v35, 0.0 }
  0x88   :  { %v220_v56 = vmax.f32 %v180_v23, 0.0 }
  0x8a   :  { %v155_v47 = vpop.f32.mrf.mxu2 }
  0x8b   :  { %v199_v25 = vpop.f32.mrf.mxu3 }
  0x8c   :  { %v132_v50 = vpop.f32.mrf.mxu0  ;;  %v200_v48 = vadd.f32 %v199_v25, %v1884_v52 }
  0x8d   :  { %v133_v54 = vadd.f32 %v132_v50, %v1886_v53  ;;  %v181_v55 = vpop.f32.mrf.mxu1 }
  0x8e   :  { %v182_v57 = vadd.f32 %v181_v55, %v1884_v52  ;;  %v236_v23 = vmax.f32 %v200_v48, 0.0 }
  0x8f   :  { %v221_v59 = vmax.f32 %v133_v54, 0.0 }
  0x90   :  { %v222_v60 = vmax.f32 %v182_v57, 0.0 }
  0x91   :  { %v251_v61 = vpack.c.bf16 %v221_v59, %v219_v58 }
  0x92   :  { %v252_v62 = vpack.c.bf16 %v222_v60, %v220_v56  ;;  %v157_v56 = vpop.f32.mrf.mxu2 }
  0x93   :  { %473 = vmatmul.bf16.vlgmr.msrb.gmra.mxu2 %v251_v61  ;;  %571 = vmatmul.bf16.vlgmr.msrb.gmra.mxu0 %v251_v61  ;;  %v201_v31 = vpop.f32.mrf.mxu3 }
  0x94   :  { %v135_v63 = vpop.f32.mrf.mxu0  ;;  %522 = vmatmul.bf16.vlgmr.msrb.gmra.mxu3 %v252_v62  ;;  %620 = vmatmul.bf16.vlgmr.msrb.gmra.mxu1 %v252_v62  ;;  %v202_v49 = vadd.f32 %v201_v31, %v1884_v52 }
  0x95   :  { %v184_v0 = vpop.f32.mrf.mxu1  ;;  %v136_v2 = vadd.f32 %v135_v63, %v1886_v53 }
  0x96   :  { %v185_v1 = vadd.f32 %v184_v0, %v1884_v52  ;;  %v238_v50 = vmax.f32 %v202_v49, 0.0 }
  0x97   :  { %v223_v8 = vmax.f32 %v136_v2, 0.0  ;;  %v158_v2 = vadd.f32 %v157_v56, %v1886_v53 }
  0x98   :  { %v224_v6 = vmax.f32 %v185_v1, 0.0  ;;  %v260_v59 = vpack.c.bf16 %v238_v50, %v236_v23  ;;  %v156_v1 = vadd.f32 %v155_v47, %v1886_v53 }
  0x9a   :  { %v160_v63 = vpop.f32.mrf.mxu2 }
  0x9b   :  { %v204_v45 = vpop.f32.mrf.mxu3 }
  0x9c   :  { %v137_v3 = vpop.f32.mrf.mxu0  ;;  %v205_v62 = vadd.f32 %v204_v45, %v1884_v52 }
  0x9d   :  { %v138_v4 = vadd.f32 %v137_v3, %v1886_v53  ;;  %v186_v5 = vpop.f32.mrf.mxu1 }
  0x9e   :  { %v187_v7 = vadd.f32 %v186_v5, %v1884_v52  ;;  %v240_v3 = vmax.f32 %v205_v62, 0.0  ;;  %v239_v5 = vmax.f32 %v156_v1, 0.0 }
  0x9f   :  { %v225_v9 = vmax.f32 %v138_v4, 0.0 }
  0xa0   :  { %v226_v10 = vmax.f32 %v187_v7, 0.0 }
  0xa1   :  { %v253_v11 = vpack.c.bf16 %v225_v9, %v223_v8 }
  0xa2   :  { %v254_v12 = vpack.c.bf16 %v226_v10, %v224_v6  ;;  %v241_v6 = vmax.f32 %v158_v2, 0.0  ;;  %v162_v10 = vpop.f32.mrf.mxu2 }
  0xa3   :  { %478 = vmatmul.bf16.gmra.mxu2 %v253_v11  ;;  %576 = vmatmul.bf16.gmra.mxu0 %v253_v11  ;;  %v206_v55 = vpop.f32.mrf.mxu3 }
  0xa4   :  { %v140_v13 = vpop.f32.mrf.mxu0  ;;  %527 = vmatmul.bf16.gmra.mxu3 %v254_v12  ;;  %625 = vmatmul.bf16.gmra.mxu1 %v254_v12  ;;  %v207_v0 = vadd.f32 %v206_v55, %v1884_v52  ;;  %v261_v8 = vpack.c.bf16 %v241_v6, %v239_v5 }
  0xa5   :  { %v189_v14 = vpop.f32.mrf.mxu1  ;;  %v141_v16 = vadd.f32 %v140_v13, %v1886_v53  ;;  %v161_v13 = vadd.f32 %v160_v63, %v1886_v53 }
  0xa6   :  { %v190_v15 = vadd.f32 %v189_v14, %v1884_v52  ;;  %v242_v4 = vmax.f32 %v207_v0, 0.0  ;;  %v163_v14 = vadd.f32 %v162_v10, %v1886_v53 }
  0xa7   :  { %v227_v22 = vmax.f32 %v141_v16, 0.0 }
  0xa8   :  { %v228_v20 = vmax.f32 %v190_v15, 0.0  ;;  %v262_v7 = vpack.c.bf16 %v242_v4, %v240_v3 }
  0xab   :  { %v209_v61 = vpop.f32.mrf.mxu3 }
  0xac   :  { %v142_v17 = vpop.f32.mrf.mxu0  ;;  %v210_v11 = vadd.f32 %v209_v61, %v1884_v52 }
  0xad   :  { %v143_v18 = vadd.f32 %v142_v17, %v1886_v53  ;;  %v191_v19 = vpop.f32.mrf.mxu1  ;;  %v165_v17 = vpop.f32.mrf.mxu2 }
  0xae   :  { %v192_v21 = vadd.f32 %v191_v19, %v1884_v52  ;;  %v244_v16 = vmax.f32 %v210_v11, 0.0  ;;  %v243_v19 = vmax.f32 %v161_v13, 0.0 }
  0xaf   :  { %v229_v24 = vmax.f32 %v143_v18, 0.0 }
  0xb0   :  { %v230_v26 = vmax.f32 %v192_v21, 0.0 }
  0xb1   :  { %v255_v27 = vpack.c.bf16 %v229_v24, %v227_v22 }
  0xb2   :  { %v256_v28 = vpack.c.bf16 %v230_v26, %v228_v20  ;;  %v245_v20 = vmax.f32 %v163_v14, 0.0 }
  0xb3   :  { %483 = vmatmul.bf16.gmra.mxu2 %v255_v27  ;;  %581 = vmatmul.bf16.gmra.mxu0 %v255_v27  ;;  %v211_v9 = vpop.f32.mrf.mxu3 }
  0xb4   :  { %v145_v29 = vpop.f32.mrf.mxu0  ;;  %532 = vmatmul.bf16.gmra.mxu3 %v256_v28  ;;  %630 = vmatmul.bf16.gmra.mxu1 %v256_v28  ;;  %v212_v12 = vadd.f32 %v211_v9, %v1884_v52  ;;  %v263_v22 = vpack.c.bf16 %v245_v20, %v243_v19  ;;  %v166_v28 = vadd.f32 %v165_v17, %v1886_v53 }
  0xb5   :  { %v194_v30 = vpop.f32.mrf.mxu1  ;;  %v146_v33 = vadd.f32 %v145_v29, %v1886_v53  ;;  %v167_v25 = vpop.f32.mrf.mxu2 }
  0xb6   :  { %v195_v32 = vadd.f32 %v194_v30, %v1884_v52  ;;  %v246_v18 = vmax.f32 %v212_v12, 0.0  ;;  %v168_v29 = vadd.f32 %v167_v25, %v1886_v53 }
  0xb7   :  { %v231_v40 = vmax.f32 %v146_v33, 0.0 }
  0xb8   :  { %v232_v38 = vmax.f32 %v195_v32, 0.0  ;;  %v264_v21 = vpack.c.bf16 %v246_v18, %v244_v16  ;;  %v247_v32 = vmax.f32 %v166_v28, 0.0  ;;  %v249_v33 = vmax.f32 %v168_v29, 0.0 }
  0xbb   :  { %v214_v15 = vpop.f32.mrf.mxu3 }
  0xbc   :  { %v147_v34 = vpop.f32.mrf.mxu0  ;;  %v215_v26 = vadd.f32 %v214_v15, %v1884_v52 }
  0xbd   :  { %v148_v36 = vadd.f32 %v147_v34, %v1886_v53  ;;  %v196_v37 = vpop.f32.mrf.mxu1 }
  0xbe   :  { %v197_v39 = vadd.f32 %v196_v37, %v1884_v52  ;;  %v248_v30 = vmax.f32 %v215_v26, 0.0  ;;  %v299_v37 = vld [vmem:[%s2309_s4] sm:$0x3]  ;;  %s1584_s4 = smov [#allocation2]  }
  0xbf   :  { %v233_v41 = vmax.f32 %v148_v36, 0.0  ;;  %v265_v36 = vpack.c.bf16 %v249_v33, %v247_v32  ;;  %s1241_s14 = sshll.u32 %s1584_s4, 4  ;;  %s1242_s14 = int_to_ptr.vmem [resolvable:$true] %s1241_s14 }
  0xc0   :  { %v234_v42 = vmax.f32 %v197_v39, 0.0 }
  0xc1   :  { %v257_v43 = vpack.c.bf16 %v233_v41, %v231_v40 }
  0xc2   :  { %v258_v44 = vpack.c.bf16 %v234_v42, %v232_v38  ;;  %v1923_v38 = vperm.slane %v299_v37, 1 }
  0xc3   :  { %488 = vmatmul.bf16.gmra.mxu2 %v257_v43  ;;  %586 = vmatmul.bf16.gmra.mxu0 %v257_v43  ;;  %v216_v24 = vpop.f32.mrf.mxu3 }
  0xc4   :  { %v150_v46 = vpop.f32.mrf.mxu0  ;;  %537 = vmatmul.bf16.gmra.mxu3 %v258_v44  ;;  %635 = vmatmul.bf16.gmra.mxu1 %v258_v44  ;;  %v217_v27 = vadd.f32 %v216_v24, %v1884_v52 }
  0xc5   :  { %v151_v51 = vadd.f32 %v150_v46, %v1886_v53 }
  0xc6   :  { %v250_v31 = vmax.f32 %v217_v27, 0.0 }
  0xc7   :  { %v235_v57 = vmax.f32 %v151_v51, 0.0 }
  0xc8   :  { %v266_v34 = vpack.c.bf16 %v250_v31, %v248_v30 }
  0xcc   :  { %v152_v35 = vpop.f32.mrf.mxu0 }
  0xcd   :  { %v153_v54 = vadd.f32 %v152_v35, %v1886_v53  ;;  %v1926_v53 = vperm.slane %v299_v37, 0 }
  0xcf   :  { %v237_v58 = vmax.f32 %v153_v54, 0.0 }
  0xd1   :  { %v259_v60 = vpack.c.bf16 %v237_v58, %v235_v57 }
  0xd3   :  { %493 = vmatmul.bf16.gmra.mxu2 %v259_v60  ;;  %591 = vmatmul.bf16.gmra.mxu0 %v259_v60 }
  0xd4   :  { %542 = vmatmul.bf16.gmra.mxu3 %v260_v59  ;;  %640 = vmatmul.bf16.gmra.mxu1 %v260_v59 }
  0xe3   :  { %498 = vmatmul.bf16.gmra.mxu2 %v261_v8  ;;  %596 = vmatmul.bf16.gmra.mxu0 %v261_v8 }
  0xe4   :  { %547 = vmatmul.bf16.gmra.mxu3 %v262_v7  ;;  %645 = vmatmul.bf16.gmra.mxu1 %v262_v7 }
  0xf3   :  { %503 = vmatmul.bf16.gmra.mxu2 %v263_v22  ;;  %601 = vmatmul.bf16.gmra.mxu0 %v263_v22 }
  0xf4   :  { %552 = vmatmul.bf16.gmra.mxu3 %v264_v21  ;;  %650 = vmatmul.bf16.gmra.mxu1 %v264_v21 }
 0x103   :  { %508 = vmatmul.bf16.gmra.mxu2 %v265_v36 }
 0x104   :  { %557 = vmatmul.bf16.gmra.mxu3 %v266_v34  ;;  %655 = vmatmul.bf16.gmra.mxu1 %v266_v34 }
 0x110   :  { %v572_v52 = vpop.f32.mrf.mxu0 }
 0x111   :  { %v621_v39 = vpop.f32.mrf.mxu1  ;;  %v573_v40 = vadd.f32 %v572_v52, %v1923_v38 }
 0x113   :  { %606 = vmatmul.bf16.vlgmr.msra.gmra.mxu2 %v265_v36  ;;  %v1928_v42 = vadd.f32 %v621_v39, %v573_v40 }
 0x115   :  { %v662_v51 = vmul.f32 %v1928_v42, %v1928_v42 }
 0x116   :  { %v474_v41 = vpop.f32.mrf.mxu2 }
 0x117   :  { %v475_v43 = vadd.f32 %v474_v41, %v1926_v53  ;;  %v523_v44 = vpop.f32.mrf.mxu3 }
 0x118   :  { %v574_v45 = vpop.f32.mrf.mxu0 }
 0x119   :  { %v1931_v46 = vadd.f32 %v523_v44, %v475_v43  ;;  %v623_v47 = vpop.f32.mrf.mxu1  ;;  %v575_v48 = vadd.f32 %v574_v45, %v1923_v38 }
 0x11b   :  { %v661_v49 = vmul.f32 %v1931_v46, %v1931_v46  ;;  %v1938_v50 = vadd.f32 %v623_v47, %v575_v48 }
 0x11d   :  { %v693_v23 = vadd.f32 %v662_v51, %v661_v49  ;;  %v664_v59 = vmul.f32 %v1938_v50, %v1938_v50 }
 0x11e   :  { %v476_v35 = vpop.f32.mrf.mxu2 }
 0x11f   :  { %v477_v54 = vadd.f32 %v476_v35, %v1926_v53  ;;  %694 = vadd.xlane.f32.xlu0 %v693_v23  ;;  %v525_v55 = vpop.f32.mrf.mxu3 }
 0x120   :  { %v577_v56 = vpop.f32.mrf.mxu0 }
 0x121   :  { %v1941_v57 = vadd.f32 %v525_v55, %v477_v54  ;;  %v626_v58 = vpop.f32.mrf.mxu1  ;;  %v578_v61 = vadd.f32 %v577_v56, %v1923_v38 }
 0x123   :  { %v663_v60 = vmul.f32 %v1941_v57, %v1941_v57  ;;  %v1948_v0 = vadd.f32 %v626_v58, %v578_v61 }
 0x125   :  { %v696_v62 = vadd.f32 %v664_v59, %v663_v60  ;;  %v666_v8 = vmul.f32 %v1948_v0, %v1948_v0 }
 0x126   :  { %v479_v63 = vpop.f32.mrf.mxu2 }
 0x127   :  { %v480_v1 = vadd.f32 %v479_v63, %v1926_v53  ;;  %697 = vadd.xlane.f32.xlu0 %v696_v62  ;;  %v528_v2 = vpop.f32.mrf.mxu3 }
 0x128   :  { %v579_v3 = vpop.f32.mrf.mxu0 }
 0x129   :  { %v1951_v4 = vadd.f32 %v528_v2, %v480_v1  ;;  %v628_v5 = vpop.f32.mrf.mxu1  ;;  %v580_v6 = vadd.f32 %v579_v3, %v1923_v38 }
 0x12b   :  { %v665_v7 = vmul.f32 %v1951_v4, %v1951_v4  ;;  %v1958_v11 = vadd.f32 %v628_v5, %v580_v6 }
 0x12d   :  { %v699_v9 = vadd.f32 %v666_v8, %v665_v7  ;;  %v668_v17 = vmul.f32 %v1958_v11, %v1958_v11 }
 0x12e   :  { %v481_v10 = vpop.f32.mrf.mxu2 }
 0x12f   :  { %v482_v12 = vadd.f32 %v481_v10, %v1926_v53  ;;  %700 = vadd.xlane.f32.xlu1 %v699_v9  ;;  %v530_v13 = vpop.f32.mrf.mxu3 }
 0x130   :  { %v582_v14 = vpop.f32.mrf.mxu0 }
 0x131   :  { %v1961_v15 = vadd.f32 %v530_v13, %v482_v12  ;;  %v631_v16 = vpop.f32.mrf.mxu1  ;;  %v583_v19 = vadd.f32 %v582_v14, %v1923_v38 }
 0x133   :  { %v667_v18 = vmul.f32 %v1961_v15, %v1961_v15  ;;  %v1968_v22 = vadd.f32 %v631_v16, %v583_v19 }
 0x135   :  { %v702_v20 = vadd.f32 %v668_v17, %v667_v18  ;;  %v670_v31 = vmul.f32 %v1968_v22, %v1968_v22 }
 0x136   :  { %v484_v21 = vpop.f32.mrf.mxu2 }
 0x137   :  { %v485_v24 = vadd.f32 %v484_v21, %v1926_v53  ;;  %703 = vadd.xlane.f32.xlu1 %v702_v20  ;;  %v533_v25 = vpop.f32.mrf.mxu3 }
 0x138   :  { %v584_v26 = vpop.f32.mrf.mxu0 }
 0x139   :  { %v1971_v27 = vadd.f32 %v533_v25, %v485_v24  ;;  %v633_v28 = vpop.f32.mrf.mxu1  ;;  %v585_v29 = vadd.f32 %v584_v26, %v1923_v38 }
 0x13b   :  { %v669_v30 = vmul.f32 %v1971_v27, %v1971_v27  ;;  %v1978_v34 = vadd.f32 %v633_v28, %v585_v29 }
 0x13d   :  { %v705_v32 = vadd.f32 %v670_v31, %v669_v30  ;;  %v672_v41 = vmul.f32 %v1978_v34, %v1978_v34 }
 0x13e   :  { %v486_v33 = vpop.f32.mrf.mxu2 }
 0x13f   :  { %v487_v36 = vadd.f32 %v486_v33, %v1926_v53  ;;  %706 = vadd.xlane.f32.xlu2 %v705_v32  ;;  %v535_v37 = vpop.f32.mrf.mxu3 }
 0x140   :  { %v587_v52 = vpop.f32.mrf.mxu0 }
 0x141   :  { %v1981_v39 = vadd.f32 %v535_v37, %v487_v36  ;;  %v636_v40 = vpop.f32.mrf.mxu1  ;;  %v588_v44 = vadd.f32 %v587_v52, %v1923_v38 }
 0x143   :  { %v671_v43 = vmul.f32 %v1981_v39, %v1981_v39  ;;  %v1988_v48 = vadd.f32 %v636_v40, %v588_v44 }
 0x145   :  { %v708_v45 = vadd.f32 %v672_v41, %v671_v43  ;;  %v674_v55 = vmul.f32 %v1988_v48, %v1988_v48 }
 0x146   :  { %v489_v47 = vpop.f32.mrf.mxu2 }
 0x147   :  { %v490_v49 = vadd.f32 %v489_v47, %v1926_v53  ;;  %709 = vadd.xlane.f32.xlu2 %v708_v45  ;;  %v538_v51 = vpop.f32.mrf.mxu3 }
 0x148   :  { %v589_v23 = vpop.f32.mrf.mxu0 }
 0x149   :  { %v1991_v35 = vadd.f32 %v538_v51, %v490_v49  ;;  %v638_v54 = vpop.f32.mrf.mxu1  ;;  %v590_v58 = vadd.f32 %v589_v23, %v1923_v38 }
 0x14b   :  { %v673_v56 = vmul.f32 %v1991_v35, %v1991_v35  ;;  %v1998_v61 = vadd.f32 %v638_v54, %v590_v58 }
 0x14d   :  { %v711_v59 = vadd.f32 %v674_v55, %v673_v56  ;;  %v676_v5 = vmul.f32 %v1998_v61, %v1998_v61 }
 0x14e   :  { %v491_v60 = vpop.f32.mrf.mxu2 }
 0x14f   :  { %v492_v62 = vadd.f32 %v491_v60, %v1926_v53  ;;  %712 = vadd.xlane.f32.xlu0 %v711_v59  ;;  %v540_v63 = vpop.f32.mrf.mxu3 }
 0x150   :  { %v592_v1 = vpop.f32.mrf.mxu0 }
 0x151   :  { %v2001_v2 = vadd.f32 %v540_v63, %v492_v62  ;;  %v641_v3 = vpop.f32.mrf.mxu1  ;;  %v593_v7 = vadd.f32 %v592_v1, %v1923_v38 }
 0x153   :  { %v675_v6 = vmul.f32 %v2001_v2, %v2001_v2  ;;  %v2008_v10 = vadd.f32 %v641_v3, %v593_v7 }
 0x155   :  { %v714_v8 = vadd.f32 %v676_v5, %v675_v6  ;;  %v678_v18 = vmul.f32 %v2008_v10, %v2008_v10 }
 0x156   :  { %v494_v9 = vpop.f32.mrf.mxu2 }
 0x157   :  { %v495_v12 = vadd.f32 %v494_v9, %v1926_v53  ;;  %715 = vadd.xlane.f32.xlu1 %v714_v8  ;;  %v543_v13 = vpop.f32.mrf.mxu3 }
 0x158   :  { %v594_v14 = vpop.f32.mrf.mxu0 }
 0x159   :  { %v2011_v16 = vadd.f32 %v543_v13, %v495_v12  ;;  %v643_v17 = vpop.f32.mrf.mxu1  ;;  %v595_v20 = vadd.f32 %v594_v14, %v1923_v38 }
 0x15b   :  { %v677_v19 = vmul.f32 %v2011_v16, %v2011_v16  ;;  %v2018_v25 = vadd.f32 %v643_v17, %v595_v20 }
 0x15d   :  { %v717_v21 = vadd.f32 %v678_v18, %v677_v19  ;;  %v680_v32 = vmul.f32 %v2018_v25, %v2018_v25 }
 0x15e   :  { %v496_v24 = vpop.f32.mrf.mxu2 }
 0x15f   :  { %v497_v26 = vadd.f32 %v496_v24, %v1926_v53  ;;  %718 = vadd.xlane.f32.xlu2 %v717_v21  ;;  %v545_v28 = vpop.f32.mrf.mxu3 }
 0x160   :  { %v597_v29 = vpop.f32.mrf.mxu0 }
 0x161   :  { %v2021_v30 = vadd.f32 %v545_v28, %v497_v26  ;;  %v646_v31 = vpop.f32.mrf.mxu1  ;;  %v598_v36 = vadd.f32 %v597_v29, %v1923_v38 }
 0x163   :  { %v679_v33 = vmul.f32 %v2021_v30, %v2021_v30  ;;  %v2028_v40 = vadd.f32 %v646_v31, %v598_v36 }
 0x165   :  { %v720_v37 = vadd.f32 %v680_v32, %v679_v33  ;;  %v682_v49 = vmul.f32 %v2028_v40, %v2028_v40 }
 0x166   :  { %v499_v52 = vpop.f32.mrf.mxu2 }
 0x167   :  { %v500_v41 = vadd.f32 %v499_v52, %v1926_v53  ;;  %721 = vadd.xlane.f32.xlu0 %v720_v37  ;;  %v548_v43 = vpop.f32.mrf.mxu3 }
 0x168   :  { %v599_v44 = vpop.f32.mrf.mxu0 }
 0x169   :  { %v2031_v45 = vadd.f32 %v548_v43, %v500_v41  ;;  %v648_v47 = vpop.f32.mrf.mxu1  ;;  %v600_v23 = vadd.f32 %v599_v44, %v1923_v38 }
 0x16b   :  { %v681_v51 = vmul.f32 %v2031_v45, %v2031_v45  ;;  %v2038_v56 = vadd.f32 %v648_v47, %v600_v23 }
 0x16d   :  { %v723_v54 = vadd.f32 %v682_v49, %v681_v51  ;;  %v684_v1 = vmul.f32 %v2038_v56, %v2038_v56 }
 0x16e   :  { %v501_v55 = vpop.f32.mrf.mxu2 }
 0x16f   :  { %v502_v58 = vadd.f32 %v501_v55, %v1926_v53  ;;  %724 = vadd.xlane.f32.xlu1 %v723_v54  ;;  %v550_v59 = vpop.f32.mrf.mxu3 }
 0x170   :  { %v602_v60 = vpop.f32.mrf.mxu0 }
 0x171   :  { %v2041_v62 = vadd.f32 %v550_v59, %v502_v58  ;;  %v651_v63 = vpop.f32.mrf.mxu1  ;;  %v603_v5 = vadd.f32 %v602_v60, %v1923_v38 }
 0x173   :  { %v683_v3 = vmul.f32 %v2041_v62, %v2041_v62  ;;  %v2048_v8 = vadd.f32 %v651_v63, %v603_v5 }
 0x175   :  { %v726_v6 = vadd.f32 %v684_v1, %v683_v3  ;;  %v686_v17 = vmul.f32 %v2048_v8, %v2048_v8 }
 0x176   :  { %v504_v7 = vpop.f32.mrf.mxu2 }
 0x177   :  { %v505_v9 = vadd.f32 %v504_v7, %v1926_v53  ;;  %727 = vadd.xlane.f32.xlu2 %v726_v6  ;;  %v553_v12 = vpop.f32.mrf.mxu3 }
 0x178   :  { %v604_v13 = vpop.f32.mrf.mxu0 }
 0x179   :  { %v2051_v14 = vadd.f32 %v553_v12, %v505_v9  ;;  %v605_v19 = vadd.f32 %v604_v13, %v1923_v38  ;;  %v653_v20 = vpop.f32.mrf.mxu1 }
 0x17b   :  { %v685_v18 = vmul.f32 %v2051_v14, %v2051_v14  ;;  %v2058_v26 = vadd.f32 %v653_v20, %v605_v19 }
 0x17d   :  { %v729_v21 = vadd.f32 %v686_v17, %v685_v18  ;;  %v688_v32 = vmul.f32 %v2058_v26, %v2058_v26 }
 0x17e   :  { %v506_v24 = vpop.f32.mrf.mxu2 }
 0x17f   :  { %v507_v28 = vadd.f32 %v506_v24, %v1926_v53  ;;  %730 = vadd.xlane.f32.xlu0 %v729_v21  ;;  %v555_v29 = vpop.f32.mrf.mxu3 }
 0x181   :  { %v2061_v31 = vadd.f32 %v555_v29, %v507_v28  ;;  %v656_v47 = vpop.f32.mrf.mxu1 }
 0x183   :  { %v687_v33 = vmul.f32 %v2061_v31, %v2061_v31 }
 0x185   :  { %v732_v36 = vadd.f32 %v688_v32, %v687_v33 }
 0x186   :  { %v509_v37 = vpop.f32.mrf.mxu2 }
 0x187   :  { %733 = vadd.xlane.f32.xlu1 %v732_v36  ;;  %v558_v43 = vpop.f32.mrf.mxu3  ;;  %v510_v44 = vadd.f32 %v509_v37, %v1926_v53 }
 0x189   :  { %v2069_v23 = vadd.f32 %v558_v43, %v510_v44  ;;  %v658_v13 = vpop.f32.mrf.mxu1 }
 0x18b   :  { %v689_v60 = vmul.f32 %v2069_v23, %v2069_v23 }
 0x18e   :  { %v511_v52 = vpop.f32.mrf.mxu2 }
 0x18f   :  { %v512_v63 = vadd.f32 %v511_v52, %v1926_v53  ;;  %v560_v5 = vpop.f32.mrf.mxu3 }
 0x191   :  { %v2079_v17 = vadd.f32 %v560_v5, %v512_v63 }
 0x192   :  { %v695_v41 = vpop.xlane.xlu0 %694 }
 0x193   :  { %1494 = vrsqrt.f32 %v695_v41  ;;  %v691_v28 = vmul.f32 %v2079_v17, %v2079_v17  ;;  %vm748_vm1 = vcmp.eq.f32.partialorder %v695_v41, inf  ;;  %v751_v33 = vand.u32 2147483648, %v695_v41 }
 0x194   :  { %vm750_vm2 = vcmp.eq.f32.partialorder %v695_v41, 0.0 }
 0x196   :  { %v607_v49 = vpop.f32.mrf.mxu2 }
 0x197   :  { %v608_v51 = vadd.f32 %v607_v49, %v1923_v38 }
 0x199   :  { %v1495_v54 = vpop.eup %1494  ;;  %v2071_v55 = vadd.f32 %v656_v47, %v608_v51 }
 0x19a   :  { %v742_v58 = vmul.f32 %v1495_v54, %v695_v41  ;;  %v698_v59 = vpop.xlane.xlu0 %697 }
 0x19b   :  { %1496 = vrsqrt.f32 %v698_v59  ;;  %v690_v3 = vmul.f32 %v2071_v55, %v2071_v55  ;;  %vm760_vm3 = vcmp.eq.f32.partialorder %v698_v59, inf  ;;  %vm762_vm4 = vcmp.eq.f32.partialorder %v698_v59, 0.0 }
 0x19c   :  { %v743_v1 = vmul.f32 %v1495_v54, %v742_v58 }
 0x19d   :  { %v735_v9 = vadd.f32 %v690_v3, %v689_v60 }
 0x19e   :  { %v744_v6 = vmul.f32 0.5, %v743_v1  ;;  %v609_v7 = vpop.f32.mrf.mxu2  ;;  %v763_v1 = vand.u32 2147483648, %v698_v59 }
 0x19f   :  { %v610_v12 = vadd.f32 %v609_v7, %v1923_v38  ;;  %736 = vadd.xlane.f32.xlu2 %v735_v9 }
 0x1a0   :  { %v745_v18 = vsub.f32 1.5, %v744_v6 }
 0x1a1   :  { %v1497_v19 = vpop.eup %1496  ;;  %v2081_v20 = vadd.f32 %v658_v13, %v610_v12 }
 0x1a2   :  { %v746_v21 = vmul.f32 %v1495_v54, %v745_v18  ;;  %v754_v53 = vmul.f32 %v1497_v19, %v698_v59  ;;  %v701_v24 = vpop.xlane.xlu1 %700 }
 0x1a3   :  { %1498 = vrsqrt.f32 %v701_v24  ;;  %v692_v38 = vmul.f32 %v2081_v20, %v2081_v20  ;;  %vm772_vm7 = vcmp.eq.f32.partialorder %v701_v24, inf  ;;  %vm774_vm9 = vcmp.eq.f32.partialorder %v701_v24, 0.0 }
 0x1a4   :  { %v747_v29 = vmul.f32 %v746_v21, %v695_v41  ;;  %v755_v32 = vmul.f32 %v1497_v19, %v754_v53 }
 0x1a5   :  { %v738_v52 = vadd.f32 %v692_v38, %v691_v28 }
 0x1a6   :  { %v749_v36 = vsel %vm748_vm1, %v695_v41, %v747_v29  ;;  %v756_v37 = vmul.f32 0.5, %v755_v32 }
 0x1a7   :  { %v752_v43 = vsel %vm750_vm2, %v751_v33, %v749_v36  ;;  %739 = vadd.xlane.f32.xlu0 %v738_v52 }
 0x1a8   :  { %v933_v44 = vadd.f32 1e-07, %v752_v43  ;;  %v757_v47 = vsub.f32 1.5, %v756_v37  ;;  %v775_v37 = vand.u32 2147483648, %v701_v24 }
 0x1a9   :  { %v1499_v49 = vpop.eup %1498 }
 0x1aa   :  { %1500 = vrcp.f32 %v933_v44  ;;  %v2087_v51 = vpop.xlane.xlu1 %703  ;;  %v758_v54 = vmul.f32 %v1497_v19, %v757_v47  ;;  %v766_v58 = vmul.f32 %v1499_v49, %v701_v24  ;;  %v960_v53 = vand.u32 2147483648, %v933_v44 }
 0x1ab   :  { %1502 = vrsqrt.f32 %v2087_v51  ;;  %v958_v32 = vand.u32 2147483647, %v933_v44  ;;  %vm954_vm6 = vweird.f32 %v933_v44  ;;  %vm784_vm11 = vcmp.eq.f32.partialorder %v2087_v51, inf }
 0x1ac   :  { %v759_v60 = vmul.f32 %v758_v54, %v698_v59  ;;  %v767_v63 = vmul.f32 %v1499_v49, %v766_v58  ;;  %v961_v52 = vor.u32 1.1754944e-38, %v960_v53  ;;  %vm786_vm13 = vcmp.eq.f32.partialorder %v2087_v51, 0.0 }
 0x1ad   :  { %vm959_vm10 = vcmp.eq.f32.partialorder %v958_v32, 8.507059e+37 }
 0x1ae   :  { %v761_v3 = vsel %vm760_vm3, %v698_v59, %v759_v60  ;;  %v768_v41 = vmul.f32 0.5, %v767_v63 }
 0x1af   :  { %v764_v6 = vsel %vm762_vm4, %v763_v1, %v761_v3 }
 0x1b0   :  { %v1501_v5 = vpop.eup %1500  ;;  %v2090_v12 = vadd.f32 1e-07, %v764_v6  ;;  %v769_v13 = vsub.f32 1.5, %v768_v41 }
 0x1b1   :  { %v1503_v7 = vpop.eup %1502  ;;  %v950_v9 = vmul.f32 %v1501_v5, %v933_v44  ;;  %vm955_vm5 = vweird.f32 %v1501_v5 }
 0x1b2   :  { %v778_v18 = vmul.f32 %v1503_v7, %v2087_v51  ;;  %v2093_v19 = vpop.xlane.xlu2 %706  ;;  %1504 = vrcp.f32 %v2090_v12  ;;  %v770_v28 = vmul.f32 %v1499_v49, %v769_v13  ;;  %vm956_vm8 = vmor %vm954_vm6, %vm955_vm5  ;;  %vm970_vm14 = vweird.f32 %v2090_v12 }
 0x1b3   :  { %v951_v21 = vsub.f32 1.0, %v950_v9  ;;  %1506 = vrsqrt.f32 %v2093_v19  ;;  %vm796_vm2 = vcmp.eq.f32.partialorder %v2093_v19, inf  ;;  %vm798_vm3 = vcmp.eq.f32.partialorder %v2093_v19, 0.0 }
 0x1b4   :  { %v779_v29 = vmul.f32 %v1503_v7, %v778_v18  ;;  %v771_v38 = vmul.f32 %v770_v28, %v701_v24 }
 0x1b5   :  { %v952_v59 = vmul.f32 %v1501_v5, %v951_v21 }
 0x1b6   :  { %v780_v33 = vmul.f32 0.5, %v779_v29  ;;  %v773_v43 = vsel %vm772_vm7, %v701_v24, %v771_v38 }
 0x1b7   :  { %v953_v36 = vadd.f32 %v1501_v5, %v952_v59  ;;  %v776_v49 = vsel %vm774_vm9, %v775_v37, %v773_v43 }
 0x1b8   :  { %v781_v47 = vsub.f32 1.5, %v780_v33  ;;  %v1505_v54 = vpop.eup %1504  ;;  %v935_v3 = vadd.f32 1e-07, %v776_v49 }
 0x1b9   :  { %v957_v58 = vsel %vm956_vm8, %v1501_v5, %v953_v36  ;;  %v1507_v60 = vpop.eup %1506  ;;  %v966_v1 = vmul.f32 %v1505_v54, %v2090_v12  ;;  %v976_v5 = vand.u32 2147483648, %v2090_v12  ;;  %vm971_vm12 = vweird.f32 %v1505_v54 }
 0x1ba   :  { %v962_v63 = vsel %vm959_vm10, %v961_v52, %v957_v58  ;;  %v2098_v41 = vpop.xlane.xlu2 %709  ;;  %v782_v9 = vmul.f32 %v1503_v7, %v781_v47  ;;  %v790_v13 = vmul.f32 %v1507_v60, %v2093_v19  ;;  %1508 = vrcp.f32 %v935_v3  ;;  %vm972_vm15 = vmor %vm970_vm14, %vm971_vm12 }
 0x1bb   :  { %v963_v44 = vmul.f32 %v962_v63, %v1931_v46  ;;  %v964_v6 = vmul.f32 %v962_v63, %v1928_v42  ;;  %v967_v24 = vsub.f32 1.0, %v966_v1  ;;  %1510 = vrsqrt.f32 %v2098_v41 }
 0x1bc   :  { %v783_v18 = vmul.f32 %v782_v9, %v2087_v51  ;;  %v791_v21 = vmul.f32 %v1507_v60, %v790_v13  ;;  %v974_v42 = vand.u32 2147483647, %v2090_v12  ;;  %v787_v46 = vand.u32 2147483648, %v2087_v51 }
 0x1bd   :  { %1205 = vst [vmem:[#allocation2] sm:$0xff] %v963_v44  ;;  %v968_v53 = vmul.f32 %v1505_v54, %v967_v24  ;;  %v977_v32 = vor.u32 1.1754944e-38, %v976_v5  ;;  %v990_v44 = vand.u32 2147483647, %v935_v3  ;;  %vm986_vm4 = vweird.f32 %v935_v3 }
 0x1be   :  { %1206 = vst [vmem:[#allocation2 + $0x8] sm:$0xff] %v964_v6  ;;  %v785_v7 = vsel %vm784_vm11, %v2087_v51, %v783_v18  ;;  %v792_v28 = vmul.f32 0.5, %v791_v21  ;;  %vm975_vm0 = vcmp.eq.f32.partialorder %v974_v42, 8.507059e+37  ;;  %v992_v6 = vand.u32 2147483648, %v935_v3 }
 0x1bf   :  { %v969_v29 = vadd.f32 %v1505_v54, %v968_v53  ;;  %v788_v59 = vsel %vm786_vm13, %v787_v46, %v785_v7  ;;  %vm991_vm6 = vcmp.eq.f32.partialorder %v990_v44, 8.507059e+37  ;;  %vm808_vm9 = vcmp.eq.f32.partialorder %v2098_v41, inf }
 0x1c0   :  { %v2112_v38 = vadd.f32 1e-07, %v788_v59  ;;  %v793_v33 = vsub.f32 1.5, %v792_v28  ;;  %v1509_v36 = vpop.eup %1508  ;;  %v993_v18 = vor.u32 1.1754944e-38, %v992_v6  ;;  %vm810_vm11 = vcmp.eq.f32.partialorder %v2098_v41, 0.0 }
 0x1c1   :  { %v973_v37 = vsel %vm972_vm15, %v1505_v54, %v969_v29  ;;  %v1511_v52 = vpop.eup %1510  ;;  %v982_v47 = vmul.f32 %v1509_v36, %v935_v3  ;;  %vm987_vm1 = vweird.f32 %v1509_v36 }
 0x1c2   :  { %v978_v43 = vsel %vm975_vm0, %v977_v32, %v973_v37  ;;  %1512 = vrcp.f32 %v2112_v38  ;;  %v2115_v58 = vpop.xlane.xlu0 %712  ;;  %v794_v63 = vmul.f32 %v1507_v60, %v793_v33  ;;  %v802_v1 = vmul.f32 %v1511_v52, %v2098_v41  ;;  %vm988_vm5 = vmor %vm986_vm4, %vm987_vm1 }
 0x1c3   :  { %v979_v51 = vmul.f32 %v978_v43, %v1941_v57  ;;  %v980_v12 = vmul.f32 %v978_v43, %v1938_v50  ;;  %v983_v49 = vsub.f32 1.0, %v982_v47  ;;  %1514 = vrsqrt.f32 %v2115_v58 }
 0x1c4   :  { %v795_v9 = vmul.f32 %v794_v63, %v2093_v19  ;;  %v803_v13 = vmul.f32 %v1511_v52, %v802_v1  ;;  %v799_v50 = vand.u32 2147483648, %v2093_v19  ;;  %v1008_v33 = vand.u32 2147483648, %v2112_v38 }
 0x1c5   :  { %1207 = vst [vmem:[#allocation2 + $0x10] sm:$0xff] %v979_v51  ;;  %v984_v54 = vmul.f32 %v1509_v36, %v983_v49  ;;  %vm1002_vm8 = vweird.f32 %v2112_v38  ;;  %v811_v49 = vand.u32 2147483648, %v2098_v41  ;;  %vm820_vm15 = vcmp.eq.f32.partialorder %v2115_v58, inf }
 0x1c6   :  { %1208 = vst [vmem:[#allocation2 + $0x18] sm:$0xff] %v980_v12  ;;  %v797_v24 = vsel %vm796_vm2, %v2093_v19, %v795_v9  ;;  %v804_v5 = vmul.f32 0.5, %v803_v13  ;;  %v1009_v12 = vor.u32 1.1754944e-38, %v1008_v33  ;;  %vm822_vm0 = vcmp.eq.f32.partialorder %v2115_v58, 0.0 }
 0x1c7   :  { %v985_v60 = vadd.f32 %v1509_v36, %v984_v54  ;;  %v800_v53 = vsel %vm798_vm3, %v799_v50, %v797_v24 }
 0x1c8   :  { %v1513_v57 = vpop.eup %1512  ;;  %v2129_v7 = vadd.f32 1e-07, %v800_v53  ;;  %v805_v28 = vsub.f32 1.5, %v804_v5 }
 0x1c9   :  { %v998_v21 = vmul.f32 %v1513_v57, %v2112_v38  ;;  %v989_v46 = vsel %vm988_vm5, %v1509_v36, %v985_v60  ;;  %v1515_v29 = vpop.eup %1514  ;;  %vm1003_vm7 = vweird.f32 %v1513_v57  ;;  %v1006_v36 = vand.u32 2147483647, %v2112_v38 }
 0x1ca   :  { %v2127_v42 = vpop.xlane.xlu1 %715  ;;  %v994_v59 = vsel %vm991_vm6, %v993_v18, %v989_v46  ;;  %v806_v43 = vmul.f32 %v1511_v52, %v805_v28  ;;  %v814_v47 = vmul.f32 %v1515_v29, %v2115_v58  ;;  %vm1004_vm10 = vmor %vm1002_vm8, %vm1003_vm7  ;;  %v1024_v53 = vand.u32 2147483648, %v2129_v7 }
 0x1cb   :  { %1516 = vrsqrt.f32 %v2127_v42  ;;  %v999_v3 = vsub.f32 1.0, %v998_v21  ;;  %v995_v19 = vmul.f32 %v994_v59, %v1951_v4  ;;  %v996_v32 = vmul.f32 %v994_v59, %v1948_v0 }
 0x1cc   :  { %1518 = vrcp.f32 %v2129_v7  ;;  %v807_v4 = vmul.f32 %v806_v43, %v2098_v41  ;;  %v815_v63 = vmul.f32 %v1515_v29, %v814_v47  ;;  %vm1007_vm12 = vcmp.eq.f32.partialorder %v1006_v36, 8.507059e+37 }
 0x1cd   :  { %v1000_v37 = vmul.f32 %v1513_v57, %v999_v3  ;;  %1209 = vst [vmem:[#allocation2 + $0x20] sm:$0xff] %v995_v19  ;;  %v1022_v21 = vand.u32 2147483647, %v2129_v7  ;;  %vm1018_vm14 = vweird.f32 %v2129_v7  ;;  %vm832_vm3 = vcmp.eq.f32.partialorder %v2127_v42, inf }
 0x1ce   :  { %1210 = vst [vmem:[#allocation2 + $0x28] sm:$0xff] %v996_v32  ;;  %v809_v1 = vsel %vm808_vm9, %v2098_v41, %v807_v4  ;;  %v816_v13 = vmul.f32 0.5, %v815_v63  ;;  %vm834_vm4 = vcmp.eq.f32.partialorder %v2127_v42, 0.0 }
 0x1cf   :  { %v1001_v51 = vadd.f32 %v1513_v57, %v1000_v37  ;;  %v812_v9 = vsel %vm810_vm11, %v811_v49, %v809_v1  ;;  %vm1023_vm2 = vcmp.eq.f32.partialorder %v1022_v21, 8.507059e+37  ;;  %v1025_v37 = vor.u32 1.1754944e-38, %v1024_v53 }
 0x1d0   :  { %v817_v5 = vsub.f32 1.5, %v816_v13 }
 0x1d1   :  { %v1517_v0 = vpop.eup %1516  ;;  %v1005_v52 = vsel %vm1004_vm10, %v1513_v57, %v1001_v51  ;;  %v2151_v57 = vadd.f32 1e-07, %v812_v9 }
 0x1d2   :  { %v826_v44 = vmul.f32 %v1517_v0, %v2127_v42  ;;  %v2145_v6 = vpop.xlane.xlu2 %718  ;;  %v1519_v38 = vpop.eup %1518  ;;  %v1010_v54 = vsel %vm1007_vm12, %v1009_v12, %v1005_v52 }
 0x1d3   :  { %1520 = vrsqrt.f32 %v2145_v6  ;;  %v1011_v50 = vmul.f32 %v1010_v54, %v1961_v15  ;;  %v1012_v60 = vmul.f32 %v1010_v54, %v1958_v11  ;;  %v1014_v24 = vmul.f32 %v1519_v38, %v2129_v7 }
 0x1d4   :  { %v827_v41 = vmul.f32 %v1517_v0, %v826_v44  ;;  %1522 = vrcp.f32 %v2151_v57  ;;  %vm1019_vm13 = vweird.f32 %v1519_v38  ;;  %v818_v15 = vmul.f32 %v1515_v29, %v817_v5 }
 0x1d5   :  { %1211 = vst [vmem:[#allocation2 + $0x30] sm:$0xff] %v1011_v50  ;;  %v1015_v18 = vsub.f32 1.0, %v1014_v24  ;;  %vm1020_vm1 = vmor %vm1018_vm14, %vm1019_vm13  ;;  %v823_v29 = vand.u32 2147483648, %v2115_v58  ;;  %vm1034_vm6 = vweird.f32 %v2151_v57  ;;  %vm844_vm9 = vcmp.eq.f32.partialorder %v2145_v6, inf }
 0x1d6   :  { %1212 = vst [vmem:[#allocation2 + $0x38] sm:$0xff] %v1012_v60  ;;  %v828_v28 = vmul.f32 0.5, %v827_v41  ;;  %v819_v3 = vmul.f32 %v818_v15, %v2115_v58  ;;  %vm846_vm10 = vcmp.eq.f32.partialorder %v2145_v6, 0.0 }
 0x1d7   :  { %v1016_v46 = vmul.f32 %v1519_v38, %v1015_v18 }
 0x1d8   :  { %v829_v19 = vsub.f32 1.5, %v828_v28  ;;  %v821_v36 = vsel %vm820_vm15, %v2115_v58, %v819_v3  ;;  %v835_v58 = vand.u32 2147483648, %v2127_v42 }
 0x1d9   :  { %v1521_v11 = vpop.eup %1520  ;;  %v1017_v59 = vadd.f32 %v1519_v38, %v1016_v46  ;;  %v824_v12 = vsel %vm822_vm0, %v823_v29, %v821_v36 }
 0x1da   :  { %v838_v32 = vmul.f32 %v1521_v11, %v2145_v6  ;;  %v2161_v33 = vpop.xlane.xlu0 %721  ;;  %v830_v43 = vmul.f32 %v1517_v0, %v829_v19  ;;  %v1523_v51 = vpop.eup %1522  ;;  %v2171_v1 = vadd.f32 1e-07, %v824_v12 }
 0x1db   :  { %1524 = vrsqrt.f32 %v2161_v33  ;;  %v1021_v7 = vsel %vm1020_vm1, %v1519_v38, %v1017_v59  ;;  %v1030_v52 = vmul.f32 %v1523_v51, %v2151_v57  ;;  %vm1035_vm5 = vweird.f32 %v1523_v51 }
 0x1dc   :  { %v839_v47 = vmul.f32 %v1521_v11, %v838_v32  ;;  %v1026_v4 = vsel %vm1023_vm2, %v1025_v37, %v1021_v7  ;;  %v831_v44 = vmul.f32 %v830_v43, %v2127_v42  ;;  %1526 = vrcp.f32 %v2171_v1  ;;  %vm1036_vm7 = vmor %vm1034_vm6, %vm1035_vm5 }
 0x1dd   :  { %v1027_v49 = vmul.f32 %v1026_v4, %v1971_v27  ;;  %v1028_v63 = vmul.f32 %v1026_v4, %v1968_v22  ;;  %v1031_v54 = vsub.f32 1.0, %v1030_v52  ;;  %v1038_v22 = vand.u32 2147483647, %v2151_v57 }
 0x1de   :  { %v840_v38 = vmul.f32 0.5, %v839_v47  ;;  %v1040_v27 = vand.u32 2147483648, %v2151_v57  ;;  %v833_v13 = vsel %vm832_vm3, %v2127_v42, %v831_v44  ;;  %v847_v32 = vand.u32 2147483648, %v2145_v6 }
 0x1df   :  { %1213 = vst [vmem:[#allocation2 + $0x40] sm:$0xff] %v1027_v49  ;;  %v1032_v9 = vmul.f32 %v1523_v51, %v1031_v54  ;;  %v836_v5 = vsel %vm834_vm4, %v835_v58, %v833_v13  ;;  %vm1039_vm8 = vcmp.eq.f32.partialorder %v1038_v22, 8.507059e+37  ;;  %v1054_v43 = vand.u32 2147483647, %v2171_v1 }
 0x1e0   :  { %1214 = vst [vmem:[#allocation2 + $0x48] sm:$0xff] %v1028_v63  ;;  %v841_v50 = vsub.f32 1.5, %v840_v38  ;;  %v2186_v18 = vadd.f32 1e-07, %v836_v5  ;;  %v1041_v46 = vor.u32 1.1754944e-38, %v1040_v27  ;;  %vm856_vm12 = vcmp.eq.f32.partialorder %v2161_v33, inf }
 0x1e1   :  { %v1525_v0 = vpop.eup %1524  ;;  %v1033_v41 = vadd.f32 %v1523_v51, %v1032_v9  ;;  %vm858_vm13 = vcmp.eq.f32.partialorder %v2161_v33, 0.0  ;;  %v859_v44 = vand.u32 2147483648, %v2161_v33  ;;  %vm1050_vm14 = vweird.f32 %v2171_v1 }
 0x1e2   :  { %v850_v60 = vmul.f32 %v1525_v0, %v2161_v33  ;;  %v2182_v24 = vpop.xlane.xlu1 %724  ;;  %v842_v21 = vmul.f32 %v1521_v11, %v841_v50  ;;  %v1527_v42 = vpop.eup %1526  ;;  %vm1055_vm15 = vcmp.eq.f32.partialorder %v1054_v43, 8.507059e+37  ;;  %v1070_v22 = vand.u32 2147483647, %v2186_v18 }
 0x1e3   :  { %1528 = vrsqrt.f32 %v2182_v24  ;;  %v1037_v15 = vsel %vm1036_vm7, %v1523_v51, %v1033_v41  ;;  %v1046_v11 = vmul.f32 %v1527_v42, %v2171_v1  ;;  %vm1051_vm11 = vweird.f32 %v1527_v42 }
 0x1e4   :  { %v851_v53 = vmul.f32 %v1525_v0, %v850_v60  ;;  %1530 = vrcp.f32 %v2186_v18  ;;  %v1042_v28 = vsel %vm1039_vm8, %v1041_v46, %v1037_v15  ;;  %v843_v59 = vmul.f32 %v842_v21, %v2145_v6  ;;  %vm1052_vm0 = vmor %vm1050_vm14, %vm1051_vm11 }
 0x1e5   :  { %v1043_v3 = vmul.f32 %v1042_v28, %v1981_v39  ;;  %v1044_v19 = vmul.f32 %v1042_v28, %v1978_v34  ;;  %v1047_v36 = vsub.f32 1.0, %v1046_v11  ;;  %v1056_v34 = vand.u32 2147483648, %v2171_v1 }
 0x1e6   :  { %v852_v57 = vmul.f32 0.5, %v851_v53  ;;  %v845_v29 = vsel %vm844_vm9, %v2145_v6, %v843_v59  ;;  %v1072_v13 = vand.u32 2147483648, %v2186_v18  ;;  %vm1066_vm2 = vweird.f32 %v2186_v18 }
 0x1e7   :  { %1215 = vst [vmem:[#allocation2 + $0x50] sm:$0xff] %v1043_v3  ;;  %v848_v47 = vsel %vm846_vm10, %v847_v32, %v845_v29  ;;  %v1048_v6 = vmul.f32 %v1527_v42, %v1047_v36  ;;  %v1057_v58 = vor.u32 1.1754944e-38, %v1056_v34  ;;  %vm868_vm4 = vcmp.eq.f32.partialorder %v2182_v24, inf }
 0x1e8   :  { %v853_v7 = vsub.f32 1.5, %v852_v57  ;;  %1216 = vst [vmem:[#allocation2 + $0x58] sm:$0xff] %v1044_v19  ;;  %v2203_v4 = vadd.f32 1e-07, %v848_v47  ;;  %vm1071_vm5 = vcmp.eq.f32.partialorder %v1070_v22, 8.507059e+37  ;;  %vm870_vm6 = vcmp.eq.f32.partialorder %v2182_v24, 0.0 }
 0x1e9   :  { %v1529_v37 = vpop.eup %1528  ;;  %v1049_v38 = vadd.f32 %v1527_v42, %v1048_v6  ;;  %v871_v32 = vand.u32 2147483648, %v2182_v24 }
 0x1ea   :  { %v862_v51 = vmul.f32 %v1529_v37, %v2182_v24  ;;  %v2200_v39 = vpop.xlane.xlu2 %727  ;;  %v854_v12 = vmul.f32 %v1525_v0, %v853_v7  ;;  %v1531_v49 = vpop.eup %1530  ;;  %v1086_v36 = vand.u32 2147483647, %v2203_v4  ;;  %v1088_v43 = vand.u32 2147483648, %v2203_v4 }
 0x1eb   :  { %1532 = vrsqrt.f32 %v2200_v39  ;;  %v1062_v52 = vmul.f32 %v1531_v49, %v2186_v18  ;;  %v1053_v9 = vsel %vm1052_vm0, %v1527_v42, %v1049_v38  ;;  %vm1067_vm1 = vweird.f32 %v1531_v49 }
 0x1ec   :  { %v863_v63 = vmul.f32 %v1529_v37, %v862_v51  ;;  %1534 = vrcp.f32 %v2203_v4  ;;  %v855_v54 = vmul.f32 %v854_v12, %v2161_v33  ;;  %v1058_v5 = vsel %vm1055_vm15, %v1057_v58, %v1053_v9  ;;  %vm1068_vm3 = vmor %vm1066_vm2, %vm1067_vm1 }
 0x1ed   :  { %v1063_v0 = vsub.f32 1.0, %v1062_v52  ;;  %v1059_v53 = vmul.f32 %v1058_v5, %v1991_v35  ;;  %v1060_v46 = vmul.f32 %v1058_v5, %v1988_v48  ;;  %vm1082_vm8 = vweird.f32 %v2203_v4 }
 0x1ee   :  { %v864_v27 = vmul.f32 0.5, %v863_v63  ;;  %v857_v50 = vsel %vm856_vm12, %v2161_v33, %v855_v54  ;;  %v1073_v33 = vor.u32 1.1754944e-38, %v1072_v13  ;;  %v1089_v38 = vor.u32 1.1754944e-38, %v1088_v43 }
 0x1ef   :  { %v1064_v1 = vmul.f32 %v1531_v49, %v1063_v0  ;;  %v860_v41 = vsel %vm858_vm13, %v859_v44, %v857_v50  ;;  %1217 = vst [vmem:[#allocation2 + $0x60] sm:$0xff] %v1059_v53  ;;  %vm1087_vm10 = vcmp.eq.f32.partialorder %v1086_v36, 8.507059e+37  ;;  %vm880_vm12 = vcmp.eq.f32.partialorder %v2200_v39, inf }
 0x1f0   :  { %v865_v21 = vsub.f32 1.5, %v864_v27  ;;  %v2222_v15 = vadd.f32 1e-07, %v860_v41  ;;  %1218 = vst [vmem:[#allocation2 + $0x68] sm:$0xff] %v1060_v46  ;;  %v883_v41 = vand.u32 2147483648, %v2200_v39  ;;  %vm882_vm14 = vcmp.eq.f32.partialorder %v2200_v39, 0.0 }
 0x1f1   :  { %v1533_v60 = vpop.eup %1532  ;;  %v1065_v57 = vadd.f32 %v1531_v49, %v1064_v1 }
 0x1f2   :  { %v874_v42 = vmul.f32 %v1533_v60, %v2200_v39  ;;  %v2225_v28 = vpop.xlane.xlu0 %730  ;;  %v1535_v59 = vpop.eup %1534  ;;  %v866_v3 = vmul.f32 %v1529_v37, %v865_v21  ;;  %v1104_v9 = vand.u32 2147483648, %v2222_v15  ;;  %v1102_v5 = vand.u32 2147483647, %v2222_v15 }
 0x1f3   :  { %1536 = vrsqrt.f32 %v2225_v28  ;;  %v1078_v35 = vmul.f32 %v1535_v59, %v2203_v4  ;;  %v1069_v48 = vsel %vm1068_vm3, %v1531_v49, %v1065_v57  ;;  %vm1083_vm7 = vweird.f32 %v1535_v59 }
 0x1f4   :  { %1538 = vrcp.f32 %v2222_v15  ;;  %v867_v19 = vmul.f32 %v866_v3, %v2182_v24  ;;  %v1074_v18 = vsel %vm1071_vm5, %v1073_v33, %v1069_v48  ;;  %v875_v37 = vmul.f32 %v1533_v60, %v874_v42  ;;  %vm1084_vm9 = vmor %vm1082_vm8, %vm1083_vm7 }
 0x1f5   :  { %v1079_v11 = vsub.f32 1.0, %v1078_v35  ;;  %v1075_v29 = vmul.f32 %v1074_v18, %v2001_v2  ;;  %v1076_v7 = vmul.f32 %v1074_v18, %v1998_v61  ;;  %vm1098_vm13 = vweird.f32 %v2222_v15 }
 0x1f6   :  { %v869_v51 = vsel %vm868_vm4, %v2182_v24, %v867_v19  ;;  %v876_v34 = vmul.f32 0.5, %v875_v37  ;;  %v1105_v46 = vor.u32 1.1754944e-38, %v1104_v9  ;;  %vm1103_vm0 = vcmp.eq.f32.partialorder %v1102_v5, 8.507059e+37 }
 0x1f7   :  { %v1080_v47 = vmul.f32 %v1535_v59, %v1079_v11  ;;  %1219 = vst [vmem:[#allocation2 + $0x70] sm:$0xff] %v1075_v29  ;;  %v872_v2 = vsel %vm870_vm6, %v871_v32, %v869_v51  ;;  %vm892_vm1 = vcmp.eq.f32.partialorder %v2225_v28, inf  ;;  %v895_v29 = vand.u32 2147483648, %v2225_v28 }
 0x1f8   :  { %1220 = vst [vmem:[#allocation2 + $0x78] sm:$0xff] %v1076_v7  ;;  %v2246_v6 = vadd.f32 1e-07, %v872_v2  ;;  %v877_v63 = vsub.f32 1.5, %v876_v34  ;;  %vm894_vm3 = vcmp.eq.f32.partialorder %v2225_v28, 0.0 }
 0x1f9   :  { %v1537_v12 = vpop.eup %1536  ;;  %v1081_v61 = vadd.f32 %v1535_v59, %v1080_v47 }
 0x1fa   :  { %v1539_v49 = vpop.eup %1538  ;;  %v886_v52 = vmul.f32 %v1537_v12, %v2225_v28  ;;  %v2249_v44 = vpop.xlane.xlu1 %733  ;;  %v878_v0 = vmul.f32 %v1533_v60, %v877_v63  ;;  %v1120_v32 = vand.u32 2147483648, %v2246_v6  ;;  %v1118_v36 = vand.u32 2147483647, %v2246_v6 }
 0x1fb   :  { %v1094_v54 = vmul.f32 %v1539_v49, %v2222_v15  ;;  %1540 = vrsqrt.f32 %v2249_v44  ;;  %v1085_v4 = vsel %vm1084_vm9, %v1535_v59, %v1081_v61  ;;  %vm1099_vm11 = vweird.f32 %v1539_v49 }
 0x1fc   :  { %1542 = vrcp.f32 %v2246_v6  ;;  %v1090_v24 = vsel %vm1087_vm10, %v1089_v38, %v1085_v4  ;;  %v887_v13 = vmul.f32 %v1537_v12, %v886_v52  ;;  %v879_v1 = vmul.f32 %v878_v0, %v2200_v39  ;;  %vm1100_vm15 = vmor %vm1098_vm13, %vm1099_vm11 }
 0x1fd   :  { %v1095_v58 = vsub.f32 1.0, %v1094_v54  ;;  %v1091_v22 = vmul.f32 %v1090_v24, %v2011_v16  ;;  %v1092_v27 = vmul.f32 %v1090_v24, %v2008_v10  ;;  %vm1114_vm4 = vweird.f32 %v2246_v6 }
 0x1fe   :  { %v888_v21 = vmul.f32 0.5, %v887_v13  ;;  %v881_v10 = vsel %vm880_vm12, %v2200_v39, %v879_v1  ;;  %v1121_v34 = vor.u32 1.1754944e-38, %v1120_v32  ;;  %vm1119_vm6 = vcmp.eq.f32.partialorder %v1118_v36, 8.507059e+37 }
 0x1ff   :  { %v1096_v50 = vmul.f32 %v1539_v49, %v1095_v58  ;;  %1221 = vst [vmem:[#allocation2 + $0x80] sm:$0xff] %v1091_v22  ;;  %v884_v42 = vsel %vm882_vm14, %v883_v41, %v881_v10  ;;  %vm904_vm7 = vcmp.eq.f32.partialorder %v2249_v44, inf  ;;  %vm906_vm8 = vcmp.eq.f32.partialorder %v2249_v44, 0.0 }
 0x200   :  { %1222 = vst [vmem:[#allocation2 + $0x88] sm:$0xff] %v1092_v27  ;;  %v889_v59 = vsub.f32 1.5, %v888_v21  ;;  %v944_v35 = vadd.f32 1e-07, %v884_v42  ;;  %v907_v24 = vand.u32 2147483648, %v2249_v44 }
 0x201   :  { %v1541_v60 = vpop.eup %1540  ;;  %v1097_v16 = vadd.f32 %v1539_v49, %v1096_v50 }
 0x202   :  { %v1543_v53 = vpop.eup %1542  ;;  %v898_v57 = vmul.f32 %v1541_v60, %v2249_v44  ;;  %v890_v19 = vmul.f32 %v1537_v12, %v889_v59  ;;  %1544 = vrcp.f32 %v944_v35  ;;  %v1134_v0 = vand.u32 2147483647, %v944_v35 }
 0x203   :  { %v1101_v3 = vsel %vm1100_vm15, %v1539_v49, %v1097_v16  ;;  %v1110_v33 = vmul.f32 %v1543_v53, %v2246_v6  ;;  %vm1115_vm2 = vweird.f32 %v1543_v53  ;;  %v1136_v6 = vand.u32 2147483648, %v944_v35 }
 0x204   :  { %v1106_v48 = vsel %vm1103_vm0, %v1105_v46, %v1101_v3  ;;  %v899_v18 = vmul.f32 %v1541_v60, %v898_v57  ;;  %v891_v37 = vmul.f32 %v890_v19, %v2225_v28  ;;  %vm1116_vm5 = vmor %vm1114_vm4, %vm1115_vm2  ;;  %vm1130_vm10 = vweird.f32 %v944_v35 }
 0x205   :  { %v1107_v15 = vmul.f32 %v1106_v48, %v2021_v30  ;;  %v1108_v11 = vmul.f32 %v1106_v48, %v2018_v25  ;;  %v1111_v39 = vsub.f32 1.0, %v1110_v33  ;;  %v1137_v13 = vor.u32 1.1754944e-38, %v1136_v6 }
 0x206   :  { %v900_v43 = vmul.f32 0.5, %v899_v18  ;;  %v893_v30 = vsel %vm892_vm1, %v2225_v28, %v891_v37  ;;  %vm1135_vm12 = vcmp.eq.f32.partialorder %v1134_v0, 8.507059e+37 }
 0x207   :  { %1223 = vst [vmem:[#allocation2 + $0x90] sm:$0xff] %v1107_v15  ;;  %v1112_v7 = vmul.f32 %v1543_v53, %v1111_v39  ;;  %v896_v47 = vsel %vm894_vm3, %v895_v29, %v893_v30 }
 0x208   :  { %1224 = vst [vmem:[#allocation2 + $0x98] sm:$0xff] %v1108_v11  ;;  %v901_v51 = vsub.f32 1.5, %v900_v43  ;;  %v945_v12 = vadd.f32 1e-07, %v896_v47  ;;  %v1545_v2 = vpop.eup %1544 }
 0x209   :  { %v1113_v25 = vadd.f32 %v1543_v53, %v1112_v7  ;;  %v1126_v52 = vmul.f32 %v1545_v2, %v944_v35  ;;  %vm1131_vm9 = vweird.f32 %v1545_v2 }
 0x20a   :  { %v902_v61 = vmul.f32 %v1541_v60, %v901_v51  ;;  %1546 = vrcp.f32 %v945_v12  ;;  %vm1132_vm11 = vmor %vm1130_vm10, %vm1131_vm9  ;;  %v1152_v16 = vand.u32 2147483648, %v945_v12  ;;  %vm1146_vm14 = vweird.f32 %v945_v12 }
 0x20b   :  { %v1117_v49 = vsel %vm1116_vm5, %v1543_v53, %v1113_v25  ;;  %v1127_v28 = vsub.f32 1.0, %v1126_v52  ;;  %v1150_v53 = vand.u32 2147483647, %v945_v12 }
 0x20c   :  { %v1122_v63 = vsel %vm1119_vm6, %v1121_v34, %v1117_v49  ;;  %v903_v4 = vmul.f32 %v902_v61, %v2249_v44  ;;  %v1153_v59 = vor.u32 1.1754944e-38, %v1152_v16 }
 0x20d   :  { %v1123_v38 = vmul.f32 %v1122_v63, %v2031_v45  ;;  %v1124_v54 = vmul.f32 %v1122_v63, %v2028_v40  ;;  %v1128_v58 = vmul.f32 %v1545_v2, %v1127_v28  ;;  %vm1151_vm0 = vcmp.eq.f32.partialorder %v1150_v53, 8.507059e+37 }
 0x20e   :  { %v905_v22 = vsel %vm904_vm7, %v2249_v44, %v903_v4 }
 0x20f   :  { %1225 = vst [vmem:[#allocation2 + $0xa0] sm:$0xff] %v1123_v38  ;;  %v908_v45 = vsel %vm906_vm8, %v907_v24, %v905_v22  ;;  %v1129_v40 = vadd.f32 %v1545_v2, %v1128_v58 }
 0x210   :  { %1226 = vst [vmem:[#allocation2 + $0xa8] sm:$0xff] %v1124_v54  ;;  %v1547_v27 = vpop.eup %1546  ;;  %v946_v9 = vadd.f32 1e-07, %v908_v45 }
 0x211   :  { %v1142_v50 = vmul.f32 %v1547_v27, %v945_v12  ;;  %v1133_v1 = vsel %vm1132_vm11, %v1545_v2, %v1129_v40  ;;  %vm1147_vm13 = vweird.f32 %v1547_v27 }
 0x212   :  { %v2283_v5 = vpop.xlane.xlu2 %736  ;;  %1548 = vrcp.f32 %v946_v9  ;;  %v1138_v41 = vsel %vm1135_vm12, %v1137_v13, %v1133_v1  ;;  %vm1148_vm15 = vmor %vm1146_vm14, %vm1147_vm13  ;;  %v1168_v15 = vand.u32 2147483648, %v946_v9  ;;  %v1166_v32 = vand.u32 2147483647, %v946_v9 }
 0x213   :  { %v1143_v21 = vsub.f32 1.0, %v1142_v50  ;;  %1550 = vrsqrt.f32 %v2283_v5  ;;  %v1139_v60 = vmul.f32 %v1138_v41, %v2041_v62  ;;  %v1140_v44 = vmul.f32 %v1138_v41, %v2038_v56 }
 0x214   :  { %vm1162_vm2 = vweird.f32 %v946_v9  ;;  %v1169_v36 = vor.u32 1.1754944e-38, %v1168_v15  ;;  %vm1167_vm4 = vcmp.eq.f32.partialorder %v1166_v32, 8.507059e+37  ;;  %vm916_vm5 = vcmp.eq.f32.partialorder %v2283_v5, inf }
 0x215   :  { %v1144_v10 = vmul.f32 %v1547_v27, %v1143_v21  ;;  %1227 = vst [vmem:[#allocation2 + $0xb0] sm:$0xff] %v1139_v60  ;;  %v919_v2 = vand.u32 2147483648, %v2283_v5  ;;  %vm918_vm6 = vcmp.eq.f32.partialorder %v2283_v5, 0.0 }
 0x216   :  { %1228 = vst [vmem:[#allocation2 + $0xb8] sm:$0xff] %v1140_v44 }
 0x217   :  { %v1145_v46 = vadd.f32 %v1547_v27, %v1144_v10 }
 0x218   :  { %v1549_v42 = vpop.eup %1548 }
 0x219   :  { %v1551_v57 = vpop.eup %1550  ;;  %v1149_v3 = vsel %vm1148_vm15, %v1547_v27, %v1145_v46  ;;  %v1158_v33 = vmul.f32 %v1549_v42, %v946_v9  ;;  %vm1163_vm1 = vweird.f32 %v1549_v42 }
 0x21a   :  { %v740_v35 = vpop.xlane.xlu0 %739  ;;  %v1154_v48 = vsel %vm1151_vm0, %v1153_v59, %v1149_v3  ;;  %v910_v62 = vmul.f32 %v1551_v57, %v2283_v5  ;;  %vm1164_vm3 = vmor %vm1162_vm2, %vm1163_vm1 }
 0x21b   :  { %1552 = vrsqrt.f32 %v740_v35  ;;  %v1155_v56 = vmul.f32 %v1154_v48, %v2051_v14  ;;  %v1156_v19 = vmul.f32 %v1154_v48, %v2048_v8  ;;  %v1159_v18 = vsub.f32 1.0, %v1158_v33 }
 0x21c   :  { %v911_v11 = vmul.f32 %v1551_v57, %v910_v62  ;;  %vm928_vm7 = vcmp.eq.f32.partialorder %v740_v35, inf  ;;  %v931_v54 = vand.u32 2147483648, %v740_v35  ;;  %vm930_vm8 = vcmp.eq.f32.partialorder %v740_v35, 0.0 }
 0x21d   :  { %1229 = vst [vmem:[#allocation2 + $0xc0] sm:$0xff] %v1155_v56  ;;  %v1160_v39 = vmul.f32 %v1549_v42, %v1159_v18 }
 0x21e   :  { %1230 = vst [vmem:[#allocation2 + $0xc8] sm:$0xff] %v1156_v19  ;;  %v912_v37 = vmul.f32 0.5, %v911_v11 }
 0x21f   :  { %v1161_v29 = vadd.f32 %v1549_v42, %v1160_v39 }
 0x220   :  { %v913_v43 = vsub.f32 1.5, %v912_v37 }
 0x221   :  { %v1553_v7 = vpop.eup %1552  ;;  %v1165_v30 = vsel %vm1164_vm3, %v1549_v42, %v1161_v29 }
 0x222   :  { %v922_v14 = vmul.f32 %v1553_v7, %v740_v35  ;;  %v1170_v25 = vsel %vm1167_vm4, %v1169_v36, %v1165_v30  ;;  %v914_v8 = vmul.f32 %v1551_v57, %v913_v43 }
 0x223   :  { %v1171_v47 = vmul.f32 %v1170_v25, %v2061_v31  ;;  %v1172_v51 = vmul.f32 %v1170_v25, %v2058_v26 }
 0x224   :  { %v923_v34 = vmul.f32 %v1553_v7, %v922_v14  ;;  %v915_v12 = vmul.f32 %v914_v8, %v2283_v5 }
 0x225   :  { %1231 = vst [vmem:[#allocation2 + $0xd0] sm:$0xff] %v1171_v47 }
 0x226   :  { %v924_v49 = vmul.f32 0.5, %v923_v34  ;;  %1232 = vst [vmem:[#allocation2 + $0xd8] sm:$0xff] %v1172_v51  ;;  %v917_v61 = vsel %vm916_vm5, %v2283_v5, %v915_v12 }
 0x227   :  { %v920_v63 = vsel %vm918_vm6, %v919_v2, %v917_v61 }
 0x228   :  { %v925_v52 = vsub.f32 1.5, %v924_v49  ;;  %v947_v38 = vadd.f32 1e-07, %v920_v63 }
 0x22a   :  { %v926_v31 = vmul.f32 %v1553_v7, %v925_v52  ;;  %1554 = vrcp.f32 %v947_v38  ;;  %v1184_v22 = vand.u32 2147483648, %v947_v38  ;;  %v1182_v27 = vand.u32 2147483647, %v947_v38 }
 0x22b   :  { %vm1178_vm10 = vweird.f32 %v947_v38 }
 0x22c   :  { %v927_v26 = vmul.f32 %v926_v31, %v740_v35  ;;  %v1185_v13 = vor.u32 1.1754944e-38, %v1184_v22  ;;  %vm1183_vm12 = vcmp.eq.f32.partialorder %v1182_v27, 8.507059e+37 }
 0x22e   :  { %v929_v28 = vsel %vm928_vm7, %v740_v35, %v927_v26 }
 0x22f   :  { %v932_v4 = vsel %vm930_vm8, %v931_v54, %v929_v28 }
 0x230   :  { %v948_v6 = vadd.f32 1e-07, %v932_v4  ;;  %v1555_v24 = vpop.eup %1554 }
 0x231   :  { %v1174_v58 = vmul.f32 %v1555_v24, %v947_v38  ;;  %vm1179_vm9 = vweird.f32 %v1555_v24 }
 0x232   :  { %1556 = vrcp.f32 %v948_v6  ;;  %vm1180_vm11 = vmor %vm1178_vm10, %vm1179_vm9  ;;  %v1200_v44 = vand.u32 2147483648, %v948_v6  ;;  %v1198_v10 = vand.u32 2147483647, %v948_v6  ;;  %vm1194_vm14 = vweird.f32 %v948_v6 }
 0x233   :  { %v1175_v0 = vsub.f32 1.0, %v1174_v58 }
 0x234   :  { %v1201_v46 = vor.u32 1.1754944e-38, %v1200_v44  ;;  %vm1199_vm0 = vcmp.eq.f32.partialorder %v1198_v10, 8.507059e+37 }
 0x235   :  { %v1176_v45 = vmul.f32 %v1555_v24, %v1175_v0 }
 0x237   :  { %v1177_v9 = vadd.f32 %v1555_v24, %v1176_v45 }
 0x238   :  { %v1557_v40 = vpop.eup %1556 }
 0x239   :  { %v1190_v50 = vmul.f32 %v1557_v40, %v948_v6  ;;  %v1181_v5 = vsel %vm1180_vm11, %v1555_v24, %v1177_v9  ;;  %vm1195_vm13 = vweird.f32 %v1557_v40 }
 0x23a   :  { %v1186_v1 = vsel %vm1183_vm12, %v1185_v13, %v1181_v5  ;;  %vm1196_vm15 = vmor %vm1194_vm14, %vm1195_vm13 }
 0x23b   :  { %v1191_v41 = vsub.f32 1.0, %v1190_v50  ;;  %v1187_v21 = vmul.f32 %v1186_v1, %v2069_v23  ;;  %v1188_v60 = vmul.f32 %v1186_v1, %v2071_v55 }
 0x23d   :  { %v1192_v16 = vmul.f32 %v1557_v40, %v1191_v41  ;;  %1233 = vst [vmem:[#allocation2 + $0xe0] sm:$0xff] %v1187_v21 }
 0x23e   :  { %1234 = vst [vmem:[#allocation2 + $0xe8] sm:$0xff] %v1188_v60 }
 0x23f   :  { %v1193_v53 = vadd.f32 %v1557_v40, %v1192_v16 }
 0x241   :  { %v1197_v42 = vsel %vm1196_vm15, %v1557_v40, %v1193_v53 }
 0x242   :  { %v1202_v23 = vsel %vm1199_vm0, %v1201_v46, %v1197_v42 }
 0x243   :  { %v1203_v55 = vmul.f32 %v1202_v23, %v2079_v17  ;;  %v1204_v59 = vmul.f32 %v1202_v23, %v2081_v20 }
 0x245   :  { %1235 = vst [vmem:[#allocation2 + $0xf0] sm:$0xff] %v1203_v55 }
 0x246   :  { %1236 = vst [vmem:[#allocation2 + $0xf8] sm:$0xff] %v1204_v59 }
 0x247   :  { %1249 = dma.vmem_to_hbm [thread:$0]  %s1242_s14, 4096, %s1244_s16, [#allocation3], %s1585_s17, %s1585_s17, %s1586_s18  }
 0x248   :  { %1582 = dma.done.wait [#allocation3], 4096  }
 0x249   :  { %1583 = vsyncadd [#allocation3], 4294963200 }
 0x24a   :  { %1254 = vsyncpa [#allocation3], 1 }

// kernel: _lambda_.2
= control target key start
LH: loop header
LB: loop body
LE: loop exit
PB: predicated region body
PF: predicated region fallthrough
CT: control target
= control target key end

     0   :  { %s2284_s0 = inlined_call_operand.vmem [shape: bf16[128,4], index: 0, kind: input, shape index: {}]   ;;  %s2285_s1 = inlined_call_operand.vmem [shape: bf16[4,256], index: 1, kind: input, shape index: {}]   ;;  %s2286_s2 = inlined_call_operand.vmem [shape: f32[1,256], index: 2, kind: input, shape index: {}]   ;;  %s2287_s3 = inlined_call_operand.vmem [shape: bf16[256,256], index: 3, kind: input, shape index: {}]   ;;  %s2288_s4 = inlined_call_operand.vmem [shape: f32[1,256], index: 4, kind: input, shape index: {}]   ;;  %s2289_s5 = inlined_call_operand.hbm [shape: f32[128,256], index: 5, kind: output, shape index: {}]  }
   0x1   :  { %v38_v0 = vld [vmem:[%s2285_s1] sm:$0xf] }
   0x2   :  { %86 = vst [vmem:[#allocation1] ss:$4 sm:$0xff] %v38_v0 }
   0x3   :  { %10 = vsyncpa [#allocation3], 0  ;;  %vm114_vm0 = vcmask 1041408   ;;  %v1429_v5 = vld [vmem:[%s2284_s0] sm:$0xff]  ;;  %vm89_vm1 = vcmask 31744   ;;  %v1430_v6 = vld [vmem:[%s2284_s0 + $0x8] sm:$0xff] }
   0x4   :  { %v1621_v7 = vld [vmem:[%s2284_s0 + $0x20] sm:$0xff]  ;;  %v1431_v8 = vld [vmem:[%s2284_s0 + $0x10] sm:$0xff]  ;;  %v1434_v9 = vld [vmem:[%s2284_s0 + $0x28] sm:$0xff]  ;;  %s1241_s10 = sshll.u32 %s2289_s5, 4  ;;  %s1573_s11 = smov 256   ;;  %s1242_s10 = int_to_ptr.hbm [resolvable:$true] %s1241_s10 }
   0x5   :  { %v1359_v10 = vld [vmem:[%s2287_s3 + $0x70] sm:$0xf]  ;;  %v1452_v11 = vld [vmem:[%s2287_s3 + $0x74] sm:$0xf0]  ;;  %v1351_v16 = vld [vmem:[%s2287_s3 + $0x60] sm:$0xf] }
   0x6   :  { %v1423_v12 = vld [vmem:[%s2287_s3 + $0xf0] sm:$0xf]  ;;  %v1468_v13 = vld [vmem:[%s2287_s3 + $0xf4] sm:$0xf0]  ;;  %v1360_v14 = vor.u32 %v1452_v11, %v1359_v10  ;;  %v1450_v17 = vld [vmem:[%s2287_s3 + $0x64] sm:$0xf0] }
   0x7   :  { %v1424_v15 = vor.u32 %v1468_v13, %v1423_v12  ;;  %v1451_v18 = vld [vmem:[%s2287_s3 + $0x74] sm:$0xf]  ;;  %v1361_v19 = vld [vmem:[%s2287_s3 + $0x78] sm:$0xf0]  ;;  %v1352_v21 = vor.u32 %v1450_v17, %v1351_v16  ;;  %v1415_v24 = vld [vmem:[%s2287_s3 + $0xe0] sm:$0xf] }
   0x8   :  { %v1467_v20 = vld [vmem:[%s2287_s3 + $0xf4] sm:$0xf]  ;;  %v1662_v22 = vor.u32 %v1451_v18, %v1361_v19  ;;  %v1425_v23 = vld [vmem:[%s2287_s3 + $0xf8] sm:$0xf0]  ;;  %v1466_v25 = vld [vmem:[%s2287_s3 + $0xe4] sm:$0xf0] }
   0x9   :  { %v87_v1 = vld.sshfl [vmem:[#allocation1] sm:$0xff pattern:$0x73625140]  ;;  %v88_v2 = vld.sshfl [vmem:[#allocation1 + $0x8] sm:$0xff pattern:$0x73625140]  ;;  %v1428_v26 = vor.u32 %v1467_v20, %v1425_v23  ;;  %v1416_v27 = vor.u32 %v1466_v25, %v1415_v24 }
   0xa   :  { %v115_v3 = vsel %vm114_vm0, %v87_v1, 0  ;;  %v117_v4 = vsel %vm114_vm0, %v88_v2, 0  ;;  %v1343_v28 = vld [vmem:[%s2287_s3 + $0x50] sm:$0xf]  ;;  %v1448_v29 = vld [vmem:[%s2287_s3 + $0x54] sm:$0xf0] }
   0xb   :  { %126 = vmatpush.bf16.msra.mxu0 %v115_v3  ;;  %175 = vmatpush.bf16.msra.mxu1 %v117_v4  ;;  %v1449_v30 = vld [vmem:[%s2287_s3 + $0x64] sm:$0xf]  ;;  %v1353_v31 = vld [vmem:[%s2287_s3 + $0x68] sm:$0xf0]  ;;  %v1407_v36 = vld [vmem:[%s2287_s3 + $0xd0] sm:$0xf]  ;;  %v1344_v37 = vor.u32 %v1448_v29, %v1343_v28 }
   0xc   :  { %1470 = vmatpush.bf16.msra.mxu3 %v117_v4  ;;  %1469 = vmatpush.bf16.msra.mxu2 %v115_v3  ;;  %v1465_v32 = vld [vmem:[%s2287_s3 + $0xe4] sm:$0xf]  ;;  %v1417_v33 = vld [vmem:[%s2287_s3 + $0xe8] sm:$0xf0]  ;;  %v1692_v34 = vor.u32 %v1449_v30, %v1353_v31  ;;  %v1335_v38 = vld [vmem:[%s2287_s3 + $0x40] sm:$0xf] }
   0xd   :  { %v1420_v35 = vor.u32 %v1465_v32, %v1417_v33  ;;  %v1446_v39 = vld [vmem:[%s2287_s3 + $0x44] sm:$0xf0]  ;;  %v1464_v40 = vld [vmem:[%s2287_s3 + $0xd4] sm:$0xf0]  ;;  %v1463_v42 = vld [vmem:[%s2287_s3 + $0xd4] sm:$0xf] }
   0xe   :  { %1285 = vmatmul.msk.bf16.vlgmr.msra.gmra.mxu0 %vm89_vm1, %v1429_v5  ;;  %1293 = vmatmul.msk.bf16.vlgmr.msra.gmra.mxu1 %vm89_vm1, %v1429_v5  ;;  %v1408_v41 = vor.u32 %v1464_v40, %v1407_v36  ;;  %v1409_v43 = vld [vmem:[%s2287_s3 + $0xd8] sm:$0xf0]  ;;  %v1447_v44 = vld [vmem:[%s2287_s3 + $0x54] sm:$0xf]  ;;  %v1399_v46 = vld [vmem:[%s2287_s3 + $0xc0] sm:$0xf]  ;;  %v1336_v55 = vor.u32 %v1446_v39, %v1335_v38 }
   0xf   :  { %1297 = vmatmul.msk.bf16.vlgmr.msra.gmra.mxu3 %vm89_vm1, %v1621_v7  ;;  %1290 = vmatmul.msk.bf16.vlgmr.msra.gmra.mxu2 %vm89_vm1, %v1434_v9  ;;  %v1345_v45 = vld [vmem:[%s2287_s3 + $0x58] sm:$0xf0]  ;;  %v1462_v47 = vld [vmem:[%s2287_s3 + $0xc4] sm:$0xf0]  ;;  %v1412_v49 = vor.u32 %v1463_v42, %v1409_v43  ;;  %v1445_v51 = vld [vmem:[%s2287_s3 + $0x44] sm:$0xf] }
  0x10   :  { %463 = vmatpush.bf16.msrb.mxu2 %v1360_v14  ;;  %512 = vmatpush.bf16.msrb.mxu3 %v1424_v15  ;;  %v1432_v48 = vld [vmem:[%s2284_s0 + $0x18] sm:$0xff]  ;;  %v1728_v50 = vor.u32 %v1447_v44, %v1345_v45  ;;  %v1337_v52 = vld [vmem:[%s2287_s3 + $0x48] sm:$0xf0]  ;;  %v1461_v53 = vld [vmem:[%s2287_s3 + $0xc4] sm:$0xf]  ;;  %v1400_v56 = vor.u32 %v1462_v47, %v1399_v46  ;;  %s1574_s12 = smov 16  }
  0x11   :  { %561 = vmatpush.bf16.msrb.mxu0 %v1662_v22  ;;  %610 = vmatpush.bf16.msrb.mxu1 %v1428_v26  ;;  %v1401_v54 = vld [vmem:[%s2287_s3 + $0xc8] sm:$0xf0]  ;;  %v1435_v57 = vld [vmem:[%s2284_s0 + $0x30] sm:$0xff]  ;;  %v1444_v59 = vld [vmem:[%s2287_s3 + $0x34] sm:$0xf0]  ;;  %v1752_v60 = vor.u32 %v1445_v51, %v1337_v52 }
  0x12   :  { %v1327_v58 = vld [vmem:[%s2287_s3 + $0x30] sm:$0xf]  ;;  %v1404_v61 = vor.u32 %v1461_v53, %v1401_v54  ;;  %v1319_v63 = vld [vmem:[%s2287_s3 + $0x20] sm:$0xf]  ;;  %v1442_v0 = vld [vmem:[%s2287_s3 + $0x24] sm:$0xf0] }
  0x13   :  { %v1328_v62 = vor.u32 %v1444_v59, %v1327_v58  ;;  %v1320_v1 = vor.u32 %v1442_v0, %v1319_v63  ;;  %v1436_v2 = vld [vmem:[%s2284_s0 + $0x38] sm:$0xff]  ;;  %v1443_v3 = vld [vmem:[%s2287_s3 + $0x34] sm:$0xf]  ;;  %v1441_v12 = vld [vmem:[%s2287_s3 + $0x24] sm:$0xf] }
  0x14   :  { %464 = vmatpush.bf16.msrb.mxu2 %v1352_v21  ;;  %513 = vmatpush.bf16.msrb.mxu3 %v1416_v27  ;;  %v1329_v4 = vld [vmem:[%s2287_s3 + $0x38] sm:$0xf0]  ;;  %v1321_v13 = vld [vmem:[%s2287_s3 + $0x28] sm:$0xf0]  ;;  %v1311_v15 = vld [vmem:[%s2287_s3 + $0x10] sm:$0xf] }
  0x15   :  { %562 = vmatpush.bf16.msrb.mxu0 %v1692_v34  ;;  %611 = vmatpush.bf16.msrb.mxu1 %v1420_v35  ;;  %v1332_v5 = vor.u32 %v1443_v3, %v1329_v4  ;;  %v1393_v10 = vld [vmem:[%s2287_s3 + $0xb8] sm:$0xf0]  ;;  %v1324_v14 = vor.u32 %v1441_v12, %v1321_v13  ;;  %v1440_v16 = vld [vmem:[%s2287_s3 + $0x14] sm:$0xf0]  ;;  %v1383_v18 = vld [vmem:[%s2287_s3 + $0xa0] sm:$0xf] }
  0x16   :  { %v1312_v17 = vor.u32 %v1440_v16, %v1311_v15  ;;  %v1458_v19 = vld [vmem:[%s2287_s3 + $0xa4] sm:$0xf0]  ;;  %v1457_v20 = vld [vmem:[%s2287_s3 + $0xa4] sm:$0xf]  ;;  %v1385_v23 = vld [vmem:[%s2287_s3 + $0xa8] sm:$0xf0] }
  0x17   :  { %v1384_v21 = vor.u32 %v1458_v19, %v1383_v18  ;;  %v1439_v24 = vld [vmem:[%s2287_s3 + $0x14] sm:$0xf]  ;;  %v1313_v25 = vld [vmem:[%s2287_s3 + $0x18] sm:$0xf0]  ;;  %v1388_v26 = vor.u32 %v1457_v20, %v1385_v23  ;;  %v1375_v28 = vld [vmem:[%s2287_s3 + $0x90] sm:$0xf] }
  0x18   :  { %465 = vmatpush.bf16.msrb.mxu2 %v1344_v37  ;;  %514 = vmatpush.bf16.msrb.mxu3 %v1408_v41  ;;  %v1316_v27 = vor.u32 %v1439_v24, %v1313_v25  ;;  %v1456_v29 = vld [vmem:[%s2287_s3 + $0x94] sm:$0xf0]  ;;  %v1455_v30 = vld [vmem:[%s2287_s3 + $0x94] sm:$0xf]  ;;  %v1377_v32 = vld [vmem:[%s2287_s3 + $0x98] sm:$0xf0] }
  0x19   :  { %563 = vmatpush.bf16.msrb.mxu0 %v1728_v50  ;;  %612 = vmatpush.bf16.msrb.mxu1 %v1412_v49  ;;  %v1376_v31 = vor.u32 %v1456_v29, %v1375_v28  ;;  %v1303_v33 = vld [vmem:[%s2287_s3] sm:$0xf]  ;;  %v1438_v35 = vld [vmem:[%s2287_s3 + $0x4] sm:$0xf0]  ;;  %v1380_v36 = vor.u32 %v1455_v30, %v1377_v32  ;;  %v1437_v37 = vld [vmem:[%s2287_s3 + $0x4] sm:$0xf] }
  0x1a   :  { %v1304_v38 = vor.u32 %v1438_v35, %v1303_v33  ;;  %v1305_v39 = vld [vmem:[%s2287_s3 + $0x8] sm:$0xf0]  ;;  %v1367_v41 = vld [vmem:[%s2287_s3 + $0x80] sm:$0xf]  ;;  %v1454_v42 = vld [vmem:[%s2287_s3 + $0x84] sm:$0xf0] }
  0x1b   :  { %v1308_v40 = vor.u32 %v1437_v37, %v1305_v39  ;;  %v1453_v43 = vld [vmem:[%s2287_s3 + $0x84] sm:$0xf]  ;;  %v1368_v44 = vor.u32 %v1454_v42, %v1367_v41  ;;  %v1369_v45 = vld [vmem:[%s2287_s3 + $0x88] sm:$0xf0]  ;;  %v39_v47 = vld [vmem:[%s2286_s2] sm:$0x3] }
  0x1c   :  { %466 = vmatpush.bf16.msrb.mxu2 %v1336_v55  ;;  %515 = vmatpush.bf16.msrb.mxu3 %v1400_v56  ;;  %v1372_v46 = vor.u32 %v1453_v43, %v1369_v45  ;;  %v1863_v51 = vperm.slane %v39_v47, 1  ;;  %v1865_v52 = vperm.slane %v39_v47, 0 }
  0x1d   :  { %564 = vmatpush.bf16.msrb.mxu0 %v1752_v60  ;;  %613 = vmatpush.bf16.msrb.mxu1 %v1404_v61 }
  0x1e   :  { %1286 = vmatmul.msk.bf16.gmra.mxu0 %vm89_vm1, %v1430_v6  ;;  %1294 = vmatmul.msk.bf16.gmra.mxu1 %vm89_vm1, %v1430_v6  ;;  %v1391_v6 = vld [vmem:[%s2287_s3 + $0xb0] sm:$0xf] }
  0x1f   :  { %1298 = vmatmul.msk.bf16.gmra.mxu3 %vm89_vm1, %v1434_v9  ;;  %1291 = vmatmul.msk.bf16.gmra.mxu2 %vm89_vm1, %v1435_v57 }
  0x20   :  { %467 = vmatpush.bf16.msrb.mxu2 %v1328_v62 }
  0x21   :  { %565 = vmatpush.bf16.msrb.mxu0 %v1332_v5 }
  0x24   :  { %468 = vmatpush.bf16.msrb.mxu2 %v1320_v1 }
  0x25   :  { %566 = vmatpush.bf16.msrb.mxu0 %v1324_v14 }
  0x28   :  { %469 = vmatpush.bf16.msrb.mxu2 %v1312_v17 }
  0x29   :  { %567 = vmatpush.bf16.msrb.mxu0 %v1316_v27 }
  0x2c   :  { %470 = vmatpush.bf16.msrb.mxu2 %v1304_v38 }
  0x2d   :  { %568 = vmatpush.bf16.msrb.mxu0 %v1308_v40 }
  0x2e   :  { %1287 = vmatmul.msk.bf16.gmra.mxu0 %vm89_vm1, %v1431_v8  ;;  %1295 = vmatmul.msk.bf16.gmra.mxu1 %vm89_vm1, %v1431_v8  ;;  %v1459_v8 = vld [vmem:[%s2287_s3 + $0xb4] sm:$0xf] }
  0x2f   :  { %1299 = vmatmul.msk.bf16.gmra.mxu3 %vm89_vm1, %v1435_v57  ;;  %1292 = vmatmul.msk.bf16.gmra.mxu2 %vm89_vm1, %v1436_v2  ;;  %v1396_v11 = vor.u32 %v1459_v8, %v1393_v10 }
  0x30   :  { %1471 = vmatpush.bf16.msra.mxu2 %v1662_v22 }
  0x31   :  { %614 = vmatpush.bf16.msrb.mxu1 %v1396_v11 }
  0x34   :  { %1472 = vmatpush.bf16.msra.mxu2 %v1692_v34 }
  0x35   :  { %615 = vmatpush.bf16.msrb.mxu1 %v1388_v26 }
  0x38   :  { %1473 = vmatpush.bf16.msra.mxu2 %v1728_v50 }
  0x39   :  { %616 = vmatpush.bf16.msrb.mxu1 %v1380_v36 }
  0x3c   :  { %1474 = vmatpush.bf16.msra.mxu2 %v1752_v60 }
  0x3d   :  { %617 = vmatpush.bf16.msrb.mxu1 %v1372_v46 }
  0x3e   :  { %1288 = vmatmul.msk.bf16.gmra.mxu0 %vm89_vm1, %v1432_v48  ;;  %1296 = vmatmul.msk.bf16.gmra.mxu1 %vm89_vm1, %v1432_v48 }
  0x3f   :  { %1300 = vmatmul.msk.bf16.gmra.mxu3 %vm89_vm1, %v1436_v2 }
  0x40   :  { %1475 = vmatpush.bf16.msra.mxu2 %v1332_v5 }
  0x44   :  { %1476 = vmatpush.bf16.msra.mxu2 %v1324_v14 }
  0x48   :  { %1477 = vmatpush.bf16.msra.mxu2 %v1316_v27 }
  0x4c   :  { %1478 = vmatpush.bf16.msra.mxu2 %v1308_v40 }
  0x4e   :  { %1289 = vmatmul.msk.bf16.gmra.mxu0 %vm89_vm1, %v1621_v7  ;;  %v1460_v7 = vld [vmem:[%s2287_s3 + $0xb4] sm:$0xf0] }
  0x4f   :  { %v1392_v9 = vor.u32 %v1460_v7, %v1391_v6 }
  0x51   :  { %516 = vmatpush.bf16.msrb.mxu3 %v1392_v9 }
  0x55   :  { %517 = vmatpush.bf16.msrb.mxu3 %v1384_v21 }
  0x59   :  { %518 = vmatpush.bf16.msrb.mxu3 %v1376_v31 }
  0x5d   :  { %519 = vmatpush.bf16.msrb.mxu3 %v1368_v44 }
  0x8b   :  { %v128_v48 = vpop.f32.mrf.mxu0  ;;  %v177_v49 = vpop.f32.mrf.mxu1 }
  0x8c   :  { %v178_v22 = vadd.f32 %v177_v49, %v1863_v51  ;;  %v129_v34 = vadd.f32 %v128_v48, %v1865_v52 }
  0x8e   :  { %v218_v54 = vmax.f32 %v178_v22, 0.0  ;;  %v217_v57 = vmax.f32 %v129_v34, 0.0 }
  0x92   :  { %v197_v25 = vpop.f32.mrf.mxu3  ;;  %v153_v46 = vpop.f32.mrf.mxu2 }
  0x93   :  { %v130_v50 = vpop.f32.mrf.mxu0  ;;  %v179_v53 = vpop.f32.mrf.mxu1  ;;  %v198_v47 = vadd.f32 %v197_v25, %v1863_v51 }
  0x94   :  { %v131_v55 = vadd.f32 %v130_v50, %v1865_v52  ;;  %v180_v56 = vadd.f32 %v179_v53, %v1863_v51 }
  0x95   :  { %v234_v22 = vmax.f32 %v198_v47, 0.0 }
  0x96   :  { %v219_v58 = vmax.f32 %v131_v55, 0.0  ;;  %v220_v59 = vmax.f32 %v180_v56, 0.0 }
  0x98   :  { %v249_v60 = vpack.c.bf16 %v219_v58, %v217_v57  ;;  %v250_v61 = vpack.c.bf16 %v220_v59, %v218_v54 }
  0x9a   :  { %471 = vmatmul.bf16.vlgmr.msrb.gmra.mxu2 %v249_v60  ;;  %569 = vmatmul.bf16.vlgmr.msrb.gmra.mxu0 %v249_v60  ;;  %v199_v31 = vpop.f32.mrf.mxu3  ;;  %v155_v55 = vpop.f32.mrf.mxu2 }
  0x9b   :  { %v133_v62 = vpop.f32.mrf.mxu0  ;;  %520 = vmatmul.bf16.vlgmr.msrb.gmra.mxu3 %v250_v61  ;;  %618 = vmatmul.bf16.vlgmr.msrb.gmra.mxu1 %v250_v61  ;;  %v182_v63 = vpop.f32.mrf.mxu1  ;;  %v200_v48 = vadd.f32 %v199_v31, %v1863_v51 }
  0x9c   :  { %v183_v0 = vadd.f32 %v182_v63, %v1863_v51  ;;  %v134_v1 = vadd.f32 %v133_v62, %v1865_v52 }
  0x9d   :  { %v236_v50 = vmax.f32 %v200_v48, 0.0 }
  0x9e   :  { %v222_v4 = vmax.f32 %v183_v0, 0.0  ;;  %v221_v7 = vmax.f32 %v134_v1, 0.0  ;;  %v154_v0 = vadd.f32 %v153_v46, %v1865_v52  ;;  %v156_v1 = vadd.f32 %v155_v55, %v1865_v52 }
  0x9f   :  { %v258_v58 = vpack.c.bf16 %v236_v50, %v234_v22 }
  0xa2   :  { %v202_v44 = vpop.f32.mrf.mxu3  ;;  %v158_v62 = vpop.f32.mrf.mxu2 }
  0xa3   :  { %v135_v2 = vpop.f32.mrf.mxu0  ;;  %v184_v3 = vpop.f32.mrf.mxu1  ;;  %v203_v61 = vadd.f32 %v202_v44, %v1863_v51 }
  0xa4   :  { %v136_v5 = vadd.f32 %v135_v2, %v1865_v52  ;;  %v185_v6 = vadd.f32 %v184_v3, %v1863_v51 }
  0xa5   :  { %v238_v2 = vmax.f32 %v203_v61, 0.0 }
  0xa6   :  { %v223_v8 = vmax.f32 %v136_v5, 0.0  ;;  %v224_v9 = vmax.f32 %v185_v6, 0.0  ;;  %v239_v5 = vmax.f32 %v156_v1, 0.0 }
  0xa8   :  { %v251_v10 = vpack.c.bf16 %v223_v8, %v221_v7  ;;  %v252_v11 = vpack.c.bf16 %v224_v9, %v222_v4  ;;  %v237_v4 = vmax.f32 %v154_v0, 0.0 }
  0xaa   :  { %476 = vmatmul.bf16.gmra.mxu2 %v251_v10  ;;  %574 = vmatmul.bf16.gmra.mxu0 %v251_v10  ;;  %v204_v54 = vpop.f32.mrf.mxu3  ;;  %v259_v7 = vpack.c.bf16 %v239_v5, %v237_v4  ;;  %v160_v9 = vpop.f32.mrf.mxu2 }
  0xab   :  { %v138_v12 = vpop.f32.mrf.mxu0  ;;  %525 = vmatmul.bf16.gmra.mxu3 %v252_v11  ;;  %623 = vmatmul.bf16.gmra.mxu1 %v252_v11  ;;  %v187_v13 = vpop.f32.mrf.mxu1  ;;  %v205_v63 = vadd.f32 %v204_v54, %v1863_v51 }
  0xac   :  { %v188_v14 = vadd.f32 %v187_v13, %v1863_v51  ;;  %v139_v15 = vadd.f32 %v138_v12, %v1865_v52  ;;  %v159_v12 = vadd.f32 %v158_v62, %v1865_v52  ;;  %v161_v13 = vadd.f32 %v160_v9, %v1865_v52 }
  0xad   :  { %v240_v3 = vmax.f32 %v205_v63, 0.0 }
  0xae   :  { %v226_v18 = vmax.f32 %v188_v14, 0.0  ;;  %v225_v21 = vmax.f32 %v139_v15, 0.0 }
  0xaf   :  { %v260_v6 = vpack.c.bf16 %v240_v3, %v238_v2 }
  0xb2   :  { %v207_v60 = vpop.f32.mrf.mxu3 }
  0xb3   :  { %v140_v16 = vpop.f32.mrf.mxu0  ;;  %v189_v17 = vpop.f32.mrf.mxu1  ;;  %v208_v10 = vadd.f32 %v207_v60, %v1863_v51 }
  0xb4   :  { %v141_v19 = vadd.f32 %v140_v16, %v1865_v52  ;;  %v190_v20 = vadd.f32 %v189_v17, %v1863_v51  ;;  %v163_v16 = vpop.f32.mrf.mxu2 }
  0xb5   :  { %v242_v15 = vmax.f32 %v208_v10, 0.0 }
  0xb6   :  { %v227_v23 = vmax.f32 %v141_v19, 0.0  ;;  %v228_v24 = vmax.f32 %v190_v20, 0.0  ;;  %v243_v19 = vmax.f32 %v161_v13, 0.0 }
  0xb8   :  { %v253_v26 = vpack.c.bf16 %v227_v23, %v225_v21  ;;  %v254_v27 = vpack.c.bf16 %v228_v24, %v226_v18  ;;  %v241_v18 = vmax.f32 %v159_v12, 0.0 }
  0xba   :  { %481 = vmatmul.bf16.gmra.mxu2 %v253_v26  ;;  %579 = vmatmul.bf16.gmra.mxu0 %v253_v26  ;;  %v209_v8 = vpop.f32.mrf.mxu3  ;;  %v261_v21 = vpack.c.bf16 %v243_v19, %v241_v18 }
  0xbb   :  { %v143_v28 = vpop.f32.mrf.mxu0  ;;  %530 = vmatmul.bf16.gmra.mxu3 %v254_v27  ;;  %628 = vmatmul.bf16.gmra.mxu1 %v254_v27  ;;  %v192_v29 = vpop.f32.mrf.mxu1  ;;  %v210_v11 = vadd.f32 %v209_v8, %v1863_v51  ;;  %v164_v27 = vadd.f32 %v163_v16, %v1865_v52 }
  0xbc   :  { %v193_v30 = vadd.f32 %v192_v29, %v1863_v51  ;;  %v144_v32 = vadd.f32 %v143_v28, %v1865_v52  ;;  %v165_v24 = vpop.f32.mrf.mxu2 }
  0xbd   :  { %v244_v17 = vmax.f32 %v210_v11, 0.0  ;;  %v166_v28 = vadd.f32 %v165_v24, %v1865_v52  ;;  %v245_v31 = vmax.f32 %v164_v27, 0.0 }
  0xbe   :  { %v230_v36 = vmax.f32 %v193_v30, 0.0  ;;  %v229_v39 = vmax.f32 %v144_v32, 0.0 }
  0xbf   :  { %v262_v20 = vpack.c.bf16 %v244_v17, %v242_v15  ;;  %v247_v32 = vmax.f32 %v166_v28, 0.0 }
  0xc2   :  { %v212_v14 = vpop.f32.mrf.mxu3 }
  0xc3   :  { %v145_v33 = vpop.f32.mrf.mxu0  ;;  %v194_v35 = vpop.f32.mrf.mxu1  ;;  %v213_v25 = vadd.f32 %v212_v14, %v1863_v51 }
  0xc4   :  { %v146_v37 = vadd.f32 %v145_v33, %v1865_v52  ;;  %v195_v38 = vadd.f32 %v194_v35, %v1863_v51  ;;  %v263_v35 = vpack.c.bf16 %v247_v32, %v245_v31 }
  0xc5   :  { %v246_v29 = vmax.f32 %v213_v25, 0.0 }
  0xc6   :  { %v231_v40 = vmax.f32 %v146_v37, 0.0  ;;  %v232_v41 = vmax.f32 %v195_v38, 0.0 }
  0xc8   :  { %v255_v42 = vpack.c.bf16 %v231_v40, %v229_v39  ;;  %v256_v43 = vpack.c.bf16 %v232_v41, %v230_v36  ;;  %v297_v36 = vld [vmem:[%s2288_s4] sm:$0x3]  ;;  %s1572_s4 = smov [#allocation2]  }
  0xc9   :  { %v1902_v37 = vperm.slane %v297_v36, 1  ;;  %s1239_s8 = sshll.u32 %s1572_s4, 4  ;;  %s1240_s8 = int_to_ptr.vmem [resolvable:$true] %s1239_s8 }
  0xca   :  { %486 = vmatmul.bf16.gmra.mxu2 %v255_v42  ;;  %584 = vmatmul.bf16.gmra.mxu0 %v255_v42  ;;  %v214_v23 = vpop.f32.mrf.mxu3 }
  0xcb   :  { %v148_v45 = vpop.f32.mrf.mxu0  ;;  %535 = vmatmul.bf16.gmra.mxu3 %v256_v43  ;;  %633 = vmatmul.bf16.gmra.mxu1 %v256_v43  ;;  %v215_v26 = vadd.f32 %v214_v23, %v1863_v51 }
  0xcc   :  { %v149_v49 = vadd.f32 %v148_v45, %v1865_v52 }
  0xcd   :  { %v248_v30 = vmax.f32 %v215_v26, 0.0 }
  0xce   :  { %v233_v56 = vmax.f32 %v149_v49, 0.0 }
  0xcf   :  { %v264_v33 = vpack.c.bf16 %v248_v30, %v246_v29 }
  0xd3   :  { %v150_v34 = vpop.f32.mrf.mxu0 }
  0xd4   :  { %v151_v53 = vadd.f32 %v150_v34, %v1865_v52  ;;  %v1905_v52 = vperm.slane %v297_v36, 0 }
  0xd6   :  { %v235_v57 = vmax.f32 %v151_v53, 0.0 }
  0xd8   :  { %v257_v59 = vpack.c.bf16 %v235_v57, %v233_v56 }
  0xda   :  { %491 = vmatmul.bf16.gmra.mxu2 %v257_v59  ;;  %589 = vmatmul.bf16.gmra.mxu0 %v257_v59 }
  0xdb   :  { %540 = vmatmul.bf16.gmra.mxu3 %v258_v58  ;;  %638 = vmatmul.bf16.gmra.mxu1 %v258_v58 }
  0xea   :  { %496 = vmatmul.bf16.gmra.mxu2 %v259_v7  ;;  %594 = vmatmul.bf16.gmra.mxu0 %v259_v7 }
  0xeb   :  { %545 = vmatmul.bf16.gmra.mxu3 %v260_v6  ;;  %643 = vmatmul.bf16.gmra.mxu1 %v260_v6 }
  0xfa   :  { %501 = vmatmul.bf16.gmra.mxu2 %v261_v21  ;;  %599 = vmatmul.bf16.gmra.mxu0 %v261_v21 }
  0xfb   :  { %550 = vmatmul.bf16.gmra.mxu3 %v262_v20  ;;  %648 = vmatmul.bf16.gmra.mxu1 %v262_v20 }
 0x10a   :  { %506 = vmatmul.bf16.gmra.mxu2 %v263_v35 }
 0x10b   :  { %555 = vmatmul.bf16.gmra.mxu3 %v264_v33  ;;  %653 = vmatmul.bf16.gmra.mxu1 %v264_v33 }
 0x117   :  { %v570_v51 = vpop.f32.mrf.mxu0 }
 0x118   :  { %v619_v38 = vpop.f32.mrf.mxu1  ;;  %v571_v39 = vadd.f32 %v570_v51, %v1902_v37 }
 0x11a   :  { %604 = vmatmul.bf16.vlgmr.msra.gmra.mxu2 %v263_v35  ;;  %v1907_v41 = vadd.f32 %v619_v38, %v571_v39 }
 0x11c   :  { %v660_v49 = vmul.f32 %v1907_v41, %v1907_v41 }
 0x11d   :  { %v472_v40 = vpop.f32.mrf.mxu2 }
 0x11e   :  { %v473_v42 = vadd.f32 %v472_v40, %v1905_v52  ;;  %v521_v43 = vpop.f32.mrf.mxu3 }
 0x11f   :  { %v572_v44 = vpop.f32.mrf.mxu0 }
 0x120   :  { %v1910_v45 = vadd.f32 %v521_v43, %v473_v42  ;;  %v621_v46 = vpop.f32.mrf.mxu1  ;;  %v573_v47 = vadd.f32 %v572_v44, %v1902_v37 }
 0x122   :  { %v659_v48 = vmul.f32 %v1910_v45, %v1910_v45  ;;  %v1917_v50 = vadd.f32 %v621_v46, %v573_v47 }
 0x124   :  { %v691_v22 = vadd.f32 %v660_v49, %v659_v48  ;;  %v662_v58 = vmul.f32 %v1917_v50, %v1917_v50 }
 0x125   :  { %v474_v34 = vpop.f32.mrf.mxu2 }
 0x126   :  { %v475_v53 = vadd.f32 %v474_v34, %v1905_v52  ;;  %692 = vadd.xlane.f32.xlu0 %v691_v22  ;;  %v523_v54 = vpop.f32.mrf.mxu3 }
 0x127   :  { %v575_v55 = vpop.f32.mrf.mxu0 }
 0x128   :  { %v1920_v56 = vadd.f32 %v523_v54, %v475_v53  ;;  %v624_v57 = vpop.f32.mrf.mxu1  ;;  %v576_v60 = vadd.f32 %v575_v55, %v1902_v37 }
 0x12a   :  { %v661_v59 = vmul.f32 %v1920_v56, %v1920_v56  ;;  %v1927_v63 = vadd.f32 %v624_v57, %v576_v60 }
 0x12c   :  { %v694_v61 = vadd.f32 %v662_v58, %v661_v59  ;;  %v664_v7 = vmul.f32 %v1927_v63, %v1927_v63 }
 0x12d   :  { %v477_v62 = vpop.f32.mrf.mxu2 }
 0x12e   :  { %v478_v0 = vadd.f32 %v477_v62, %v1905_v52  ;;  %695 = vadd.xlane.f32.xlu0 %v694_v61  ;;  %v526_v1 = vpop.f32.mrf.mxu3 }
 0x12f   :  { %v577_v2 = vpop.f32.mrf.mxu0 }
 0x130   :  { %v1930_v3 = vadd.f32 %v526_v1, %v478_v0  ;;  %v626_v4 = vpop.f32.mrf.mxu1  ;;  %v578_v5 = vadd.f32 %v577_v2, %v1902_v37 }
 0x132   :  { %v663_v6 = vmul.f32 %v1930_v3, %v1930_v3  ;;  %v1937_v10 = vadd.f32 %v626_v4, %v578_v5 }
 0x134   :  { %v697_v8 = vadd.f32 %v664_v7, %v663_v6  ;;  %v666_v16 = vmul.f32 %v1937_v10, %v1937_v10 }
 0x135   :  { %v479_v9 = vpop.f32.mrf.mxu2 }
 0x136   :  { %v480_v11 = vadd.f32 %v479_v9, %v1905_v52  ;;  %698 = vadd.xlane.f32.xlu1 %v697_v8  ;;  %v528_v12 = vpop.f32.mrf.mxu3 }
 0x137   :  { %v580_v13 = vpop.f32.mrf.mxu0 }
 0x138   :  { %v1940_v14 = vadd.f32 %v528_v12, %v480_v11  ;;  %v629_v15 = vpop.f32.mrf.mxu1  ;;  %v581_v18 = vadd.f32 %v580_v13, %v1902_v37 }
 0x13a   :  { %v665_v17 = vmul.f32 %v1940_v14, %v1940_v14  ;;  %v1947_v21 = vadd.f32 %v629_v15, %v581_v18 }
 0x13c   :  { %v700_v19 = vadd.f32 %v666_v16, %v665_v17  ;;  %v668_v30 = vmul.f32 %v1947_v21, %v1947_v21 }
 0x13d   :  { %v482_v20 = vpop.f32.mrf.mxu2 }
 0x13e   :  { %v483_v23 = vadd.f32 %v482_v20, %v1905_v52  ;;  %701 = vadd.xlane.f32.xlu1 %v700_v19  ;;  %v531_v24 = vpop.f32.mrf.mxu3 }
 0x13f   :  { %v582_v25 = vpop.f32.mrf.mxu0 }
 0x140   :  { %v1950_v26 = vadd.f32 %v531_v24, %v483_v23  ;;  %v631_v27 = vpop.f32.mrf.mxu1  ;;  %v583_v28 = vadd.f32 %v582_v25, %v1902_v37 }
 0x142   :  { %v667_v29 = vmul.f32 %v1950_v26, %v1950_v26  ;;  %v1957_v33 = vadd.f32 %v631_v27, %v583_v28 }
 0x144   :  { %v703_v31 = vadd.f32 %v668_v30, %v667_v29  ;;  %v670_v40 = vmul.f32 %v1957_v33, %v1957_v33 }
 0x145   :  { %v484_v32 = vpop.f32.mrf.mxu2 }
 0x146   :  { %v485_v35 = vadd.f32 %v484_v32, %v1905_v52  ;;  %704 = vadd.xlane.f32.xlu2 %v703_v31  ;;  %v533_v36 = vpop.f32.mrf.mxu3 }
 0x147   :  { %v585_v51 = vpop.f32.mrf.mxu0 }
 0x148   :  { %v1960_v38 = vadd.f32 %v533_v36, %v485_v35  ;;  %v634_v39 = vpop.f32.mrf.mxu1  ;;  %v586_v43 = vadd.f32 %v585_v51, %v1902_v37 }
 0x14a   :  { %v669_v42 = vmul.f32 %v1960_v38, %v1960_v38  ;;  %v1967_v47 = vadd.f32 %v634_v39, %v586_v43 }
 0x14c   :  { %v706_v44 = vadd.f32 %v670_v40, %v669_v42  ;;  %v672_v54 = vmul.f32 %v1967_v47, %v1967_v47 }
 0x14d   :  { %v487_v46 = vpop.f32.mrf.mxu2 }
 0x14e   :  { %v488_v48 = vadd.f32 %v487_v46, %v1905_v52  ;;  %707 = vadd.xlane.f32.xlu2 %v706_v44  ;;  %v536_v49 = vpop.f32.mrf.mxu3 }
 0x14f   :  { %v587_v22 = vpop.f32.mrf.mxu0 }
 0x150   :  { %v1970_v34 = vadd.f32 %v536_v49, %v488_v48  ;;  %v636_v53 = vpop.f32.mrf.mxu1  ;;  %v588_v57 = vadd.f32 %v587_v22, %v1902_v37 }
 0x152   :  { %v671_v55 = vmul.f32 %v1970_v34, %v1970_v34  ;;  %v1977_v60 = vadd.f32 %v636_v53, %v588_v57 }
 0x154   :  { %v709_v58 = vadd.f32 %v672_v54, %v671_v55  ;;  %v674_v4 = vmul.f32 %v1977_v60, %v1977_v60 }
 0x155   :  { %v489_v59 = vpop.f32.mrf.mxu2 }
 0x156   :  { %v490_v61 = vadd.f32 %v489_v59, %v1905_v52  ;;  %710 = vadd.xlane.f32.xlu0 %v709_v58  ;;  %v538_v62 = vpop.f32.mrf.mxu3 }
 0x157   :  { %v590_v0 = vpop.f32.mrf.mxu0 }
 0x158   :  { %v1980_v1 = vadd.f32 %v538_v62, %v490_v61  ;;  %v639_v2 = vpop.f32.mrf.mxu1  ;;  %v591_v6 = vadd.f32 %v590_v0, %v1902_v37 }
 0x15a   :  { %v673_v5 = vmul.f32 %v1980_v1, %v1980_v1  ;;  %v1987_v9 = vadd.f32 %v639_v2, %v591_v6 }
 0x15c   :  { %v712_v7 = vadd.f32 %v674_v4, %v673_v5  ;;  %v676_v17 = vmul.f32 %v1987_v9, %v1987_v9 }
 0x15d   :  { %v492_v8 = vpop.f32.mrf.mxu2 }
 0x15e   :  { %v493_v11 = vadd.f32 %v492_v8, %v1905_v52  ;;  %713 = vadd.xlane.f32.xlu1 %v712_v7  ;;  %v541_v12 = vpop.f32.mrf.mxu3 }
 0x15f   :  { %v592_v13 = vpop.f32.mrf.mxu0 }
 0x160   :  { %v1990_v15 = vadd.f32 %v541_v12, %v493_v11  ;;  %v641_v16 = vpop.f32.mrf.mxu1  ;;  %v593_v19 = vadd.f32 %v592_v13, %v1902_v37 }
 0x162   :  { %v675_v18 = vmul.f32 %v1990_v15, %v1990_v15  ;;  %v1997_v24 = vadd.f32 %v641_v16, %v593_v19 }
 0x164   :  { %v715_v20 = vadd.f32 %v676_v17, %v675_v18  ;;  %v678_v31 = vmul.f32 %v1997_v24, %v1997_v24 }
 0x165   :  { %v494_v23 = vpop.f32.mrf.mxu2 }
 0x166   :  { %v495_v25 = vadd.f32 %v494_v23, %v1905_v52  ;;  %716 = vadd.xlane.f32.xlu2 %v715_v20  ;;  %v543_v27 = vpop.f32.mrf.mxu3 }
 0x167   :  { %v595_v28 = vpop.f32.mrf.mxu0 }
 0x168   :  { %v2000_v29 = vadd.f32 %v543_v27, %v495_v25  ;;  %v644_v30 = vpop.f32.mrf.mxu1  ;;  %v596_v35 = vadd.f32 %v595_v28, %v1902_v37 }
 0x16a   :  { %v677_v32 = vmul.f32 %v2000_v29, %v2000_v29  ;;  %v2007_v39 = vadd.f32 %v644_v30, %v596_v35 }
 0x16c   :  { %v718_v36 = vadd.f32 %v678_v31, %v677_v32  ;;  %v680_v48 = vmul.f32 %v2007_v39, %v2007_v39 }
 0x16d   :  { %v497_v51 = vpop.f32.mrf.mxu2 }
 0x16e   :  { %v498_v40 = vadd.f32 %v497_v51, %v1905_v52  ;;  %719 = vadd.xlane.f32.xlu0 %v718_v36  ;;  %v546_v42 = vpop.f32.mrf.mxu3 }
 0x16f   :  { %v597_v43 = vpop.f32.mrf.mxu0 }
 0x170   :  { %v2010_v44 = vadd.f32 %v546_v42, %v498_v40  ;;  %v646_v46 = vpop.f32.mrf.mxu1  ;;  %v598_v22 = vadd.f32 %v597_v43, %v1902_v37 }
 0x172   :  { %v679_v49 = vmul.f32 %v2010_v44, %v2010_v44  ;;  %v2017_v55 = vadd.f32 %v646_v46, %v598_v22 }
 0x174   :  { %v721_v53 = vadd.f32 %v680_v48, %v679_v49  ;;  %v682_v0 = vmul.f32 %v2017_v55, %v2017_v55 }
 0x175   :  { %v499_v54 = vpop.f32.mrf.mxu2 }
 0x176   :  { %v500_v57 = vadd.f32 %v499_v54, %v1905_v52  ;;  %722 = vadd.xlane.f32.xlu1 %v721_v53  ;;  %v548_v58 = vpop.f32.mrf.mxu3 }
 0x177   :  { %v600_v59 = vpop.f32.mrf.mxu0 }
 0x178   :  { %v2020_v61 = vadd.f32 %v548_v58, %v500_v57  ;;  %v649_v62 = vpop.f32.mrf.mxu1  ;;  %v601_v4 = vadd.f32 %v600_v59, %v1902_v37 }
 0x17a   :  { %v681_v2 = vmul.f32 %v2020_v61, %v2020_v61  ;;  %v2027_v7 = vadd.f32 %v649_v62, %v601_v4 }
 0x17c   :  { %v724_v5 = vadd.f32 %v682_v0, %v681_v2  ;;  %v684_v16 = vmul.f32 %v2027_v7, %v2027_v7 }
 0x17d   :  { %v502_v6 = vpop.f32.mrf.mxu2 }
 0x17e   :  { %v503_v8 = vadd.f32 %v502_v6, %v1905_v52  ;;  %725 = vadd.xlane.f32.xlu2 %v724_v5  ;;  %v551_v11 = vpop.f32.mrf.mxu3 }
 0x17f   :  { %v602_v12 = vpop.f32.mrf.mxu0 }
 0x180   :  { %v2030_v13 = vadd.f32 %v551_v11, %v503_v8  ;;  %v603_v18 = vadd.f32 %v602_v12, %v1902_v37  ;;  %v651_v19 = vpop.f32.mrf.mxu1 }
 0x182   :  { %v683_v17 = vmul.f32 %v2030_v13, %v2030_v13  ;;  %v2037_v25 = vadd.f32 %v651_v19, %v603_v18 }
 0x184   :  { %v727_v20 = vadd.f32 %v684_v16, %v683_v17  ;;  %v686_v31 = vmul.f32 %v2037_v25, %v2037_v25 }
 0x185   :  { %v504_v23 = vpop.f32.mrf.mxu2 }
 0x186   :  { %v505_v27 = vadd.f32 %v504_v23, %v1905_v52  ;;  %728 = vadd.xlane.f32.xlu0 %v727_v20  ;;  %v553_v28 = vpop.f32.mrf.mxu3 }
 0x188   :  { %v2040_v30 = vadd.f32 %v553_v28, %v505_v27  ;;  %v654_v46 = vpop.f32.mrf.mxu1 }
 0x18a   :  { %v685_v32 = vmul.f32 %v2040_v30, %v2040_v30 }
 0x18c   :  { %v730_v35 = vadd.f32 %v686_v31, %v685_v32 }
 0x18d   :  { %v507_v36 = vpop.f32.mrf.mxu2 }
 0x18e   :  { %731 = vadd.xlane.f32.xlu1 %v730_v35  ;;  %v556_v42 = vpop.f32.mrf.mxu3  ;;  %v508_v43 = vadd.f32 %v507_v36, %v1905_v52 }
 0x190   :  { %v2048_v22 = vadd.f32 %v556_v42, %v508_v43  ;;  %v656_v12 = vpop.f32.mrf.mxu1 }
 0x192   :  { %v687_v59 = vmul.f32 %v2048_v22, %v2048_v22 }
 0x195   :  { %v509_v51 = vpop.f32.mrf.mxu2 }
 0x196   :  { %v510_v62 = vadd.f32 %v509_v51, %v1905_v52  ;;  %v558_v4 = vpop.f32.mrf.mxu3 }
 0x198   :  { %v2058_v16 = vadd.f32 %v558_v4, %v510_v62 }
 0x199   :  { %v693_v40 = vpop.xlane.xlu0 %692 }
 0x19a   :  { %1482 = vrsqrt.f32 %v693_v40  ;;  %v689_v27 = vmul.f32 %v2058_v16, %v2058_v16  ;;  %vm746_vm2 = vcmp.eq.f32.partialorder %v693_v40, inf  ;;  %v749_v32 = vand.u32 2147483648, %v693_v40 }
 0x19b   :  { %vm748_vm3 = vcmp.eq.f32.partialorder %v693_v40, 0.0 }
 0x19d   :  { %v605_v48 = vpop.f32.mrf.mxu2 }
 0x19e   :  { %v606_v49 = vadd.f32 %v605_v48, %v1902_v37 }
 0x1a0   :  { %v1483_v53 = vpop.eup %1482  ;;  %v2050_v54 = vadd.f32 %v654_v46, %v606_v49 }
 0x1a1   :  { %v740_v57 = vmul.f32 %v1483_v53, %v693_v40  ;;  %v696_v58 = vpop.xlane.xlu0 %695 }
 0x1a2   :  { %1484 = vrsqrt.f32 %v696_v58  ;;  %v688_v2 = vmul.f32 %v2050_v54, %v2050_v54  ;;  %vm758_vm4 = vcmp.eq.f32.partialorder %v696_v58, inf  ;;  %vm760_vm5 = vcmp.eq.f32.partialorder %v696_v58, 0.0 }
 0x1a3   :  { %v741_v0 = vmul.f32 %v1483_v53, %v740_v57 }
 0x1a4   :  { %v733_v8 = vadd.f32 %v688_v2, %v687_v59 }
 0x1a5   :  { %v742_v5 = vmul.f32 0.5, %v741_v0  ;;  %v607_v6 = vpop.f32.mrf.mxu2  ;;  %v761_v0 = vand.u32 2147483648, %v696_v58 }
 0x1a6   :  { %v608_v11 = vadd.f32 %v607_v6, %v1902_v37  ;;  %734 = vadd.xlane.f32.xlu2 %v733_v8 }
 0x1a7   :  { %v743_v17 = vsub.f32 1.5, %v742_v5 }
 0x1a8   :  { %v1485_v18 = vpop.eup %1484  ;;  %v2060_v19 = vadd.f32 %v656_v12, %v608_v11 }
 0x1a9   :  { %v744_v20 = vmul.f32 %v1483_v53, %v743_v17  ;;  %v752_v52 = vmul.f32 %v1485_v18, %v696_v58  ;;  %v699_v23 = vpop.xlane.xlu1 %698 }
 0x1aa   :  { %1486 = vrsqrt.f32 %v699_v23  ;;  %v690_v37 = vmul.f32 %v2060_v19, %v2060_v19  ;;  %vm770_vm8 = vcmp.eq.f32.partialorder %v699_v23, inf  ;;  %vm772_vm10 = vcmp.eq.f32.partialorder %v699_v23, 0.0 }
 0x1ab   :  { %v745_v28 = vmul.f32 %v744_v20, %v693_v40  ;;  %v753_v31 = vmul.f32 %v1485_v18, %v752_v52 }
 0x1ac   :  { %v736_v51 = vadd.f32 %v690_v37, %v689_v27 }
 0x1ad   :  { %v747_v35 = vsel %vm746_vm2, %v693_v40, %v745_v28  ;;  %v754_v36 = vmul.f32 0.5, %v753_v31 }
 0x1ae   :  { %v750_v42 = vsel %vm748_vm3, %v749_v32, %v747_v35  ;;  %737 = vadd.xlane.f32.xlu0 %v736_v51 }
 0x1af   :  { %v931_v43 = vadd.f32 1e-07, %v750_v42  ;;  %v755_v46 = vsub.f32 1.5, %v754_v36  ;;  %v773_v36 = vand.u32 2147483648, %v699_v23 }
 0x1b0   :  { %v1487_v48 = vpop.eup %1486 }
 0x1b1   :  { %1488 = vrcp.f32 %v931_v43  ;;  %v2066_v49 = vpop.xlane.xlu1 %701  ;;  %v756_v53 = vmul.f32 %v1485_v18, %v755_v46  ;;  %v764_v57 = vmul.f32 %v1487_v48, %v699_v23  ;;  %v958_v52 = vand.u32 2147483648, %v931_v43 }
 0x1b2   :  { %1490 = vrsqrt.f32 %v2066_v49  ;;  %v956_v31 = vand.u32 2147483647, %v931_v43  ;;  %vm952_vm7 = vweird.f32 %v931_v43  ;;  %vm782_vm12 = vcmp.eq.f32.partialorder %v2066_v49, inf }
 0x1b3   :  { %v757_v59 = vmul.f32 %v756_v53, %v696_v58  ;;  %v765_v62 = vmul.f32 %v1487_v48, %v764_v57  ;;  %v959_v51 = vor.u32 1.1754944e-38, %v958_v52  ;;  %vm784_vm14 = vcmp.eq.f32.partialorder %v2066_v49, 0.0 }
 0x1b4   :  { %vm957_vm11 = vcmp.eq.f32.partialorder %v956_v31, 8.507059e+37 }
 0x1b5   :  { %v759_v2 = vsel %vm758_vm4, %v696_v58, %v757_v59  ;;  %v766_v40 = vmul.f32 0.5, %v765_v62 }
 0x1b6   :  { %v762_v5 = vsel %vm760_vm5, %v761_v0, %v759_v2 }
 0x1b7   :  { %v1489_v4 = vpop.eup %1488  ;;  %v2069_v11 = vadd.f32 1e-07, %v762_v5  ;;  %v767_v12 = vsub.f32 1.5, %v766_v40 }
 0x1b8   :  { %v1491_v6 = vpop.eup %1490  ;;  %v948_v8 = vmul.f32 %v1489_v4, %v931_v43  ;;  %vm953_vm6 = vweird.f32 %v1489_v4 }
 0x1b9   :  { %v776_v17 = vmul.f32 %v1491_v6, %v2066_v49  ;;  %v2072_v18 = vpop.xlane.xlu2 %704  ;;  %1492 = vrcp.f32 %v2069_v11  ;;  %v768_v27 = vmul.f32 %v1487_v48, %v767_v12  ;;  %vm954_vm9 = vmor %vm952_vm7, %vm953_vm6  ;;  %vm968_vm15 = vweird.f32 %v2069_v11 }
 0x1ba   :  { %v949_v20 = vsub.f32 1.0, %v948_v8  ;;  %1494 = vrsqrt.f32 %v2072_v18  ;;  %vm794_vm3 = vcmp.eq.f32.partialorder %v2072_v18, inf  ;;  %vm796_vm4 = vcmp.eq.f32.partialorder %v2072_v18, 0.0 }
 0x1bb   :  { %v777_v28 = vmul.f32 %v1491_v6, %v776_v17  ;;  %v769_v37 = vmul.f32 %v768_v27, %v699_v23 }
 0x1bc   :  { %v950_v58 = vmul.f32 %v1489_v4, %v949_v20 }
 0x1bd   :  { %v778_v32 = vmul.f32 0.5, %v777_v28  ;;  %v771_v42 = vsel %vm770_vm8, %v699_v23, %v769_v37 }
 0x1be   :  { %v951_v35 = vadd.f32 %v1489_v4, %v950_v58  ;;  %v774_v48 = vsel %vm772_vm10, %v773_v36, %v771_v42 }
 0x1bf   :  { %v779_v46 = vsub.f32 1.5, %v778_v32  ;;  %v1493_v53 = vpop.eup %1492  ;;  %v933_v2 = vadd.f32 1e-07, %v774_v48 }
 0x1c0   :  { %v955_v57 = vsel %vm954_vm9, %v1489_v4, %v951_v35  ;;  %v1495_v59 = vpop.eup %1494  ;;  %v964_v0 = vmul.f32 %v1493_v53, %v2069_v11  ;;  %v974_v4 = vand.u32 2147483648, %v2069_v11  ;;  %vm969_vm13 = vweird.f32 %v1493_v53 }
 0x1c1   :  { %v960_v62 = vsel %vm957_vm11, %v959_v51, %v955_v57  ;;  %v2077_v40 = vpop.xlane.xlu2 %707  ;;  %v780_v8 = vmul.f32 %v1491_v6, %v779_v46  ;;  %v788_v12 = vmul.f32 %v1495_v59, %v2072_v18  ;;  %1496 = vrcp.f32 %v933_v2  ;;  %vm970_vm0 = vmor %vm968_vm15, %vm969_vm13 }
 0x1c2   :  { %v961_v43 = vmul.f32 %v960_v62, %v1910_v45  ;;  %v962_v5 = vmul.f32 %v960_v62, %v1907_v41  ;;  %v965_v23 = vsub.f32 1.0, %v964_v0  ;;  %1498 = vrsqrt.f32 %v2077_v40 }
 0x1c3   :  { %v781_v17 = vmul.f32 %v780_v8, %v2066_v49  ;;  %v789_v20 = vmul.f32 %v1495_v59, %v788_v12  ;;  %v972_v41 = vand.u32 2147483647, %v2069_v11  ;;  %v785_v45 = vand.u32 2147483648, %v2066_v49 }
 0x1c4   :  { %1203 = vst [vmem:[#allocation2] sm:$0xff] %v961_v43  ;;  %v966_v52 = vmul.f32 %v1493_v53, %v965_v23  ;;  %v975_v31 = vor.u32 1.1754944e-38, %v974_v4  ;;  %v988_v43 = vand.u32 2147483647, %v933_v2  ;;  %vm984_vm5 = vweird.f32 %v933_v2 }
 0x1c5   :  { %1204 = vst [vmem:[#allocation2 + $0x8] sm:$0xff] %v962_v5  ;;  %v783_v6 = vsel %vm782_vm12, %v2066_v49, %v781_v17  ;;  %v790_v27 = vmul.f32 0.5, %v789_v20  ;;  %vm973_vm1 = vcmp.eq.f32.partialorder %v972_v41, 8.507059e+37  ;;  %v990_v5 = vand.u32 2147483648, %v933_v2 }
 0x1c6   :  { %v967_v28 = vadd.f32 %v1493_v53, %v966_v52  ;;  %v786_v58 = vsel %vm784_vm14, %v785_v45, %v783_v6  ;;  %vm989_vm7 = vcmp.eq.f32.partialorder %v988_v43, 8.507059e+37  ;;  %vm806_vm10 = vcmp.eq.f32.partialorder %v2077_v40, inf }
 0x1c7   :  { %v2091_v37 = vadd.f32 1e-07, %v786_v58  ;;  %v791_v32 = vsub.f32 1.5, %v790_v27  ;;  %v1497_v35 = vpop.eup %1496  ;;  %v991_v17 = vor.u32 1.1754944e-38, %v990_v5  ;;  %vm808_vm12 = vcmp.eq.f32.partialorder %v2077_v40, 0.0 }
 0x1c8   :  { %v971_v36 = vsel %vm970_vm0, %v1493_v53, %v967_v28  ;;  %v1499_v51 = vpop.eup %1498  ;;  %v980_v46 = vmul.f32 %v1497_v35, %v933_v2  ;;  %vm985_vm2 = vweird.f32 %v1497_v35 }
 0x1c9   :  { %v976_v42 = vsel %vm973_vm1, %v975_v31, %v971_v36  ;;  %1500 = vrcp.f32 %v2091_v37  ;;  %v2094_v57 = vpop.xlane.xlu0 %710  ;;  %v792_v62 = vmul.f32 %v1495_v59, %v791_v32  ;;  %v800_v0 = vmul.f32 %v1499_v51, %v2077_v40  ;;  %vm986_vm6 = vmor %vm984_vm5, %vm985_vm2 }
 0x1ca   :  { %v977_v49 = vmul.f32 %v976_v42, %v1920_v56  ;;  %v978_v11 = vmul.f32 %v976_v42, %v1917_v50  ;;  %v981_v48 = vsub.f32 1.0, %v980_v46  ;;  %1502 = vrsqrt.f32 %v2094_v57 }
 0x1cb   :  { %v793_v8 = vmul.f32 %v792_v62, %v2072_v18  ;;  %v801_v12 = vmul.f32 %v1499_v51, %v800_v0  ;;  %v797_v50 = vand.u32 2147483648, %v2072_v18  ;;  %v1006_v32 = vand.u32 2147483648, %v2091_v37 }
 0x1cc   :  { %1205 = vst [vmem:[#allocation2 + $0x10] sm:$0xff] %v977_v49  ;;  %v982_v53 = vmul.f32 %v1497_v35, %v981_v48  ;;  %vm1000_vm9 = vweird.f32 %v2091_v37  ;;  %v809_v48 = vand.u32 2147483648, %v2077_v40  ;;  %vm818_vm0 = vcmp.eq.f32.partialorder %v2094_v57, inf }
 0x1cd   :  { %1206 = vst [vmem:[#allocation2 + $0x18] sm:$0xff] %v978_v11  ;;  %v795_v23 = vsel %vm794_vm3, %v2072_v18, %v793_v8  ;;  %v802_v4 = vmul.f32 0.5, %v801_v12  ;;  %v1007_v11 = vor.u32 1.1754944e-38, %v1006_v32  ;;  %vm820_vm1 = vcmp.eq.f32.partialorder %v2094_v57, 0.0 }
 0x1ce   :  { %v983_v59 = vadd.f32 %v1497_v35, %v982_v53  ;;  %v798_v52 = vsel %vm796_vm4, %v797_v50, %v795_v23 }
 0x1cf   :  { %v1501_v56 = vpop.eup %1500  ;;  %v2108_v6 = vadd.f32 1e-07, %v798_v52  ;;  %v803_v27 = vsub.f32 1.5, %v802_v4 }
 0x1d0   :  { %v996_v20 = vmul.f32 %v1501_v56, %v2091_v37  ;;  %v987_v45 = vsel %vm986_vm6, %v1497_v35, %v983_v59  ;;  %v1503_v28 = vpop.eup %1502  ;;  %vm1001_vm8 = vweird.f32 %v1501_v56  ;;  %v1004_v35 = vand.u32 2147483647, %v2091_v37 }
 0x1d1   :  { %v2106_v41 = vpop.xlane.xlu1 %713  ;;  %v992_v58 = vsel %vm989_vm7, %v991_v17, %v987_v45  ;;  %v804_v42 = vmul.f32 %v1499_v51, %v803_v27  ;;  %v812_v46 = vmul.f32 %v1503_v28, %v2094_v57  ;;  %vm1002_vm11 = vmor %vm1000_vm9, %vm1001_vm8  ;;  %v1022_v52 = vand.u32 2147483648, %v2108_v6 }
 0x1d2   :  { %1504 = vrsqrt.f32 %v2106_v41  ;;  %v997_v2 = vsub.f32 1.0, %v996_v20  ;;  %v993_v18 = vmul.f32 %v992_v58, %v1930_v3  ;;  %v994_v31 = vmul.f32 %v992_v58, %v1927_v63 }
 0x1d3   :  { %1506 = vrcp.f32 %v2108_v6  ;;  %v805_v3 = vmul.f32 %v804_v42, %v2077_v40  ;;  %v813_v62 = vmul.f32 %v1503_v28, %v812_v46  ;;  %vm1005_vm13 = vcmp.eq.f32.partialorder %v1004_v35, 8.507059e+37 }
 0x1d4   :  { %v998_v36 = vmul.f32 %v1501_v56, %v997_v2  ;;  %1207 = vst [vmem:[#allocation2 + $0x20] sm:$0xff] %v993_v18  ;;  %v1020_v20 = vand.u32 2147483647, %v2108_v6  ;;  %vm1016_vm15 = vweird.f32 %v2108_v6  ;;  %vm830_vm4 = vcmp.eq.f32.partialorder %v2106_v41, inf }
 0x1d5   :  { %1208 = vst [vmem:[#allocation2 + $0x28] sm:$0xff] %v994_v31  ;;  %v807_v0 = vsel %vm806_vm10, %v2077_v40, %v805_v3  ;;  %v814_v12 = vmul.f32 0.5, %v813_v62  ;;  %vm832_vm5 = vcmp.eq.f32.partialorder %v2106_v41, 0.0 }
 0x1d6   :  { %v999_v49 = vadd.f32 %v1501_v56, %v998_v36  ;;  %v810_v8 = vsel %vm808_vm12, %v809_v48, %v807_v0  ;;  %vm1021_vm3 = vcmp.eq.f32.partialorder %v1020_v20, 8.507059e+37  ;;  %v1023_v36 = vor.u32 1.1754944e-38, %v1022_v52 }
 0x1d7   :  { %v815_v4 = vsub.f32 1.5, %v814_v12 }
 0x1d8   :  { %v1505_v63 = vpop.eup %1504  ;;  %v1003_v51 = vsel %vm1002_vm11, %v1501_v56, %v999_v49  ;;  %v2130_v56 = vadd.f32 1e-07, %v810_v8 }
 0x1d9   :  { %v824_v43 = vmul.f32 %v1505_v63, %v2106_v41  ;;  %v2124_v5 = vpop.xlane.xlu2 %716  ;;  %v1507_v37 = vpop.eup %1506  ;;  %v1008_v53 = vsel %vm1005_vm13, %v1007_v11, %v1003_v51 }
 0x1da   :  { %1508 = vrsqrt.f32 %v2124_v5  ;;  %v1009_v50 = vmul.f32 %v1008_v53, %v1940_v14  ;;  %v1010_v59 = vmul.f32 %v1008_v53, %v1937_v10  ;;  %v1012_v23 = vmul.f32 %v1507_v37, %v2108_v6 }
 0x1db   :  { %v825_v40 = vmul.f32 %v1505_v63, %v824_v43  ;;  %1510 = vrcp.f32 %v2130_v56  ;;  %vm1017_vm14 = vweird.f32 %v1507_v37  ;;  %v816_v14 = vmul.f32 %v1503_v28, %v815_v4 }
 0x1dc   :  { %1209 = vst [vmem:[#allocation2 + $0x30] sm:$0xff] %v1009_v50  ;;  %v1013_v17 = vsub.f32 1.0, %v1012_v23  ;;  %vm1018_vm2 = vmor %vm1016_vm15, %vm1017_vm14  ;;  %v821_v28 = vand.u32 2147483648, %v2094_v57  ;;  %vm1032_vm7 = vweird.f32 %v2130_v56  ;;  %vm842_vm10 = vcmp.eq.f32.partialorder %v2124_v5, inf }
 0x1dd   :  { %1210 = vst [vmem:[#allocation2 + $0x38] sm:$0xff] %v1010_v59  ;;  %v826_v27 = vmul.f32 0.5, %v825_v40  ;;  %v817_v2 = vmul.f32 %v816_v14, %v2094_v57  ;;  %vm844_vm11 = vcmp.eq.f32.partialorder %v2124_v5, 0.0 }
 0x1de   :  { %v1014_v45 = vmul.f32 %v1507_v37, %v1013_v17 }
 0x1df   :  { %v827_v18 = vsub.f32 1.5, %v826_v27  ;;  %v819_v35 = vsel %vm818_vm0, %v2094_v57, %v817_v2  ;;  %v833_v57 = vand.u32 2147483648, %v2106_v41 }
 0x1e0   :  { %v1509_v10 = vpop.eup %1508  ;;  %v1015_v58 = vadd.f32 %v1507_v37, %v1014_v45  ;;  %v822_v11 = vsel %vm820_vm1, %v821_v28, %v819_v35 }
 0x1e1   :  { %v836_v31 = vmul.f32 %v1509_v10, %v2124_v5  ;;  %v2140_v32 = vpop.xlane.xlu0 %719  ;;  %v828_v42 = vmul.f32 %v1505_v63, %v827_v18  ;;  %v1511_v49 = vpop.eup %1510  ;;  %v2150_v0 = vadd.f32 1e-07, %v822_v11 }
 0x1e2   :  { %1512 = vrsqrt.f32 %v2140_v32  ;;  %v1019_v6 = vsel %vm1018_vm2, %v1507_v37, %v1015_v58  ;;  %v1028_v51 = vmul.f32 %v1511_v49, %v2130_v56  ;;  %vm1033_vm6 = vweird.f32 %v1511_v49 }
 0x1e3   :  { %v837_v46 = vmul.f32 %v1509_v10, %v836_v31  ;;  %v1024_v3 = vsel %vm1021_vm3, %v1023_v36, %v1019_v6  ;;  %v829_v43 = vmul.f32 %v828_v42, %v2106_v41  ;;  %1514 = vrcp.f32 %v2150_v0  ;;  %vm1034_vm8 = vmor %vm1032_vm7, %vm1033_vm6 }
 0x1e4   :  { %v1025_v48 = vmul.f32 %v1024_v3, %v1950_v26  ;;  %v1026_v62 = vmul.f32 %v1024_v3, %v1947_v21  ;;  %v1029_v53 = vsub.f32 1.0, %v1028_v51  ;;  %v1036_v21 = vand.u32 2147483647, %v2130_v56 }
 0x1e5   :  { %v838_v37 = vmul.f32 0.5, %v837_v46  ;;  %v1038_v26 = vand.u32 2147483648, %v2130_v56  ;;  %v831_v12 = vsel %vm830_vm4, %v2106_v41, %v829_v43  ;;  %v845_v31 = vand.u32 2147483648, %v2124_v5 }
 0x1e6   :  { %1211 = vst [vmem:[#allocation2 + $0x40] sm:$0xff] %v1025_v48  ;;  %v1030_v8 = vmul.f32 %v1511_v49, %v1029_v53  ;;  %v834_v4 = vsel %vm832_vm5, %v833_v57, %v831_v12  ;;  %vm1037_vm9 = vcmp.eq.f32.partialorder %v1036_v21, 8.507059e+37  ;;  %v1052_v42 = vand.u32 2147483647, %v2150_v0 }
 0x1e7   :  { %1212 = vst [vmem:[#allocation2 + $0x48] sm:$0xff] %v1026_v62  ;;  %v839_v50 = vsub.f32 1.5, %v838_v37  ;;  %v2165_v17 = vadd.f32 1e-07, %v834_v4  ;;  %v1039_v45 = vor.u32 1.1754944e-38, %v1038_v26  ;;  %vm854_vm13 = vcmp.eq.f32.partialorder %v2140_v32, inf }
 0x1e8   :  { %v1513_v63 = vpop.eup %1512  ;;  %v1031_v40 = vadd.f32 %v1511_v49, %v1030_v8  ;;  %vm856_vm14 = vcmp.eq.f32.partialorder %v2140_v32, 0.0  ;;  %v857_v43 = vand.u32 2147483648, %v2140_v32  ;;  %vm1048_vm15 = vweird.f32 %v2150_v0 }
 0x1e9   :  { %v848_v59 = vmul.f32 %v1513_v63, %v2140_v32  ;;  %v2161_v23 = vpop.xlane.xlu1 %722  ;;  %v840_v20 = vmul.f32 %v1509_v10, %v839_v50  ;;  %v1515_v41 = vpop.eup %1514  ;;  %vm1053_vm0 = vcmp.eq.f32.partialorder %v1052_v42, 8.507059e+37  ;;  %v1068_v21 = vand.u32 2147483647, %v2165_v17 }
 0x1ea   :  { %1516 = vrsqrt.f32 %v2161_v23  ;;  %v1035_v14 = vsel %vm1034_vm8, %v1511_v49, %v1031_v40  ;;  %v1044_v10 = vmul.f32 %v1515_v41, %v2150_v0  ;;  %vm1049_vm12 = vweird.f32 %v1515_v41 }
 0x1eb   :  { %v849_v52 = vmul.f32 %v1513_v63, %v848_v59  ;;  %1518 = vrcp.f32 %v2165_v17  ;;  %v1040_v27 = vsel %vm1037_vm9, %v1039_v45, %v1035_v14  ;;  %v841_v58 = vmul.f32 %v840_v20, %v2124_v5  ;;  %vm1050_vm1 = vmor %vm1048_vm15, %vm1049_vm12 }
 0x1ec   :  { %v1041_v2 = vmul.f32 %v1040_v27, %v1960_v38  ;;  %v1042_v18 = vmul.f32 %v1040_v27, %v1957_v33  ;;  %v1045_v35 = vsub.f32 1.0, %v1044_v10  ;;  %v1054_v33 = vand.u32 2147483648, %v2150_v0 }
 0x1ed   :  { %v850_v56 = vmul.f32 0.5, %v849_v52  ;;  %v843_v28 = vsel %vm842_vm10, %v2124_v5, %v841_v58  ;;  %v1070_v12 = vand.u32 2147483648, %v2165_v17  ;;  %vm1064_vm3 = vweird.f32 %v2165_v17 }
 0x1ee   :  { %1213 = vst [vmem:[#allocation2 + $0x50] sm:$0xff] %v1041_v2  ;;  %v846_v46 = vsel %vm844_vm11, %v845_v31, %v843_v28  ;;  %v1046_v5 = vmul.f32 %v1515_v41, %v1045_v35  ;;  %v1055_v57 = vor.u32 1.1754944e-38, %v1054_v33  ;;  %vm866_vm5 = vcmp.eq.f32.partialorder %v2161_v23, inf }
 0x1ef   :  { %v851_v6 = vsub.f32 1.5, %v850_v56  ;;  %1214 = vst [vmem:[#allocation2 + $0x58] sm:$0xff] %v1042_v18  ;;  %v2182_v3 = vadd.f32 1e-07, %v846_v46  ;;  %vm1069_vm6 = vcmp.eq.f32.partialorder %v1068_v21, 8.507059e+37  ;;  %vm868_vm7 = vcmp.eq.f32.partialorder %v2161_v23, 0.0 }
 0x1f0   :  { %v1517_v36 = vpop.eup %1516  ;;  %v1047_v37 = vadd.f32 %v1515_v41, %v1046_v5  ;;  %v869_v31 = vand.u32 2147483648, %v2161_v23 }
 0x1f1   :  { %v860_v49 = vmul.f32 %v1517_v36, %v2161_v23  ;;  %v2179_v38 = vpop.xlane.xlu2 %725  ;;  %v852_v11 = vmul.f32 %v1513_v63, %v851_v6  ;;  %v1519_v48 = vpop.eup %1518  ;;  %v1084_v35 = vand.u32 2147483647, %v2182_v3  ;;  %v1086_v42 = vand.u32 2147483648, %v2182_v3 }
 0x1f2   :  { %1520 = vrsqrt.f32 %v2179_v38  ;;  %v1060_v51 = vmul.f32 %v1519_v48, %v2165_v17  ;;  %v1051_v8 = vsel %vm1050_vm1, %v1515_v41, %v1047_v37  ;;  %vm1065_vm2 = vweird.f32 %v1519_v48 }
 0x1f3   :  { %v861_v62 = vmul.f32 %v1517_v36, %v860_v49  ;;  %1522 = vrcp.f32 %v2182_v3  ;;  %v853_v53 = vmul.f32 %v852_v11, %v2140_v32  ;;  %v1056_v4 = vsel %vm1053_vm0, %v1055_v57, %v1051_v8  ;;  %vm1066_vm4 = vmor %vm1064_vm3, %vm1065_vm2 }
 0x1f4   :  { %v1061_v63 = vsub.f32 1.0, %v1060_v51  ;;  %v1057_v52 = vmul.f32 %v1056_v4, %v1970_v34  ;;  %v1058_v45 = vmul.f32 %v1056_v4, %v1967_v47  ;;  %vm1080_vm9 = vweird.f32 %v2182_v3 }
 0x1f5   :  { %v862_v26 = vmul.f32 0.5, %v861_v62  ;;  %v855_v50 = vsel %vm854_vm13, %v2140_v32, %v853_v53  ;;  %v1071_v32 = vor.u32 1.1754944e-38, %v1070_v12  ;;  %v1087_v37 = vor.u32 1.1754944e-38, %v1086_v42 }
 0x1f6   :  { %v1062_v0 = vmul.f32 %v1519_v48, %v1061_v63  ;;  %v858_v40 = vsel %vm856_vm14, %v857_v43, %v855_v50  ;;  %1215 = vst [vmem:[#allocation2 + $0x60] sm:$0xff] %v1057_v52  ;;  %vm1085_vm11 = vcmp.eq.f32.partialorder %v1084_v35, 8.507059e+37  ;;  %vm878_vm13 = vcmp.eq.f32.partialorder %v2179_v38, inf }
 0x1f7   :  { %v863_v20 = vsub.f32 1.5, %v862_v26  ;;  %v2201_v14 = vadd.f32 1e-07, %v858_v40  ;;  %1216 = vst [vmem:[#allocation2 + $0x68] sm:$0xff] %v1058_v45  ;;  %v881_v40 = vand.u32 2147483648, %v2179_v38  ;;  %vm880_vm15 = vcmp.eq.f32.partialorder %v2179_v38, 0.0 }
 0x1f8   :  { %v1521_v59 = vpop.eup %1520  ;;  %v1063_v56 = vadd.f32 %v1519_v48, %v1062_v0 }
 0x1f9   :  { %v872_v41 = vmul.f32 %v1521_v59, %v2179_v38  ;;  %v2204_v27 = vpop.xlane.xlu0 %728  ;;  %v1523_v58 = vpop.eup %1522  ;;  %v864_v2 = vmul.f32 %v1517_v36, %v863_v20  ;;  %v1102_v8 = vand.u32 2147483648, %v2201_v14  ;;  %v1100_v4 = vand.u32 2147483647, %v2201_v14 }
 0x1fa   :  { %1524 = vrsqrt.f32 %v2204_v27  ;;  %v1076_v34 = vmul.f32 %v1523_v58, %v2182_v3  ;;  %v1067_v47 = vsel %vm1066_vm4, %v1519_v48, %v1063_v56  ;;  %vm1081_vm8 = vweird.f32 %v1523_v58 }
 0x1fb   :  { %1526 = vrcp.f32 %v2201_v14  ;;  %v865_v18 = vmul.f32 %v864_v2, %v2161_v23  ;;  %v1072_v17 = vsel %vm1069_vm6, %v1071_v32, %v1067_v47  ;;  %v873_v36 = vmul.f32 %v1521_v59, %v872_v41  ;;  %vm1082_vm10 = vmor %vm1080_vm9, %vm1081_vm8 }
 0x1fc   :  { %v1077_v10 = vsub.f32 1.0, %v1076_v34  ;;  %v1073_v28 = vmul.f32 %v1072_v17, %v1980_v1  ;;  %v1074_v6 = vmul.f32 %v1072_v17, %v1977_v60  ;;  %vm1096_vm14 = vweird.f32 %v2201_v14 }
 0x1fd   :  { %v867_v49 = vsel %vm866_vm5, %v2161_v23, %v865_v18  ;;  %v874_v33 = vmul.f32 0.5, %v873_v36  ;;  %v1103_v45 = vor.u32 1.1754944e-38, %v1102_v8  ;;  %vm1101_vm1 = vcmp.eq.f32.partialorder %v1100_v4, 8.507059e+37 }
 0x1fe   :  { %v1078_v46 = vmul.f32 %v1523_v58, %v1077_v10  ;;  %1217 = vst [vmem:[#allocation2 + $0x70] sm:$0xff] %v1073_v28  ;;  %v870_v1 = vsel %vm868_vm7, %v869_v31, %v867_v49  ;;  %vm890_vm2 = vcmp.eq.f32.partialorder %v2204_v27, inf  ;;  %v893_v28 = vand.u32 2147483648, %v2204_v27 }
 0x1ff   :  { %1218 = vst [vmem:[#allocation2 + $0x78] sm:$0xff] %v1074_v6  ;;  %v2225_v5 = vadd.f32 1e-07, %v870_v1  ;;  %v875_v62 = vsub.f32 1.5, %v874_v33  ;;  %vm892_vm4 = vcmp.eq.f32.partialorder %v2204_v27, 0.0 }
 0x200   :  { %v1525_v11 = vpop.eup %1524  ;;  %v1079_v60 = vadd.f32 %v1523_v58, %v1078_v46 }
 0x201   :  { %v1527_v48 = vpop.eup %1526  ;;  %v884_v51 = vmul.f32 %v1525_v11, %v2204_v27  ;;  %v2228_v43 = vpop.xlane.xlu1 %731  ;;  %v876_v63 = vmul.f32 %v1521_v59, %v875_v62  ;;  %v1118_v31 = vand.u32 2147483648, %v2225_v5  ;;  %v1116_v35 = vand.u32 2147483647, %v2225_v5 }
 0x202   :  { %v1092_v53 = vmul.f32 %v1527_v48, %v2201_v14  ;;  %1528 = vrsqrt.f32 %v2228_v43  ;;  %v1083_v3 = vsel %vm1082_vm10, %v1523_v58, %v1079_v60  ;;  %vm1097_vm12 = vweird.f32 %v1527_v48 }
 0x203   :  { %1530 = vrcp.f32 %v2225_v5  ;;  %v1088_v23 = vsel %vm1085_vm11, %v1087_v37, %v1083_v3  ;;  %v885_v12 = vmul.f32 %v1525_v11, %v884_v51  ;;  %v877_v0 = vmul.f32 %v876_v63, %v2179_v38  ;;  %vm1098_vm0 = vmor %vm1096_vm14, %vm1097_vm12 }
 0x204   :  { %v1093_v57 = vsub.f32 1.0, %v1092_v53  ;;  %v1089_v21 = vmul.f32 %v1088_v23, %v1990_v15  ;;  %v1090_v26 = vmul.f32 %v1088_v23, %v1987_v9  ;;  %vm1112_vm5 = vweird.f32 %v2225_v5 }
 0x205   :  { %v886_v20 = vmul.f32 0.5, %v885_v12  ;;  %v879_v9 = vsel %vm878_vm13, %v2179_v38, %v877_v0  ;;  %v1119_v33 = vor.u32 1.1754944e-38, %v1118_v31  ;;  %vm1117_vm7 = vcmp.eq.f32.partialorder %v1116_v35, 8.507059e+37 }
 0x206   :  { %v1094_v50 = vmul.f32 %v1527_v48, %v1093_v57  ;;  %1219 = vst [vmem:[#allocation2 + $0x80] sm:$0xff] %v1089_v21  ;;  %v882_v41 = vsel %vm880_vm15, %v881_v40, %v879_v9  ;;  %vm902_vm8 = vcmp.eq.f32.partialorder %v2228_v43, inf  ;;  %vm904_vm9 = vcmp.eq.f32.partialorder %v2228_v43, 0.0 }
 0x207   :  { %1220 = vst [vmem:[#allocation2 + $0x88] sm:$0xff] %v1090_v26  ;;  %v887_v58 = vsub.f32 1.5, %v886_v20  ;;  %v942_v34 = vadd.f32 1e-07, %v882_v41  ;;  %v905_v23 = vand.u32 2147483648, %v2228_v43 }
 0x208   :  { %v1529_v59 = vpop.eup %1528  ;;  %v1095_v15 = vadd.f32 %v1527_v48, %v1094_v50 }
 0x209   :  { %v1531_v52 = vpop.eup %1530  ;;  %v896_v56 = vmul.f32 %v1529_v59, %v2228_v43  ;;  %v888_v18 = vmul.f32 %v1525_v11, %v887_v58  ;;  %1532 = vrcp.f32 %v942_v34  ;;  %v1132_v63 = vand.u32 2147483647, %v942_v34 }
 0x20a   :  { %v1099_v2 = vsel %vm1098_vm0, %v1527_v48, %v1095_v15  ;;  %v1108_v32 = vmul.f32 %v1531_v52, %v2225_v5  ;;  %vm1113_vm3 = vweird.f32 %v1531_v52  ;;  %v1134_v5 = vand.u32 2147483648, %v942_v34 }
 0x20b   :  { %v1104_v47 = vsel %vm1101_vm1, %v1103_v45, %v1099_v2  ;;  %v897_v17 = vmul.f32 %v1529_v59, %v896_v56  ;;  %v889_v36 = vmul.f32 %v888_v18, %v2204_v27  ;;  %vm1114_vm6 = vmor %vm1112_vm5, %vm1113_vm3  ;;  %vm1128_vm11 = vweird.f32 %v942_v34 }
 0x20c   :  { %v1105_v14 = vmul.f32 %v1104_v47, %v2000_v29  ;;  %v1106_v10 = vmul.f32 %v1104_v47, %v1997_v24  ;;  %v1109_v38 = vsub.f32 1.0, %v1108_v32  ;;  %v1135_v12 = vor.u32 1.1754944e-38, %v1134_v5 }
 0x20d   :  { %v898_v42 = vmul.f32 0.5, %v897_v17  ;;  %v891_v29 = vsel %vm890_vm2, %v2204_v27, %v889_v36  ;;  %vm1133_vm13 = vcmp.eq.f32.partialorder %v1132_v63, 8.507059e+37 }
 0x20e   :  { %1221 = vst [vmem:[#allocation2 + $0x90] sm:$0xff] %v1105_v14  ;;  %v1110_v6 = vmul.f32 %v1531_v52, %v1109_v38  ;;  %v894_v46 = vsel %vm892_vm4, %v893_v28, %v891_v29 }
 0x20f   :  { %1222 = vst [vmem:[#allocation2 + $0x98] sm:$0xff] %v1106_v10  ;;  %v899_v49 = vsub.f32 1.5, %v898_v42  ;;  %v943_v11 = vadd.f32 1e-07, %v894_v46  ;;  %v1533_v1 = vpop.eup %1532 }
 0x210   :  { %v1111_v24 = vadd.f32 %v1531_v52, %v1110_v6  ;;  %v1124_v51 = vmul.f32 %v1533_v1, %v942_v34  ;;  %vm1129_vm10 = vweird.f32 %v1533_v1 }
 0x211   :  { %v900_v60 = vmul.f32 %v1529_v59, %v899_v49  ;;  %1534 = vrcp.f32 %v943_v11  ;;  %vm1130_vm12 = vmor %vm1128_vm11, %vm1129_vm10  ;;  %v1150_v15 = vand.u32 2147483648, %v943_v11  ;;  %vm1144_vm15 = vweird.f32 %v943_v11 }
 0x212   :  { %v1115_v48 = vsel %vm1114_vm6, %v1531_v52, %v1111_v24  ;;  %v1125_v27 = vsub.f32 1.0, %v1124_v51  ;;  %v1148_v52 = vand.u32 2147483647, %v943_v11 }
 0x213   :  { %v1120_v62 = vsel %vm1117_vm7, %v1119_v33, %v1115_v48  ;;  %v901_v3 = vmul.f32 %v900_v60, %v2228_v43  ;;  %v1151_v58 = vor.u32 1.1754944e-38, %v1150_v15 }
 0x214   :  { %v1121_v37 = vmul.f32 %v1120_v62, %v2010_v44  ;;  %v1122_v53 = vmul.f32 %v1120_v62, %v2007_v39  ;;  %v1126_v57 = vmul.f32 %v1533_v1, %v1125_v27  ;;  %vm1149_vm1 = vcmp.eq.f32.partialorder %v1148_v52, 8.507059e+37 }
 0x215   :  { %v903_v21 = vsel %vm902_vm8, %v2228_v43, %v901_v3 }
 0x216   :  { %1223 = vst [vmem:[#allocation2 + $0xa0] sm:$0xff] %v1121_v37  ;;  %v906_v44 = vsel %vm904_vm9, %v905_v23, %v903_v21  ;;  %v1127_v39 = vadd.f32 %v1533_v1, %v1126_v57 }
 0x217   :  { %1224 = vst [vmem:[#allocation2 + $0xa8] sm:$0xff] %v1122_v53  ;;  %v1535_v26 = vpop.eup %1534  ;;  %v944_v8 = vadd.f32 1e-07, %v906_v44 }
 0x218   :  { %v1140_v50 = vmul.f32 %v1535_v26, %v943_v11  ;;  %v1131_v0 = vsel %vm1130_vm12, %v1533_v1, %v1127_v39  ;;  %vm1145_vm14 = vweird.f32 %v1535_v26 }
 0x219   :  { %v2262_v4 = vpop.xlane.xlu2 %734  ;;  %1536 = vrcp.f32 %v944_v8  ;;  %v1136_v40 = vsel %vm1133_vm13, %v1135_v12, %v1131_v0  ;;  %vm1146_vm0 = vmor %vm1144_vm15, %vm1145_vm14  ;;  %v1166_v14 = vand.u32 2147483648, %v944_v8  ;;  %v1164_v31 = vand.u32 2147483647, %v944_v8 }
 0x21a   :  { %v1141_v20 = vsub.f32 1.0, %v1140_v50  ;;  %1538 = vrsqrt.f32 %v2262_v4  ;;  %v1137_v59 = vmul.f32 %v1136_v40, %v2020_v61  ;;  %v1138_v43 = vmul.f32 %v1136_v40, %v2017_v55 }
 0x21b   :  { %vm1160_vm3 = vweird.f32 %v944_v8  ;;  %v1167_v35 = vor.u32 1.1754944e-38, %v1166_v14  ;;  %vm1165_vm5 = vcmp.eq.f32.partialorder %v1164_v31, 8.507059e+37  ;;  %vm914_vm6 = vcmp.eq.f32.partialorder %v2262_v4, inf }
 0x21c   :  { %v1142_v9 = vmul.f32 %v1535_v26, %v1141_v20  ;;  %1225 = vst [vmem:[#allocation2 + $0xb0] sm:$0xff] %v1137_v59  ;;  %v917_v1 = vand.u32 2147483648, %v2262_v4  ;;  %vm916_vm7 = vcmp.eq.f32.partialorder %v2262_v4, 0.0 }
 0x21d   :  { %1226 = vst [vmem:[#allocation2 + $0xb8] sm:$0xff] %v1138_v43 }
 0x21e   :  { %v1143_v45 = vadd.f32 %v1535_v26, %v1142_v9 }
 0x21f   :  { %v1537_v41 = vpop.eup %1536 }
 0x220   :  { %v1539_v56 = vpop.eup %1538  ;;  %v1147_v2 = vsel %vm1146_vm0, %v1535_v26, %v1143_v45  ;;  %v1156_v32 = vmul.f32 %v1537_v41, %v944_v8  ;;  %vm1161_vm2 = vweird.f32 %v1537_v41 }
 0x221   :  { %v738_v34 = vpop.xlane.xlu0 %737  ;;  %v1152_v47 = vsel %vm1149_vm1, %v1151_v58, %v1147_v2  ;;  %v908_v61 = vmul.f32 %v1539_v56, %v2262_v4  ;;  %vm1162_vm4 = vmor %vm1160_vm3, %vm1161_vm2 }
 0x222   :  { %1540 = vrsqrt.f32 %v738_v34  ;;  %v1153_v55 = vmul.f32 %v1152_v47, %v2030_v13  ;;  %v1154_v18 = vmul.f32 %v1152_v47, %v2027_v7  ;;  %v1157_v17 = vsub.f32 1.0, %v1156_v32 }
 0x223   :  { %v909_v10 = vmul.f32 %v1539_v56, %v908_v61  ;;  %vm926_vm8 = vcmp.eq.f32.partialorder %v738_v34, inf  ;;  %v929_v53 = vand.u32 2147483648, %v738_v34  ;;  %vm928_vm9 = vcmp.eq.f32.partialorder %v738_v34, 0.0 }
 0x224   :  { %1227 = vst [vmem:[#allocation2 + $0xc0] sm:$0xff] %v1153_v55  ;;  %v1158_v38 = vmul.f32 %v1537_v41, %v1157_v17 }
 0x225   :  { %1228 = vst [vmem:[#allocation2 + $0xc8] sm:$0xff] %v1154_v18  ;;  %v910_v36 = vmul.f32 0.5, %v909_v10 }
 0x226   :  { %v1159_v28 = vadd.f32 %v1537_v41, %v1158_v38 }
 0x227   :  { %v911_v42 = vsub.f32 1.5, %v910_v36 }
 0x228   :  { %v1541_v6 = vpop.eup %1540  ;;  %v1163_v29 = vsel %vm1162_vm4, %v1537_v41, %v1159_v28 }
 0x229   :  { %v920_v13 = vmul.f32 %v1541_v6, %v738_v34  ;;  %v1168_v24 = vsel %vm1165_vm5, %v1167_v35, %v1163_v29  ;;  %v912_v7 = vmul.f32 %v1539_v56, %v911_v42 }
 0x22a   :  { %v1169_v46 = vmul.f32 %v1168_v24, %v2040_v30  ;;  %v1170_v49 = vmul.f32 %v1168_v24, %v2037_v25 }
 0x22b   :  { %v921_v33 = vmul.f32 %v1541_v6, %v920_v13  ;;  %v913_v11 = vmul.f32 %v912_v7, %v2262_v4 }
 0x22c   :  { %1229 = vst [vmem:[#allocation2 + $0xd0] sm:$0xff] %v1169_v46 }
 0x22d   :  { %v922_v48 = vmul.f32 0.5, %v921_v33  ;;  %1230 = vst [vmem:[#allocation2 + $0xd8] sm:$0xff] %v1170_v49  ;;  %v915_v60 = vsel %vm914_vm6, %v2262_v4, %v913_v11 }
 0x22e   :  { %v918_v62 = vsel %vm916_vm7, %v917_v1, %v915_v60 }
 0x22f   :  { %v923_v51 = vsub.f32 1.5, %v922_v48  ;;  %v945_v37 = vadd.f32 1e-07, %v918_v62 }
 0x231   :  { %v924_v30 = vmul.f32 %v1541_v6, %v923_v51  ;;  %1542 = vrcp.f32 %v945_v37  ;;  %v1182_v21 = vand.u32 2147483648, %v945_v37  ;;  %v1180_v26 = vand.u32 2147483647, %v945_v37 }
 0x232   :  { %vm1176_vm11 = vweird.f32 %v945_v37 }
 0x233   :  { %v925_v25 = vmul.f32 %v924_v30, %v738_v34  ;;  %v1183_v12 = vor.u32 1.1754944e-38, %v1182_v21  ;;  %vm1181_vm13 = vcmp.eq.f32.partialorder %v1180_v26, 8.507059e+37 }
 0x235   :  { %v927_v27 = vsel %vm926_vm8, %v738_v34, %v925_v25 }
 0x236   :  { %v930_v3 = vsel %vm928_vm9, %v929_v53, %v927_v27 }
 0x237   :  { %v946_v5 = vadd.f32 1e-07, %v930_v3  ;;  %v1543_v23 = vpop.eup %1542 }
 0x238   :  { %v1172_v57 = vmul.f32 %v1543_v23, %v945_v37  ;;  %vm1177_vm10 = vweird.f32 %v1543_v23 }
 0x239   :  { %1544 = vrcp.f32 %v946_v5  ;;  %vm1178_vm12 = vmor %vm1176_vm11, %vm1177_vm10  ;;  %v1198_v43 = vand.u32 2147483648, %v946_v5  ;;  %v1196_v9 = vand.u32 2147483647, %v946_v5  ;;  %vm1192_vm15 = vweird.f32 %v946_v5 }
 0x23a   :  { %v1173_v63 = vsub.f32 1.0, %v1172_v57 }
 0x23b   :  { %v1199_v45 = vor.u32 1.1754944e-38, %v1198_v43  ;;  %vm1197_vm1 = vcmp.eq.f32.partialorder %v1196_v9, 8.507059e+37 }
 0x23c   :  { %v1174_v44 = vmul.f32 %v1543_v23, %v1173_v63 }
 0x23e   :  { %v1175_v8 = vadd.f32 %v1543_v23, %v1174_v44 }
 0x23f   :  { %v1545_v39 = vpop.eup %1544 }
 0x240   :  { %v1188_v50 = vmul.f32 %v1545_v39, %v946_v5  ;;  %v1179_v4 = vsel %vm1178_vm12, %v1543_v23, %v1175_v8  ;;  %vm1193_vm14 = vweird.f32 %v1545_v39 }
 0x241   :  { %v1184_v0 = vsel %vm1181_vm13, %v1183_v12, %v1179_v4  ;;  %vm1194_vm0 = vmor %vm1192_vm15, %vm1193_vm14 }
 0x242   :  { %v1189_v40 = vsub.f32 1.0, %v1188_v50  ;;  %v1185_v20 = vmul.f32 %v1184_v0, %v2048_v22  ;;  %v1186_v59 = vmul.f32 %v1184_v0, %v2050_v54 }
 0x244   :  { %v1190_v15 = vmul.f32 %v1545_v39, %v1189_v40  ;;  %1231 = vst [vmem:[#allocation2 + $0xe0] sm:$0xff] %v1185_v20 }
 0x245   :  { %1232 = vst [vmem:[#allocation2 + $0xe8] sm:$0xff] %v1186_v59 }
 0x246   :  { %v1191_v52 = vadd.f32 %v1545_v39, %v1190_v15 }
 0x248   :  { %v1195_v41 = vsel %vm1194_vm0, %v1545_v39, %v1191_v52 }
 0x249   :  { %v1200_v22 = vsel %vm1197_vm1, %v1199_v45, %v1195_v41 }
 0x24a   :  { %v1201_v54 = vmul.f32 %v1200_v22, %v2058_v16  ;;  %v1202_v58 = vmul.f32 %v1200_v22, %v2060_v19 }
 0x24c   :  { %1233 = vst [vmem:[#allocation2 + $0xf0] sm:$0xff] %v1201_v54 }
 0x24d   :  { %1234 = vst [vmem:[#allocation2 + $0xf8] sm:$0xff] %v1202_v58 }
 0x24e   :  { %1247 = dma.vmem_to_hbm [thread:$0]  %s1240_s8, 4096, %s1242_s10, [#allocation3], %s1573_s11, %s1573_s11, %s1574_s12  }
 0x24f   :  { %1570 = dma.done.wait [#allocation3], 4096  }
 0x250   :  { %1571 = vsyncadd [#allocation3], 4294963200 }
 0x251   :  { %1252 = vsyncpa [#allocation3], 1 }

</bundles_post_ra>
